<compile_context>
chip_gen: v7x
topology: tpu7x:2x2x1
jax: 0.10.0
libtpu: 0.0.40
codegen_flags: <defaults>
</compile_context>

<pallas_src>
import numpy as np
import jax
import jax.numpy as jnp
from jax import lax
from jax.experimental import pallas as pl
from jax.experimental.pallas import tpu as pltpu


# ----------------------------------------------------------------------------
# Fused ASPP kernel (one grid step = one image)
# ----------------------------------------------------------------------------
def _make_aspp_kernel(rates, H, W, Cin, Cout, pad):
    n_br = 2 + len(rates)          # 1x1 branch + dilated branches + pooling branch

    def kernel(x_ref, w1_ref, wd_ref, wp_ref, wproj_ref, scale_ref, shift_ref,
               o_ref, xp_ref):
        xb = x_ref[0]                                   # (H, W, Cin) f32
        x_flat = xb.reshape(H * W, Cin)

        # SAME padding for the dilated branches, built in VMEM (no XLA pad op).
        xp_ref[...] = jnp.zeros_like(xp_ref)
        xp_ref[pad:pad + H, pad:pad + W, :] = xb        # aligned interior store

        def bn_relu(acc, k):                            # folded BN + ReLU, f32
            return jnp.maximum(acc * scale_ref[k:k + 1, :] + shift_ref[k:k + 1, :],
                               0.0)

        def project(y, k):                              # concat folded into projection
            return jnp.dot(y.astype(jnp.bfloat16),
                           wproj_ref[k * Cout:(k + 1) * Cout, :],
                           preferred_element_type=jnp.float32)

        # --- branch 0: 1x1 conv -> BN -> ReLU ---
        y0 = bn_relu(jnp.dot(x_flat.astype(jnp.bfloat16), w1_ref[...],
                             preferred_element_type=jnp.float32), 0)
        acc = project(y0, 0)

        # --- dilated 3x3 branches: im2col slab (K = 9*Cin) -> single matmul ---
        for k, d in enumerate(rates):
            taps = []
            for dh in range(3):
                for dw in range(3):
                    r0 = pad + (dh - 1) * d
                    c0 = pad + (dw - 1) * d
                    taps.append(xp_ref[r0:r0 + H, c0:c0 + W, :].reshape(H * W, Cin))
            slab = jnp.concatenate(taps, axis=-1).astype(jnp.bfloat16)  # (H*W, 9*Cin)
            yk = bn_relu(jnp.dot(slab, wd_ref[k],
                                 preferred_element_type=jnp.float32), 1 + k)
            acc = acc + project(yk, 1 + k)

        # --- pooling branch: global avg -> 1x1 conv -> BN -> ReLU -> broadcast ---
        # (bilinear upsample of a 1x1 map == broadcast, so it is a row-broadcast add)
        pooled = jnp.mean(x_flat, axis=0, keepdims=True)                # (1, Cin) f32
        yp = bn_relu(jnp.dot(pooled.astype(jnp.bfloat16), wp_ref[...],
                             preferred_element_type=jnp.float32), n_br - 1)
        acc = acc + project(yp, n_br - 1)               # (1, Cout) broadcasts over rows

        # --- projection BN -> ReLU  (Dropout(0.5) = identity in eval) ---
        out = jnp.maximum(acc * scale_ref[n_br:n_br + 1, :]
                          + shift_ref[n_br:n_br + 1, :], 0.0)
        o_ref[...] = out.reshape(1, H, W, Cout)

    return kernel


# ----------------------------------------------------------------------------
# Wrapper
# ----------------------------------------------------------------------------
def aspp_forward(x, params, rates):
    B, H, W, Cin = x.shape
    Cout = params["w1x1"].shape[-1]
    pad = ((max(rates) + 7) // 8) * 8          # sublane-aligned padded scratch
    kernel = _make_aspp_kernel(tuple(rates), H, W, Cin, Cout, pad)

    # weights pre-cast to bf16 (MXU-native, half the DMA bytes); BN stays f32
    w1 = params["w1x1"].astype(jnp.bfloat16)          # (Cin, Cout)
    wd = params["w_dil"].astype(jnp.bfloat16)         # (n_rates, 9*Cin, Cout)
    wp = params["w_pool"].astype(jnp.bfloat16)        # (Cin, Cout)
    wpr = params["w_proj"].astype(jnp.bfloat16)       # (n_br*Cout, Cout)
    scale = params["scale"]                           # (n_br+1, Cout) f32
    shift = params["shift"]

    def const_spec(arr):
        nd = arr.ndim
        return pl.BlockSpec(arr.shape, lambda b, nd=nd: (0,) * nd)

    return pl.pallas_call(
        kernel,
        out_shape=jax.ShapeDtypeStruct((B, H, W, Cout), jnp.float32),
        grid=(B,),
        in_specs=[
            pl.BlockSpec((1, H, W, Cin), lambda b: (b, 0, 0, 0)),
            const_spec(w1),
            const_spec(wd),
            const_spec(wp),
            const_spec(wpr),
            const_spec(scale),
            const_spec(shift),
        ],
        out_specs=pl.BlockSpec((1, H, W, Cout), lambda b: (b, 0, 0, 0)),
        scratch_shapes=[pltpu.VMEM((H + 2 * pad, W + 2 * pad, Cin), jnp.float32)],
        compiler_params=pltpu.CompilerParams(dimension_semantics=("parallel",)),
    )(x, w1, wd, wp, wpr, scale, shift)


# ----------------------------------------------------------------------------
# Pure-JAX f32 reference (same math, XLA ops) for correctness checking.
# ----------------------------------------------------------------------------
def ref_forward(x, p, rates):
    hi = lax.Precision.HIGHEST
    B, H, W, Cin = x.shape
    Cout = p["w1x1"].shape[-1]
    n_br = 2 + len(rates)

    def bn_relu(y, k):
        return jnp.maximum(y * p["scale"][k] + p["shift"][k], 0.0)

    outs = [bn_relu(jnp.einsum("bhwc,co->bhwo", x, p["w1x1"], precision=hi), 0)]
    for k, d in enumerate(rates):
        y = lax.conv_general_dilated(
            x, p["w_dil_hwio"][k], window_strides=(1, 1),
            padding=[(d, d), (d, d)], rhs_dilation=(d, d),
            dimension_numbers=("NHWC", "HWIO", "NHWC"), precision=hi)
        outs.append(bn_relu(y, 1 + k))
    pooled = jnp.mean(x, axis=(1, 2))                                   # (B, Cin)
    yp = bn_relu(jnp.einsum("bc,co->bo", pooled, p["w_pool"], precision=hi),
                 n_br - 1)
    outs.append(jnp.broadcast_to(yp[:, None, None, :], (B, H, W, Cout)))
    cat = jnp.concatenate(outs, axis=-1)
    proj = jnp.einsum("bhwc,co->bhwo", cat, p["w_proj"], precision=hi)
    return jnp.maximum(proj * p["scale"][n_br] + p["shift"][n_br], 0.0)


# ----------------------------------------------------------------------------
# Deterministic parameter construction (conv weights + folded BatchNorm)
# ----------------------------------------------------------------------------
def make_params(key, Cin, Cout, rates):
    n_rates = len(rates)
    n_br = 2 + n_rates
    ks = jax.random.split(key, 4 + 4 * (n_br + 1))
    it = iter(ks)
    eps = 1e-5

    w1x1 = 0.1 * jax.random.normal(next(it), (Cin, Cout), jnp.float32)
    w_dil_hwio = 0.1 * jax.random.normal(next(it), (n_rates, 3, 3, Cin, Cout),
                                         jnp.float32)
    w_pool = 0.1 * jax.random.normal(next(it), (Cin, Cout), jnp.float32)
    w_proj = 0.05 * jax.random.normal(next(it), (n_br * Cout, Cout), jnp.float32)

    scales, shifts = [], []
    for _ in range(n_br + 1):
        gamma = 1.0 + 0.1 * jax.random.normal(next(it), (Cout,), jnp.float32)
        beta = 0.1 * jax.random.normal(next(it), (Cout,), jnp.float32)
        mean = 0.1 * jax.random.normal(next(it), (Cout,), jnp.float32)
        var = jax.random.uniform(next(it), (Cout,), jnp.float32, 0.5, 1.5)
        s = gamma / jnp.sqrt(var + eps)
        scales.append(s)
        shifts.append(beta - mean * s)

    return dict(
        w1x1=w1x1,
        w_dil_hwio=w_dil_hwio,                                 # reference layout
        w_dil=w_dil_hwio.reshape(n_rates, 9 * Cin, Cout),      # kernel im2col layout
        w_pool=w_pool,
        w_proj=w_proj,
        scale=jnp.stack(scales),                               # (n_br+1, Cout)
        shift=jnp.stack(shifts),
    )


if __name__ == "__main__":
    B, H, W = 2, 16, 16
    Cin, Cout = 32, 128          # in_channels, out_channels (lane-dense output)
    rates = (2, 4)               # atrous_rates

    key = jax.random.PRNGKey(0)
    kx, kp = jax.random.split(key)
    x = jax.random.normal(kx, (B, H, W, Cin), jnp.float32)
    params = make_params(kp, Cin, Cout, rates)

    fwd = jax.jit(lambda xx, pp: aspp_forward(xx, pp, rates))
    out = jax.block_until_ready(fwd(x, params))

    ref = jax.block_until_ready(ref_forward(x, params, rates))
    assert out.shape == (B, H, W, Cout), out.shape
    # bf16 MXU kernel vs f32 reference
    np.testing.assert_allclose(np.asarray(out), np.asarray(ref), rtol=3e-2, atol=3e-2)

    print("KERNEL_OK")
</pallas_src>

<mosaic_0001>
module attributes {stable_mosaic.version = 11 : i64} {
  func.func @kernel(%arg0: i32, %arg1: memref<1x16x16x32xf32, #tpu.memory_space<vmem>>, %arg2: memref<32x128xbf16, #tpu.memory_space<vmem>>, %arg3: memref<2x288x128xbf16, #tpu.memory_space<vmem>>, %arg4: memref<32x128xbf16, #tpu.memory_space<vmem>>, %arg5: memref<512x128xbf16, #tpu.memory_space<vmem>>, %arg6: memref<5x128xf32, #tpu.memory_space<vmem>>, %arg7: memref<5x128xf32, #tpu.memory_space<vmem>>, %arg8: memref<1x16x16x128xf32, #tpu.memory_space<vmem>>, %arg9: memref<32x32x32xf32, #tpu.memory_space<vmem>>) attributes {dimension_semantics = [#tpu.dimension_semantics<parallel>], iteration_bounds = array<i64: 2>, scalar_prefetch = 0 : i64, scratch_operands = 1 : i64, tpu.core_type = #tpu.core_type<tc>, window_params = [{transform_indices = @transform_0, window_bounds = array<i64: 1, 16, 16, 32>}, {pipeline_mode = #tpu.pipeline_mode<synchronous>, transform_indices = @transform_1, window_bounds = array<i64: 32, 128>}, {pipeline_mode = #tpu.pipeline_mode<synchronous>, transform_indices = @transform_2, window_bounds = array<i64: 2, 288, 128>}, {pipeline_mode = #tpu.pipeline_mode<synchronous>, transform_indices = @transform_3, window_bounds = array<i64: 32, 128>}, {pipeline_mode = #tpu.pipeline_mode<synchronous>, transform_indices = @transform_4, window_bounds = array<i64: 512, 128>}, {pipeline_mode = #tpu.pipeline_mode<synchronous>, transform_indices = @transform_5, window_bounds = array<i64: 5, 128>}, {pipeline_mode = #tpu.pipeline_mode<synchronous>, transform_indices = @transform_6, window_bounds = array<i64: 5, 128>}, {transform_indices = @transform_7, window_bounds = array<i64: 1, 16, 16, 128>}]} {
    %c0 = arith.constant 0 : index
    %c0_0 = arith.constant 0 : index
    %c0_1 = arith.constant 0 : index
    %c0_2 = arith.constant 0 : index
    %0 = vector.load %arg1[%c0, %c0_0, %c0_1, %c0_2] : memref<1x16x16x32xf32, #tpu.memory_space<vmem>>, vector<1x16x16x32xf32>
    %1 = vector.shape_cast %0 : vector<1x16x16x32xf32> to vector<16x16x32xf32>
    %2 = vector.shape_cast %1 : vector<16x16x32xf32> to vector<256x32xf32>
    %cst = arith.constant 0.000000e+00 : f32
    %3 = vector.broadcast %cst : f32 to vector<32x32x32xf32>
    %c0_3 = arith.constant 0 : index
    %c0_4 = arith.constant 0 : index
    %c0_5 = arith.constant 0 : index
    %4 = vector.load %arg9[%c0_3, %c0_4, %c0_5] : memref<32x32x32xf32, #tpu.memory_space<vmem>>, vector<32x32x32xf32>
    tpu.vector_store %arg9[%c0_3, %c0_4, %c0_5], %3 {strides = array<i32>} : memref<32x32x32xf32, #tpu.memory_space<vmem>>, vector<32x32x32xf32>,
    %c8 = arith.constant 8 : index
    %c8_6 = arith.constant 8 : index
    %c0_7 = arith.constant 0 : index
    %5 = vector.load %arg9[%c8, %c8_6, %c0_7] : memref<32x32x32xf32, #tpu.memory_space<vmem>>, vector<16x16x32xf32>
    tpu.vector_store %arg9[%c8, %c8_6, %c0_7], %1 {strides = array<i32>} : memref<32x32x32xf32, #tpu.memory_space<vmem>>, vector<16x16x32xf32>,
    %6 = arith.truncf %2 : vector<256x32xf32> to vector<256x32xbf16>
    %c0_8 = arith.constant 0 : index
    %c0_9 = arith.constant 0 : index
    %7 = vector.load %arg2[%c0_8, %c0_9] : memref<32x128xbf16, #tpu.memory_space<vmem>>, vector<32x128xbf16>
    %cst_10 = arith.constant dense<0.000000e+00> : vector<256x128xf32>
    %8 = tpu.matmul %6, %7, %cst_10 {dimension_numbers = #tpu.dot_dimension_numbers<[1], [0], [0], [1], [0, 0, 1, 1], [], []>} : vector<256x32xbf16>, vector<32x128xbf16>, vector<256x128xf32> -> vector<256x128xf32>
    %c0_11 = arith.constant 0 : index
    %c0_12 = arith.constant 0 : index
    %9 = vector.load %arg6[%c0_11, %c0_12] : memref<5x128xf32, #tpu.memory_space<vmem>>, vector<1x128xf32>
    %10 = vector.broadcast %9 : vector<1x128xf32> to vector<256x128xf32>
    %11 = arith.mulf %8, %10 : vector<256x128xf32>
    %c0_13 = arith.constant 0 : index
    %c0_14 = arith.constant 0 : index
    %12 = vector.load %arg7[%c0_13, %c0_14] : memref<5x128xf32, #tpu.memory_space<vmem>>, vector<1x128xf32>
    %13 = vector.broadcast %12 : vector<1x128xf32> to vector<256x128xf32>
    %14 = arith.addf %11, %13 : vector<256x128xf32>
    %cst_15 = arith.constant 0.000000e+00 : f32
    %15 = vector.broadcast %cst_15 : f32 to vector<256x128xf32>
    %16 = arith.maximumf %14, %15 : vector<256x128xf32>
    %17 = arith.truncf %16 : vector<256x128xf32> to vector<256x128xbf16>
    %c0_16 = arith.constant 0 : index
    %c0_17 = arith.constant 0 : index
    %18 = vector.load %arg5[%c0_16, %c0_17] : memref<512x128xbf16, #tpu.memory_space<vmem>>, vector<128x128xbf16>
    %cst_18 = arith.constant dense<0.000000e+00> : vector<256x128xf32>
    %19 = tpu.matmul %17, %18, %cst_18 {dimension_numbers = #tpu.dot_dimension_numbers<[1], [0], [0], [1], [0, 0, 1, 1], [], []>} : vector<256x128xbf16>, vector<128x128xbf16>, vector<256x128xf32> -> vector<256x128xf32>
    %c6 = arith.constant 6 : index
    %c6_19 = arith.constant 6 : index
    %c0_20 = arith.constant 0 : index
    %20 = vector.load %arg9[%c6, %c6_19, %c0_20] : memref<32x32x32xf32, #tpu.memory_space<vmem>>, vector<16x16x32xf32>
    %21 = vector.shape_cast %20 : vector<16x16x32xf32> to vector<256x32xf32>
    %c6_21 = arith.constant 6 : index
    %c8_22 = arith.constant 8 : index
    %c0_23 = arith.constant 0 : index
    %22 = vector.load %arg9[%c6_21, %c8_22, %c0_23] : memref<32x32x32xf32, #tpu.memory_space<vmem>>, vector<16x16x32xf32>
    %23 = vector.shape_cast %22 : vector<16x16x32xf32> to vector<256x32xf32>
    %c6_24 = arith.constant 6 : index
    %c10 = arith.constant 10 : index
    %c0_25 = arith.constant 0 : index
    %24 = vector.load %arg9[%c6_24, %c10, %c0_25] : memref<32x32x32xf32, #tpu.memory_space<vmem>>, vector<16x16x32xf32>
    %25 = vector.shape_cast %24 : vector<16x16x32xf32> to vector<256x32xf32>
    %c8_26 = arith.constant 8 : index
    %c6_27 = arith.constant 6 : index
    %c0_28 = arith.constant 0 : index
    %26 = vector.load %arg9[%c8_26, %c6_27, %c0_28] : memref<32x32x32xf32, #tpu.memory_space<vmem>>, vector<16x16x32xf32>
    %27 = vector.shape_cast %26 : vector<16x16x32xf32> to vector<256x32xf32>
    %c8_29 = arith.constant 8 : index
    %c8_30 = arith.constant 8 : index
    %c0_31 = arith.constant 0 : index
    %28 = vector.load %arg9[%c8_29, %c8_30, %c0_31] : memref<32x32x32xf32, #tpu.memory_space<vmem>>, vector<16x16x32xf32>
    %29 = vector.shape_cast %28 : vector<16x16x32xf32> to vector<256x32xf32>
    %c8_32 = arith.constant 8 : index
    %c10_33 = arith.constant 10 : index
    %c0_34 = arith.constant 0 : index
    %30 = vector.load %arg9[%c8_32, %c10_33, %c0_34] : memref<32x32x32xf32, #tpu.memory_space<vmem>>, vector<16x16x32xf32>
    %31 = vector.shape_cast %30 : vector<16x16x32xf32> to vector<256x32xf32>
    %c10_35 = arith.constant 10 : index
    %c6_36 = arith.constant 6 : index
    %c0_37 = arith.constant 0 : index
    %32 = vector.load %arg9[%c10_35, %c6_36, %c0_37] : memref<32x32x32xf32, #tpu.memory_space<vmem>>, vector<16x16x32xf32>
    %33 = vector.shape_cast %32 : vector<16x16x32xf32> to vector<256x32xf32>
    %c10_38 = arith.constant 10 : index
    %c8_39 = arith.constant 8 : index
    %c0_40 = arith.constant 0 : index
    %34 = vector.load %arg9[%c10_38, %c8_39, %c0_40] : memref<32x32x32xf32, #tpu.memory_space<vmem>>, vector<16x16x32xf32>
    %35 = vector.shape_cast %34 : vector<16x16x32xf32> to vector<256x32xf32>
    %c10_41 = arith.constant 10 : index
    %c10_42 = arith.constant 10 : index
    %c0_43 = arith.constant 0 : index
    %36 = vector.load %arg9[%c10_41, %c10_42, %c0_43] : memref<32x32x32xf32, #tpu.memory_space<vmem>>, vector<16x16x32xf32>
    %37 = vector.shape_cast %36 : vector<16x16x32xf32> to vector<256x32xf32>
    %38 = tpu.concatenate %21, %23, %25, %27, %29, %31, %33, %35, %37 in 1 : vector<256x32xf32>, vector<256x32xf32>, vector<256x32xf32>, vector<256x32xf32>, vector<256x32xf32>, vector<256x32xf32>, vector<256x32xf32>, vector<256x32xf32>, vector<256x32xf32> -> vector<256x288xf32>
    %39 = arith.truncf %38 : vector<256x288xf32> to vector<256x288xbf16>
    %c0_44 = arith.constant 0 : index
    %c0_45 = arith.constant 0 : index
    %c0_46 = arith.constant 0 : index
    %40 = vector.load %arg3[%c0_44, %c0_45, %c0_46] : memref<2x288x128xbf16, #tpu.memory_space<vmem>>, vector<1x288x128xbf16>
    %41 = vector.shape_cast %40 : vector<1x288x128xbf16> to vector<288x128xbf16>
    %cst_47 = arith.constant dense<0.000000e+00> : vector<256x128xf32>
    %42 = tpu.matmul %39, %41, %cst_47 {dimension_numbers = #tpu.dot_dimension_numbers<[1], [0], [0], [1], [0, 0, 1, 1], [], []>} : vector<256x288xbf16>, vector<288x128xbf16>, vector<256x128xf32> -> vector<256x128xf32>
    %c1 = arith.constant 1 : index
    %c0_48 = arith.constant 0 : index
    %43 = vector.load %arg6[%c1, %c0_48] : memref<5x128xf32, #tpu.memory_space<vmem>>, vector<1x128xf32>
    %44 = vector.broadcast %43 : vector<1x128xf32> to vector<256x128xf32>
    %45 = arith.mulf %42, %44 : vector<256x128xf32>
    %c1_49 = arith.constant 1 : index
    %c0_50 = arith.constant 0 : index
    %46 = vector.load %arg7[%c1_49, %c0_50] : memref<5x128xf32, #tpu.memory_space<vmem>>, vector<1x128xf32>
    %47 = vector.broadcast %46 : vector<1x128xf32> to vector<256x128xf32>
    %48 = arith.addf %45, %47 : vector<256x128xf32>
    %cst_51 = arith.constant 0.000000e+00 : f32
    %49 = vector.broadcast %cst_51 : f32 to vector<256x128xf32>
    %50 = arith.maximumf %48, %49 : vector<256x128xf32>
    %51 = arith.truncf %50 : vector<256x128xf32> to vector<256x128xbf16>
    %c128 = arith.constant 128 : index
    %c0_52 = arith.constant 0 : index
    %52 = vector.load %arg5[%c128, %c0_52] : memref<512x128xbf16, #tpu.memory_space<vmem>>, vector<128x128xbf16>
    %cst_53 = arith.constant dense<0.000000e+00> : vector<256x128xf32>
    %53 = tpu.matmul %51, %52, %cst_53 {dimension_numbers = #tpu.dot_dimension_numbers<[1], [0], [0], [1], [0, 0, 1, 1], [], []>} : vector<256x128xbf16>, vector<128x128xbf16>, vector<256x128xf32> -> vector<256x128xf32>
    %54 = arith.addf %19, %53 : vector<256x128xf32>
    %c4 = arith.constant 4 : index
    %c4_54 = arith.constant 4 : index
    %c0_55 = arith.constant 0 : index
    %55 = vector.load %arg9[%c4, %c4_54, %c0_55] : memref<32x32x32xf32, #tpu.memory_space<vmem>>, vector<16x16x32xf32>
    %56 = vector.shape_cast %55 : vector<16x16x32xf32> to vector<256x32xf32>
    %c4_56 = arith.constant 4 : index
    %c8_57 = arith.constant 8 : index
    %c0_58 = arith.constant 0 : index
    %57 = vector.load %arg9[%c4_56, %c8_57, %c0_58] : memref<32x32x32xf32, #tpu.memory_space<vmem>>, vector<16x16x32xf32>
    %58 = vector.shape_cast %57 : vector<16x16x32xf32> to vector<256x32xf32>
    %c4_59 = arith.constant 4 : index
    %c12 = arith.constant 12 : index
    %c0_60 = arith.constant 0 : index
    %59 = vector.load %arg9[%c4_59, %c12, %c0_60] : memref<32x32x32xf32, #tpu.memory_space<vmem>>, vector<16x16x32xf32>
    %60 = vector.shape_cast %59 : vector<16x16x32xf32> to vector<256x32xf32>
    %c8_61 = arith.constant 8 : index
    %c4_62 = arith.constant 4 : index
    %c0_63 = arith.constant 0 : index
    %61 = vector.load %arg9[%c8_61, %c4_62, %c0_63] : memref<32x32x32xf32, #tpu.memory_space<vmem>>, vector<16x16x32xf32>
    %62 = vector.shape_cast %61 : vector<16x16x32xf32> to vector<256x32xf32>
    %c8_64 = arith.constant 8 : index
    %c8_65 = arith.constant 8 : index
    %c0_66 = arith.constant 0 : index
    %63 = vector.load %arg9[%c8_64, %c8_65, %c0_66] : memref<32x32x32xf32, #tpu.memory_space<vmem>>, vector<16x16x32xf32>
    %64 = vector.shape_cast %63 : vector<16x16x32xf32> to vector<256x32xf32>
    %c8_67 = arith.constant 8 : index
    %c12_68 = arith.constant 12 : index
    %c0_69 = arith.constant 0 : index
    %65 = vector.load %arg9[%c8_67, %c12_68, %c0_69] : memref<32x32x32xf32, #tpu.memory_space<vmem>>, vector<16x16x32xf32>
    %66 = vector.shape_cast %65 : vector<16x16x32xf32> to vector<256x32xf32>
    %c12_70 = arith.constant 12 : index
    %c4_71 = arith.constant 4 : index
    %c0_72 = arith.constant 0 : index
    %67 = vector.load %arg9[%c12_70, %c4_71, %c0_72] : memref<32x32x32xf32, #tpu.memory_space<vmem>>, vector<16x16x32xf32>
    %68 = vector.shape_cast %67 : vector<16x16x32xf32> to vector<256x32xf32>
    %c12_73 = arith.constant 12 : index
    %c8_74 = arith.constant 8 : index
    %c0_75 = arith.constant 0 : index
    %69 = vector.load %arg9[%c12_73, %c8_74, %c0_75] : memref<32x32x32xf32, #tpu.memory_space<vmem>>, vector<16x16x32xf32>
    %70 = vector.shape_cast %69 : vector<16x16x32xf32> to vector<256x32xf32>
    %c12_76 = arith.constant 12 : index
    %c12_77 = arith.constant 12 : index
    %c0_78 = arith.constant 0 : index
    %71 = vector.load %arg9[%c12_76, %c12_77, %c0_78] : memref<32x32x32xf32, #tpu.memory_space<vmem>>, vector<16x16x32xf32>
    %72 = vector.shape_cast %71 : vector<16x16x32xf32> to vector<256x32xf32>
    %73 = tpu.concatenate %56, %58, %60, %62, %64, %66, %68, %70, %72 in 1 : vector<256x32xf32>, vector<256x32xf32>, vector<256x32xf32>, vector<256x32xf32>, vector<256x32xf32>, vector<256x32xf32>, vector<256x32xf32>, vector<256x32xf32>, vector<256x32xf32> -> vector<256x288xf32>
    %74 = arith.truncf %73 : vector<256x288xf32> to vector<256x288xbf16>
    %c1_79 = arith.constant 1 : index
    %c0_80 = arith.constant 0 : index
    %c0_81 = arith.constant 0 : index
    %75 = vector.load %arg3[%c1_79, %c0_80, %c0_81] : memref<2x288x128xbf16, #tpu.memory_space<vmem>>, vector<1x288x128xbf16>
    %76 = vector.shape_cast %75 : vector<1x288x128xbf16> to vector<288x128xbf16>
    %cst_82 = arith.constant dense<0.000000e+00> : vector<256x128xf32>
    %77 = tpu.matmul %74, %76, %cst_82 {dimension_numbers = #tpu.dot_dimension_numbers<[1], [0], [0], [1], [0, 0, 1, 1], [], []>} : vector<256x288xbf16>, vector<288x128xbf16>, vector<256x128xf32> -> vector<256x128xf32>
    %c2 = arith.constant 2 : index
    %c0_83 = arith.constant 0 : index
    %78 = vector.load %arg6[%c2, %c0_83] : memref<5x128xf32, #tpu.memory_space<vmem>>, vector<1x128xf32>
    %79 = vector.broadcast %78 : vector<1x128xf32> to vector<256x128xf32>
    %80 = arith.mulf %77, %79 : vector<256x128xf32>
    %c2_84 = arith.constant 2 : index
    %c0_85 = arith.constant 0 : index
    %81 = vector.load %arg7[%c2_84, %c0_85] : memref<5x128xf32, #tpu.memory_space<vmem>>, vector<1x128xf32>
    %82 = vector.broadcast %81 : vector<1x128xf32> to vector<256x128xf32>
    %83 = arith.addf %80, %82 : vector<256x128xf32>
    %cst_86 = arith.constant 0.000000e+00 : f32
    %84 = vector.broadcast %cst_86 : f32 to vector<256x128xf32>
    %85 = arith.maximumf %83, %84 : vector<256x128xf32>
    %86 = arith.truncf %85 : vector<256x128xf32> to vector<256x128xbf16>
    %c256 = arith.constant 256 : index
    %c0_87 = arith.constant 0 : index
    %87 = vector.load %arg5[%c256, %c0_87] : memref<512x128xbf16, #tpu.memory_space<vmem>>, vector<128x128xbf16>
    %cst_88 = arith.constant dense<0.000000e+00> : vector<256x128xf32>
    %88 = tpu.matmul %86, %87, %cst_88 {dimension_numbers = #tpu.dot_dimension_numbers<[1], [0], [0], [1], [0, 0, 1, 1], [], []>} : vector<256x128xbf16>, vector<128x128xbf16>, vector<256x128xf32> -> vector<256x128xf32>
    %89 = arith.addf %54, %88 : vector<256x128xf32>
    %cst_89 = arith.constant dense<0.000000e+00> : vector<32xf32>
    %90 = vector.multi_reduction <add>, %2, %cst_89 [0] : vector<256x32xf32> to vector<32xf32>
    %91 = vector.shape_cast %90 : vector<32xf32> to vector<1x32xf32>
    %cst_90 = arith.constant 2.560000e+02 : f32
    %92 = vector.broadcast %cst_90 : f32 to vector<1x32xf32>
    %93 = arith.divf %91, %92 : vector<1x32xf32>
    %94 = arith.truncf %93 : vector<1x32xf32> to vector<1x32xbf16>
    %c0_91 = arith.constant 0 : index
    %c0_92 = arith.constant 0 : index
    %95 = vector.load %arg4[%c0_91, %c0_92] : memref<32x128xbf16, #tpu.memory_space<vmem>>, vector<32x128xbf16>
    %cst_93 = arith.constant dense<0.000000e+00> : vector<1x128xf32>
    %96 = tpu.matmul %94, %95, %cst_93 {dimension_numbers = #tpu.dot_dimension_numbers<[1], [0], [0], [1], [0, 0, 1, 1], [], []>} : vector<1x32xbf16>, vector<32x128xbf16>, vector<1x128xf32> -> vector<1x128xf32>
    %c3 = arith.constant 3 : index
    %c0_94 = arith.constant 0 : index
    %97 = vector.load %arg6[%c3, %c0_94] : memref<5x128xf32, #tpu.memory_space<vmem>>, vector<1x128xf32>
    %98 = arith.mulf %96, %97 : vector<1x128xf32>
    %c3_95 = arith.constant 3 : index
    %c0_96 = arith.constant 0 : index
    %99 = vector.load %arg7[%c3_95, %c0_96] : memref<5x128xf32, #tpu.memory_space<vmem>>, vector<1x128xf32>
    %100 = arith.addf %98, %99 : vector<1x128xf32>
    %cst_97 = arith.constant 0.000000e+00 : f32
    %101 = vector.broadcast %cst_97 : f32 to vector<1x128xf32>
    %102 = arith.maximumf %100, %101 : vector<1x128xf32>
    %103 = arith.truncf %102 : vector<1x128xf32> to vector<1x128xbf16>
    %c384 = arith.constant 384 : index
    %c0_98 = arith.constant 0 : index
    %104 = vector.load %arg5[%c384, %c0_98] : memref<512x128xbf16, #tpu.memory_space<vmem>>, vector<128x128xbf16>
    %cst_99 = arith.constant dense<0.000000e+00> : vector<1x128xf32>
    %105 = tpu.matmul %103, %104, %cst_99 {dimension_numbers = #tpu.dot_dimension_numbers<[1], [0], [0], [1], [0, 0, 1, 1], [], []>} : vector<1x128xbf16>, vector<128x128xbf16>, vector<1x128xf32> -> vector<1x128xf32>
    %106 = vector.broadcast %105 : vector<1x128xf32> to vector<256x128xf32>
    %107 = arith.addf %89, %106 : vector<256x128xf32>
    %c4_100 = arith.constant 4 : index
    %c0_101 = arith.constant 0 : index
    %108 = vector.load %arg6[%c4_100, %c0_101] : memref<5x128xf32, #tpu.memory_space<vmem>>, vector<1x128xf32>
    %109 = vector.broadcast %108 : vector<1x128xf32> to vector<256x128xf32>
    %110 = arith.mulf %107, %109 : vector<256x128xf32>
    %c4_102 = arith.constant 4 : index
    %c0_103 = arith.constant 0 : index
    %111 = vector.load %arg7[%c4_102, %c0_103] : memref<5x128xf32, #tpu.memory_space<vmem>>, vector<1x128xf32>
    %112 = vector.broadcast %111 : vector<1x128xf32> to vector<256x128xf32>
    %113 = arith.addf %110, %112 : vector<256x128xf32>
    %cst_104 = arith.constant 0.000000e+00 : f32
    %114 = vector.broadcast %cst_104 : f32 to vector<256x128xf32>
    %115 = arith.maximumf %113, %114 : vector<256x128xf32>
    %116 = vector.shape_cast %115 : vector<256x128xf32> to vector<1x16x16x128xf32>
    %c0_105 = arith.constant 0 : index
    %c0_106 = arith.constant 0 : index
    %c0_107 = arith.constant 0 : index
    %c0_108 = arith.constant 0 : index
    %117 = vector.load %arg8[%c0_105, %c0_106, %c0_107, %c0_108] : memref<1x16x16x128xf32, #tpu.memory_space<vmem>>, vector<1x16x16x128xf32>
    tpu.vector_store %arg8[%c0_105, %c0_106, %c0_107, %c0_108], %116 {strides = array<i32>} : memref<1x16x16x128xf32, #tpu.memory_space<vmem>>, vector<1x16x16x128xf32>,
    return
  }
  func.func @transform_0(%arg0: i32) -> (i32, i32, i32, i32) {
    %c0_i32 = arith.constant 0 : i32
    %c0_i32_0 = arith.constant 0 : i32
    %c0_i32_1 = arith.constant 0 : i32
    %c0_i32_2 = arith.constant 0 : i32
    return %arg0, %c0_i32, %c0_i32_0, %c0_i32_1 : i32, i32, i32, i32
  }
  func.func @transform_1(%arg0: i32) -> (i32, i32) {
    %c0_i32 = arith.constant 0 : i32
    %c0_i32_0 = arith.constant 0 : i32
    %c0_i32_1 = arith.constant 0 : i32
    return %c0_i32, %c0_i32_0 : i32, i32
  }
  func.func @transform_2(%arg0: i32) -> (i32, i32, i32) {
    %c0_i32 = arith.constant 0 : i32
    %c0_i32_0 = arith.constant 0 : i32
    %c0_i32_1 = arith.constant 0 : i32
    %c0_i32_2 = arith.constant 0 : i32
    return %c0_i32, %c0_i32_0, %c0_i32_1 : i32, i32, i32
  }
  func.func @transform_3(%arg0: i32) -> (i32, i32) {
    %c0_i32 = arith.constant 0 : i32
    %c0_i32_0 = arith.constant 0 : i32
    %c0_i32_1 = arith.constant 0 : i32
    return %c0_i32, %c0_i32_0 : i32, i32
  }
  func.func @transform_4(%arg0: i32) -> (i32, i32) {
    %c0_i32 = arith.constant 0 : i32
    %c0_i32_0 = arith.constant 0 : i32
    %c0_i32_1 = arith.constant 0 : i32
    return %c0_i32, %c0_i32_0 : i32, i32
  }
  func.func @transform_5(%arg0: i32) -> (i32, i32) {
    %c0_i32 = arith.constant 0 : i32
    %c0_i32_0 = arith.constant 0 : i32
    %c0_i32_1 = arith.constant 0 : i32
    return %c0_i32, %c0_i32_0 : i32, i32
  }
  func.func @transform_6(%arg0: i32) -> (i32, i32) {
    %c0_i32 = arith.constant 0 : i32
    %c0_i32_0 = arith.constant 0 : i32
    %c0_i32_1 = arith.constant 0 : i32
    return %c0_i32, %c0_i32_0 : i32, i32
  }
  func.func @transform_7(%arg0: i32) -> (i32, i32, i32, i32) {
    %c0_i32 = arith.constant 0 : i32
    %c0_i32_0 = arith.constant 0 : i32
    %c0_i32_1 = arith.constant 0 : i32
    %c0_i32_2 = arith.constant 0 : i32
    return %arg0, %c0_i32, %c0_i32_0, %c0_i32_1 : i32, i32, i32, i32
  }
}

</mosaic_0001>

<bundles_post_ra>
// kernel: _lambda_.1
= control target key start
LH: loop header
LB: loop body
LE: loop exit
PB: predicated region body
PF: predicated region fallthrough
CT: control target
= control target key end

     0   :  { %12 = vsyncpa [#allocation4], 0  ;;  %s10537_s0 = inlined_call_operand.vmem [shape: f32[2,16,16,32], index: 0, kind: input, shape index: {}]   ;;  %s10538_s1 = inlined_call_operand.vmem [shape: bf16[32,128], index: 1, kind: input, shape index: {}]   ;;  %s10539_s2 = inlined_call_operand.vmem [shape: bf16[2,288,128], index: 2, kind: input, shape index: {}]   ;;  %s10540_s3 = inlined_call_operand.vmem [shape: bf16[32,128], index: 3, kind: input, shape index: {}]   ;;  %s10541_s4 = inlined_call_operand.vmem [shape: bf16[512,128], index: 4, kind: input, shape index: {}]   ;;  %s10542_s5 = inlined_call_operand.vmem [shape: f32[5,128], index: 5, kind: input, shape index: {}]   ;;  %s10543_s6 = inlined_call_operand.vmem [shape: f32[5,128], index: 6, kind: input, shape index: {}]   ;;  %s10544_s7 = inlined_call_operand.hbm [shape: f32[2,16,16,128], index: 7, kind: output, shape index: {}]  }
   0x1   :  { %14 = vsyncpa [#allocation4 + $0x1], 0  ;;  %s7953_s24 = smov 0   ;;  %s7955_s25 = smov 0  }
   0x2   :  { %s7957_s26 = smov 0   ;;  %s7959_s27 = smov 0  }
   0x3 LB: > { %s7974_s28 = sadd.s32 4294967295, %s7903_s27   ;;  %s5808_s29 = sadd.s32 4294967294, %s7903_s27   ;;  %s7903_s27 = sphi %s7959_s27, %s10655_s27   ;;  %s7899_s26 = sphi %s7957_s26, %s10654_s26   ;;  %s7895_s25 = sphi %s7955_s25, %s10653_s25   ;;  %s7891_s24 = sphi %s7953_s24, %s10652_s24  }
   0x4   : > { %s7978_s30 = sadd.s32 1, %s7903_s27   ;;  %s179_s8 = sadd.s32 1, %s7899_s26 }
   0x5   : > { %s176_s9 = ssub.s32 %s7903_s27, %s7978_s30  ;;  %p189_p0 = scmp.ne.s32.totalorder %s7899_s26, %s7895_s25 }
   0x6   : > { %p177_p1 = scmp.eq.s32.totalorder %s176_s9, 0  ;;  %p190_p2 = scmp.eq.s32.totalorder %s7974_s28, 1 }
   0x7   : > { %p195_p3 = scmp.ne.s32.totalorder %s7895_s25, %s7891_s24  ;;  %p196_p4 = scmp.eq.s32.totalorder %s5808_s29, 1 }
   0x8   : > { %s7989_s10 = scalar_select %p177_p1, %s7899_s26, %s179_s8  }
   0x9   : > { %p7991_p5 = por %p190_p2, %p189_p0  ;;  %p7995_p6 = por %p196_p4, %p195_p3 }
   0xa   : > { %p5811_p7 = scmp.ge.s32.totalorder %s7903_s27, 1  ;;  %p240_p8 = scmp.lt.s32.totalorder %s7903_s27, 3 }
   0xc   : > { %p241_p9 = pnand %p5811_p7, %p240_p8 }
   0xe   : > { %244 = sbr.rel (%p241_p9) target bundleno = 1204 (0x4b4), region = 48 }
  0x15   : > { %vm310_vm0 = vcmask 261120   ;;  %v10545_v0 = vmov 0.0   ;;  %p272_p10 = scmp.lt.s32.totalorder %s7974_s28, 1  ;;  %v7703_v1 = vld [vmem:[%s10538_s1] sm:$0xff]   ;;  %v7704_v2 = vld [vmem:[%s10538_s1 + $0x8] sm:$0xff]   ;;  %s7906_s29 = smov 64  }
  0x16   : > { %336 = vst.msk [vmem:[#allocation2 + $0xc8] sm:$0xff] %vm310_vm0, %v10545_v0  ;;  %337 = vst.msk [vmem:[#allocation2 + $0xd0] sm:$0xff] %vm310_vm0, %v10545_v0  ;;  %6629 = vmatprep.subr.bf16.mxu1 %v7703_v1  ;;  %6349 = vmatprep.subr.bf16.mxu0 %v7703_v1  ;;  %v7705_v3 = vld [vmem:[%s10539_s2 + $0x40] sm:$0xff]   ;;  %s7907_s8 = smov 32   ;;  %v7707_v50 = vld [vmem:[%s10539_s2 + $0x48] sm:$0xff]   ;;  %vm1941_vm1 = vcmask 523264  }
  0x17   : > { %338 = vst.msk [vmem:[#allocation2 + $0xd8] sm:$0xff] %vm310_vm0, %v10545_v0  ;;  %327 = vst.msk [vmem:[#allocation2 + $0x80] sm:$0xff] %vm310_vm0, %v10545_v0  ;;  %s273_s17 = scalar_select %p272_p10, %s7974_s28, 1  ;;  %6631 = vmatpush3.bf16.msra.mxu1 %v7703_v1  ;;  %6350 = vmatpush3.bf16.msra.mxu0 %v7703_v1  ;;  %v7706_v45 = vld [vmem:[%s10539_s2] sm:$0xff]   ;;  %vm1974_vm2 = vcmask 785408   ;;  %vm7909_vm3 = vmmov 0  }
  0x18   : > { %328 = vst.msk [vmem:[#allocation2 + $0x88] sm:$0xff] %vm310_vm0, %v10545_v0  ;;  %329 = vst.msk [vmem:[#allocation2 + $0x90] sm:$0xff] %vm310_vm0, %v10545_v0  ;;  %6630 = vmatprep.subr.bf16.mxu1 %v7704_v2  ;;  %6351 = vmatprep.subr.bf16.mxu0 %v7704_v2  ;;  %s5986_s15 = sshll.u32 %s7974_s28, 12  ;;  %s7910_s22 = smov [#allocation3]  }
  0x19   : > { %330 = vst.msk [vmem:[#allocation2 + $0x98] sm:$0xff] %vm310_vm0, %v10545_v0  ;;  %331 = vst.msk [vmem:[#allocation2 + $0xa0] sm:$0xff] %vm310_vm0, %v10545_v0  ;;  %s5985_s18 = sshll.u32 %s273_s17, 8  ;;  %s10487_s20 = scalar_lea.hbm %s10544_s7, %s5986_s15 }
  0x1a   : > { %332 = vst.msk [vmem:[#allocation2 + $0xa8] sm:$0xff] %vm310_vm0, %v10545_v0  ;;  %333 = vst.msk [vmem:[#allocation2 + $0xb0] sm:$0xff] %vm310_vm0, %v10545_v0  ;;  %s8207_s23 = scalar_lea.vmem %s10537_s0, %s5985_s18  ;;  %s7908_s18 = smov 96  }
  0x1b   : > { %334 = vst.msk [vmem:[#allocation2 + $0xb8] sm:$0xff] %vm310_vm0, %v10545_v0  ;;  %335 = vst.msk [vmem:[#allocation2 + $0xc0] sm:$0xff] %vm310_vm0, %v10545_v0  ;;  %v278_v4 = vld [vmem:[%s8207_s23] sm:$0xff]  ;;  %v279_v5 = vld [vmem:[%s8207_s23 + $0x8] sm:$0xff]  ;;  %6632 = vmatpush3.bf16.msra.mxu1 %v7704_v2  ;;  %6352 = vmatpush3.bf16.msra.mxu0 %v7704_v2  ;;  %s7845_s9 = sshll.u32 %s7910_s22, 4  ;;  %s7846_s9 = int_to_ptr.vmem [resolvable:$false] %s7845_s9 }
  0x1c   : > { %339 = vst.msk [vmem:[#allocation2 + $0xe0] sm:$0xff] %vm310_vm0, %v10545_v0  ;;  %340 = vst.msk [vmem:[#allocation2 + $0xe8] sm:$0xff] %vm310_vm0, %v10545_v0  ;;  %v282_v6 = vld [vmem:[%s8207_s23 + $0x20] sm:$0xff]  ;;  %v5317_v10 = vsel %vm310_vm0, %v278_v4, 0.0  ;;  %v5318_v11 = vsel %vm310_vm0, %v279_v5, 0.0  ;;  %v472_v12 = vpack.c.bf16 %v279_v5, %v278_v4  ;;  %6005 = vmatprep.subr.bf16.mxu1 %v7705_v3  ;;  %v283_v19 = vld [vmem:[%s8207_s23 + $0x28] sm:$0xff] }
  0x1d   : > { %341 = vst.msk [vmem:[#allocation2 + $0xf0] sm:$0xff] %vm310_vm0, %v10545_v0  ;;  %342 = vst.msk [vmem:[#allocation2 + $0xf8] sm:$0xff] %vm310_vm0, %v10545_v0  ;;  %v916_v7 = vld [vmem:[#allocation2 + $0xca] sm:$0xff]  ;;  %v5319_v17 = vadd.f32 %v5318_v11, %v5317_v10  ;;  %v281_v21 = vld [vmem:[%s8207_s23 + $0x18] sm:$0xff]  ;;  %v474_v31 = vpack.c.bf16 %v283_v19, %v282_v6  ;;  %v5324_v32 = vsel %vm310_vm0, %v282_v6, 0.0  ;;  %v5326_v42 = vsel %vm310_vm0, %v283_v19, 0.0 }
  0x1e   : > { %343 = vst.msk [vmem:[#allocation2 + $0x100] sm:$0xff] %vm310_vm0, %v10545_v0  ;;  %344 = vst.msk [vmem:[#allocation2 + $0x108] sm:$0xff] %vm310_vm0, %v10545_v0  ;;  %v917_v8 = vld [vmem:[#allocation2 + $0xd2] sm:$0xff]  ;;  %v884_v9 = vld [vmem:[#allocation2 + $0xc8] sm:$0xff]  ;;  %6353 = vmatprep.mubr.msk.bf16.mxu0 %vm310_vm0, %v472_v12  ;;  %v5322_v24 = vsel %vm310_vm0, %v281_v21, 0.0 }
  0x1f   : > { %345 = vst.msk [vmem:[#allocation2 + $0x110] sm:$0xff] %vm310_vm0, %v10545_v0  ;;  %346 = vst.msk [vmem:[#allocation2 + $0x118] sm:$0xff] %vm310_vm0, %v10545_v0  ;;  %v6748_v13 = vpack.i.bf16 %v917_v8, %v916_v7  ;;  %v885_v14 = vld [vmem:[#allocation2 + $0xd0] sm:$0xff]  ;;  %v285_v28 = vld [vmem:[%s8207_s23 + $0x38] sm:$0xff] }
  0x20   : > { %347 = vst.msk [vmem:[#allocation2 + $0x120] sm:$0xff] %vm310_vm0, %v10545_v0  ;;  %348 = vst.msk [vmem:[#allocation2 + $0x128] sm:$0xff] %vm310_vm0, %v10545_v0  ;;  %v6743_v18 = vpack.i.bf16 %v885_v14, %v884_v9  ;;  %v280_v20 = vld [vmem:[%s8207_s23 + $0x10] sm:$0xff]  ;;  %v8235_v29 = vld [vmem:[%s8207_s23 + $0x40] sm:$0xff]  ;;  %v5330_v1 = vsel %vm310_vm0, %v285_v28, 0.0 }
  0x21   : > { %349 = vst.msk [vmem:[#allocation2 + $0x130] sm:$0xff] %vm310_vm0, %v10545_v0  ;;  %350 = vst.msk [vmem:[#allocation2 + $0x138] sm:$0xff] %vm310_vm0, %v10545_v0  ;;  %6749 = vrot.lane.b32.xlu1 %v6748_v13, %s7906_s29  ;;  %v5320_v23 = vsel %vm310_vm0, %v280_v20, 0.0  ;;  %v8228_v25 = vld [vmem:[%s8207_s23 + $0x30] sm:$0xff]  ;;  %v473_v26 = vpack.c.bf16 %v281_v21, %v280_v20  ;;  %v8238_v30 = vld [vmem:[%s8207_s23 + $0x48] sm:$0xff] }
  0x22   : > { %351 = vst.msk [vmem:[#allocation2 + $0x140] sm:$0xff] %vm310_vm0, %v10545_v0  ;;  %352 = vst.msk [vmem:[#allocation2 + $0x148] sm:$0xff] %vm310_vm0, %v10545_v0  ;;  %6744 = vrot.lane.b32.xlu0 %v6743_v18, %s7907_s8  ;;  %v5321_v27 = vadd.f32 %v5320_v23, %v5319_v17  ;;  %v8247_v33 = vld [vmem:[%s8207_s23 + $0x50] sm:$0xff]  ;;  %v8250_v34 = vld [vmem:[%s8207_s23 + $0x58] sm:$0xff]  ;;  %v5328_v52 = vsel %vm310_vm0, %v8228_v25, 0.0  ;;  %v475_v54 = vpack.c.bf16 %v285_v28, %v8228_v25  ;;  %v5334_v12 = vsel %vm310_vm0, %v8238_v30, 0.0 }
  0x23   : > { %353 = vst.msk [vmem:[#allocation2 + $0x150] sm:$0xff] %vm310_vm0, %v10545_v0  ;;  %354 = vst.msk [vmem:[#allocation2 + $0x158] sm:$0xff] %vm310_vm0, %v10545_v0  ;;  %v886_v15 = vld [vmem:[#allocation2 + $0xe8] sm:$0xff]  ;;  %v8253_v35 = vld [vmem:[%s8207_s23 + $0x60] sm:$0xff]  ;;  %6354 = vmatmul.mubr.msk.bf16.vlgmr.msra.gmra.mrb[0].mxu0 %vm310_vm0, %v473_v26  ;;  %v476_v59 = vpack.c.bf16 %v8238_v30, %v8235_v29  ;;  %v5336_v17 = vsel %vm310_vm0, %v8247_v33, 0.0  ;;  %v477_v18 = vpack.c.bf16 %v8250_v34, %v8247_v33  ;;  %v5338_v26 = vsel %vm310_vm0, %v8250_v34, 0.0 }
  0x24   : > { %355 = vst.msk [vmem:[#allocation2 + $0x160] sm:$0xff] %vm310_vm0, %v10545_v0  ;;  %356 = vst.msk [vmem:[#allocation2 + $0x168] sm:$0xff] %vm310_vm0, %v10545_v0  ;;  %v887_v16 = vld [vmem:[#allocation2 + $0xf0] sm:$0xff]  ;;  %v5323_v36 = vadd.f32 %v5322_v24, %v5321_v27  ;;  %v8261_v37 = vld [vmem:[%s8207_s23 + $0x68] sm:$0xff]  ;;  %6357 = vmatprep.mubr.msk.bf16.mxu0 %vm310_vm0, %v474_v31 }
  0x25   : > { %357 = vst.msk [vmem:[#allocation2 + $0x170] sm:$0xff] %vm310_vm0, %v10545_v0  ;;  %358 = vst.msk [vmem:[#allocation2 + $0x178] sm:$0xff] %vm310_vm0, %v10545_v0  ;;  %v6753_v22 = vpack.i.bf16 %v887_v16, %v886_v15  ;;  %v8266_v38 = vld [vmem:[%s8207_s23 + $0x70] sm:$0xff]  ;;  %v8269_v39 = vld [vmem:[%s8207_s23 + $0x78] sm:$0xff]  ;;  %v478_v43 = vpack.c.bf16 %v8261_v37, %v8253_v35 }
  0x26   : > { %359 = vst.msk [vmem:[#allocation2 + $0x180] sm:$0xff] %vm310_vm0, %v10545_v0  ;;  %360 = vst.msk [vmem:[#allocation2 + $0x188] sm:$0xff] %vm310_vm0, %v10545_v0  ;;  %v479_v44 = vpack.c.bf16 %v8269_v39, %v8266_v38  ;;  %v5325_v49 = vadd.f32 %v5324_v32, %v5323_v36  ;;  %v8295_v53 = vld [vmem:[%s8207_s23 + $0x80] sm:$0xff]  ;;  %v7708_v2 = vld [vmem:[%s10539_s2 + $0x8] sm:$0xff]   ;;  %v5342_v36 = vsel %vm310_vm0, %v8261_v37, 0.0 }
  0x27   : > { %361 = vst.msk [vmem:[#allocation2 + $0x190] sm:$0xff] %vm310_vm0, %v10545_v0  ;;  %362 = vst.msk [vmem:[#allocation2 + $0x198] sm:$0xff] %vm310_vm0, %v10545_v0  ;;  %6754 = vrot.lane.b32.xlu1 %v6753_v22, %s7907_s8  ;;  %6365 = vmatprep.mubr.msk.bf16.mxu1 %vm310_vm0, %v478_v43  ;;  %v918_v7 = vld [vmem:[#allocation2 + $0xea] sm:$0xff]  ;;  %v919_v8 = vld [vmem:[#allocation2 + $0xf2] sm:$0xff] }
  0x28   : > { %363 = vst.msk [vmem:[#allocation2 + $0x1a0] sm:$0xff] %vm310_vm0, %v10545_v0  ;;  %364 = vst.msk [vmem:[#allocation2 + $0x1a8] sm:$0xff] %vm310_vm0, %v10545_v0  ;;  %v5327_v58 = vadd.f32 %v5326_v42, %v5325_v49  ;;  %6366 = vmatmul.mubr.msk.bf16.vlgmr.msra.gmra.mrb[0].mxu1 %vm310_vm0, %v479_v44  ;;  %v6788_v14 = vpack.i.bf16 %v919_v8, %v918_v7  ;;  %v5344_v49 = vsel %vm310_vm0, %v8266_v38, 0.0 }
  0x29   : > { %365 = vst.msk [vmem:[#allocation2 + $0x1b0] sm:$0xff] %vm310_vm0, %v10545_v0  ;;  %366 = vst.msk [vmem:[#allocation2 + $0x1b8] sm:$0xff] %vm310_vm0, %v10545_v0  ;;  %6006 = vmatpush3.bf16.msra.mxu1 %v7706_v45 }
  0x2a   : > { %367 = vst.msk [vmem:[#allocation2 + $0x1c0] sm:$0xff] %vm310_vm0, %v10545_v0  ;;  %368 = vst.msk [vmem:[#allocation2 + $0x1c8] sm:$0xff] %vm310_vm0, %v10545_v0  ;;  %v5329_v3 = vadd.f32 %v5328_v52, %v5327_v58  ;;  %6007 = vmatprep.subr.bf16.mxu1 %v7707_v50  ;;  %v8381_v52 = vld [vmem:[%s8207_s23 + $0xb8] sm:$0xff]  ;;  %v7710_v58 = vld [vmem:[%s10539_s2 + $0x10] sm:$0xff]  }
  0x2b   : > { %369 = vst.msk [vmem:[#allocation2 + $0x1d0] sm:$0xff] %vm310_vm0, %v10545_v0  ;;  %370 = vst.msk [vmem:[#allocation2 + $0x1d8] sm:$0xff] %vm310_vm0, %v10545_v0  ;;  %6358 = vmatmul.mubr.msk.bf16.gmra.mrb[4].mxu0 %vm310_vm0, %v475_v54 }
  0x2c   : > { %371 = vst.msk [vmem:[#allocation2 + $0x1e0] sm:$0xff] %vm310_vm0, %v10545_v0  ;;  %372 = vst.msk [vmem:[#allocation2 + $0x1e8] sm:$0xff] %vm310_vm0, %v10545_v0  ;;  %v5331_v9 = vadd.f32 %v5330_v1, %v5329_v3  ;;  %6361 = vmatprep.mubr.msk.bf16.mxu0 %vm310_vm0, %v476_v59  ;;  %v5348_v59 = vsel %vm310_vm0, %v8295_v53, 0.0 }
  0x2d   : > { %373 = vst.msk [vmem:[#allocation2 + $0x1f0] sm:$0xff] %vm310_vm0, %v10545_v0  ;;  %374 = vst.msk [vmem:[#allocation2 + $0x1f8] sm:$0xff] %vm310_vm0, %v10545_v0  ;;  %6008 = vmatpush3.bf16.msra.mxu1 %v7708_v2 }
  0x2e   : > { %375 = vst.msk [vmem:[#allocation2 + $0x200] sm:$0xff] %vm310_vm0, %v10545_v0  ;;  %376 = vst.msk [vmem:[#allocation2 + $0x208] sm:$0xff] %vm310_vm0, %v10545_v0 }
  0x2f   : > { %377 = vst.msk [vmem:[#allocation2 + $0x210] sm:$0xff] %vm310_vm0, %v10545_v0  ;;  %378 = vst.msk [vmem:[#allocation2 + $0x218] sm:$0xff] %vm310_vm0, %v10545_v0 }
  0x30   : > { %379 = vst.msk [vmem:[#allocation2 + $0x220] sm:$0xff] %vm310_vm0, %v10545_v0  ;;  %380 = vst.msk [vmem:[#allocation2 + $0x228] sm:$0xff] %vm310_vm0, %v10545_v0 }
  0x31   : > { %381 = vst.msk [vmem:[#allocation2 + $0x230] sm:$0xff] %vm310_vm0, %v10545_v0  ;;  %382 = vst.msk [vmem:[#allocation2 + $0x238] sm:$0xff] %vm310_vm0, %v10545_v0 }
  0x32   : > { %383 = vst.msk [vmem:[#allocation2 + $0x240] sm:$0xff] %vm310_vm0, %v10545_v0  ;;  %384 = vst.msk [vmem:[#allocation2 + $0x248] sm:$0xff] %vm310_vm0, %v10545_v0 }
  0x33   : > { %385 = vst.msk [vmem:[#allocation2 + $0x250] sm:$0xff] %vm310_vm0, %v10545_v0  ;;  %386 = vst.msk [vmem:[#allocation2 + $0x258] sm:$0xff] %vm310_vm0, %v10545_v0  ;;  %6362 = vmatmul.mubr.msk.bf16.gmra.mrb[8].mxu0 %vm310_vm0, %v477_v18 }
  0x34   : > { %387 = vst.msk [vmem:[#allocation2 + $0x260] sm:$0xff] %vm310_vm0, %v10545_v0  ;;  %388 = vst.msk [vmem:[#allocation2 + $0x268] sm:$0xff] %vm310_vm0, %v10545_v0 }
  0x35   : > { %389 = vst.msk [vmem:[#allocation2 + $0x270] sm:$0xff] %vm310_vm0, %v10545_v0  ;;  %390 = vst.msk [vmem:[#allocation2 + $0x278] sm:$0xff] %vm310_vm0, %v10545_v0 }
  0x36   : > { %391 = vst.msk [vmem:[#allocation2 + $0x280] sm:$0xff] %vm310_vm0, %v10545_v0  ;;  %392 = vst.msk [vmem:[#allocation2 + $0x288] sm:$0xff] %vm310_vm0, %v10545_v0 }
  0x37   : > { %393 = vst.msk [vmem:[#allocation2 + $0x290] sm:$0xff] %vm310_vm0, %v10545_v0  ;;  %394 = vst.msk [vmem:[#allocation2 + $0x298] sm:$0xff] %vm310_vm0, %v10545_v0 }
  0x38   : > { %395 = vst.msk [vmem:[#allocation2 + $0x2a0] sm:$0xff] %vm310_vm0, %v10545_v0  ;;  %396 = vst.msk [vmem:[#allocation2 + $0x2a8] sm:$0xff] %vm310_vm0, %v10545_v0 }
  0x39   : > { %397 = vst.msk [vmem:[#allocation2 + $0x2b0] sm:$0xff] %vm310_vm0, %v10545_v0  ;;  %398 = vst.msk [vmem:[#allocation2 + $0x2b8] sm:$0xff] %vm310_vm0, %v10545_v0 }
  0x3a   : > { %399 = vst.msk [vmem:[#allocation2 + $0x2c0] sm:$0xff] %vm310_vm0, %v10545_v0  ;;  %400 = vst.msk [vmem:[#allocation2 + $0x2c8] sm:$0xff] %vm310_vm0, %v10545_v0 }
  0x3b   : > { %401 = vst.msk [vmem:[#allocation2 + $0x2d0] sm:$0xff] %vm310_vm0, %v10545_v0  ;;  %402 = vst.msk [vmem:[#allocation2 + $0x2d8] sm:$0xff] %vm310_vm0, %v10545_v0 }
  0x3c   : > { %403 = vst.msk [vmem:[#allocation2 + $0x2e0] sm:$0xff] %vm310_vm0, %v10545_v0  ;;  %404 = vst.msk [vmem:[#allocation2 + $0x2e8] sm:$0xff] %vm310_vm0, %v10545_v0 }
  0x3d   : > { %405 = vst.msk [vmem:[#allocation2 + $0x2f0] sm:$0xff] %vm310_vm0, %v10545_v0  ;;  %406 = vst.msk [vmem:[#allocation2 + $0x2f8] sm:$0xff] %vm310_vm0, %v10545_v0 }
  0x3e   : > { %407 = vst.msk [vmem:[#allocation2 + $0x300] sm:$0xff] %vm310_vm0, %v10545_v0  ;;  %408 = vst.msk [vmem:[#allocation2 + $0x308] sm:$0xff] %vm310_vm0, %v10545_v0 }
  0x3f   : > { %409 = vst.msk [vmem:[#allocation2 + $0x310] sm:$0xff] %vm310_vm0, %v10545_v0  ;;  %410 = vst.msk [vmem:[#allocation2 + $0x318] sm:$0xff] %vm310_vm0, %v10545_v0 }
  0x40   : > { %411 = vst.msk [vmem:[#allocation2 + $0x320] sm:$0xff] %vm310_vm0, %v10545_v0  ;;  %412 = vst.msk [vmem:[#allocation2 + $0x328] sm:$0xff] %vm310_vm0, %v10545_v0 }
  0x41   : > { %413 = vst.msk [vmem:[#allocation2 + $0x330] sm:$0xff] %vm310_vm0, %v10545_v0  ;;  %414 = vst.msk [vmem:[#allocation2 + $0x338] sm:$0xff] %vm310_vm0, %v10545_v0 }
  0x42   : > { %415 = vst.msk [vmem:[#allocation2 + $0x340] sm:$0xff] %vm310_vm0, %v10545_v0  ;;  %416 = vst.msk [vmem:[#allocation2 + $0x348] sm:$0xff] %vm310_vm0, %v10545_v0 }
  0x43   : > { %417 = vst.msk [vmem:[#allocation2 + $0x350] sm:$0xff] %vm310_vm0, %v10545_v0  ;;  %418 = vst.msk [vmem:[#allocation2 + $0x358] sm:$0xff] %vm310_vm0, %v10545_v0 }
  0x44   : > { %419 = vst.msk [vmem:[#allocation2 + $0x360] sm:$0xff] %vm310_vm0, %v10545_v0  ;;  %420 = vst.msk [vmem:[#allocation2 + $0x368] sm:$0xff] %vm310_vm0, %v10545_v0 }
  0x45   : > { %421 = vst.msk [vmem:[#allocation2 + $0x370] sm:$0xff] %vm310_vm0, %v10545_v0  ;;  %422 = vst.msk [vmem:[#allocation2 + $0x378] sm:$0xff] %vm310_vm0, %v10545_v0 }
  0x46   : > { %440 = vst.msk [vmem:[#allocation2 + $0x108] sm:$0xff] %vm310_vm0, %v278_v4  ;;  %441 = vst.msk [vmem:[#allocation2 + $0x110] sm:$0xff] %vm310_vm0, %v279_v5  ;;  %v5332_v5 = vsel %vm310_vm0, %v8235_v29, 0.0 }
  0x47   : > { %444 = vst.msk [vmem:[#allocation2 + $0x148] sm:$0xff] %vm310_vm0, %v282_v6  ;;  %445 = vst.msk [vmem:[#allocation2 + $0x150] sm:$0xff] %vm310_vm0, %v283_v19  ;;  %v5333_v13 = vadd.f32 %v5332_v5, %v5331_v9  ;;  %v302_v5 = vld [vmem:[%s8207_s23 + $0xc0] sm:$0xff] }
  0x48   : > { %442 = vst.msk [vmem:[#allocation2 + $0x128] sm:$0xff] %vm310_vm0, %v280_v20  ;;  %443 = vst.msk [vmem:[#allocation2 + $0x130] sm:$0xff] %vm310_vm0, %v281_v21 }
  0x49   : > { %446 = vst.msk [vmem:[#allocation2 + $0x168] sm:$0xff] %vm310_vm0, %v8228_v25  ;;  %447 = vst.msk [vmem:[#allocation2 + $0x170] sm:$0xff] %vm310_vm0, %v285_v28  ;;  %v5335_v22 = vadd.f32 %v5334_v12, %v5333_v13 }
  0x4a   : > { %448 = vst.msk [vmem:[#allocation2 + $0x188] sm:$0xff] %vm310_vm0, %v8235_v29  ;;  %449 = vst.msk [vmem:[#allocation2 + $0x190] sm:$0xff] %vm310_vm0, %v8238_v30  ;;  %v5340_v29 = vsel %vm310_vm0, %v8253_v35, 0.0 }
  0x4b   : > { %450 = vst.msk [vmem:[#allocation2 + $0x1a8] sm:$0xff] %vm310_vm0, %v8247_v33  ;;  %451 = vst.msk [vmem:[#allocation2 + $0x1b0] sm:$0xff] %vm310_vm0, %v8250_v34  ;;  %v5337_v27 = vadd.f32 %v5336_v17, %v5335_v22  ;;  %v295_v33 = vld [vmem:[%s8207_s23 + $0x88] sm:$0xff]  ;;  %v304_v22 = vld [vmem:[%s8207_s23 + $0xd0] sm:$0xff] }
  0x4c   : > { %452 = vst.msk [vmem:[#allocation2 + $0x1c8] sm:$0xff] %vm310_vm0, %v8253_v35  ;;  %453 = vst.msk [vmem:[#allocation2 + $0x1d0] sm:$0xff] %vm310_vm0, %v8261_v37  ;;  %v480_v35 = vpack.c.bf16 %v295_v33, %v8295_v53  ;;  %v8368_v37 = vld [vmem:[%s8207_s23 + $0xb0] sm:$0xff] }
  0x4d   : > { %v1012_v40 = vld [vmem:[#allocation2 + $0x10a] sm:$0xff]  ;;  %v1013_v41 = vld [vmem:[#allocation2 + $0x112] sm:$0xff]  ;;  %454 = vst.msk [vmem:[#allocation2 + $0x1e8] sm:$0xff] %vm310_vm0, %v8266_v38  ;;  %455 = vst.msk [vmem:[#allocation2 + $0x1f0] sm:$0xff] %vm310_vm0, %v8269_v39  ;;  %v5339_v34 = vadd.f32 %v5338_v26, %v5337_v27  ;;  %v483_v3 = vpack.c.bf16 %v8381_v52, %v8368_v37 }
  0x4e   : > { %v8287_v46 = vpack.i.bf16 %v1013_v41, %v1012_v40  ;;  %v1045_v47 = vld [vmem:[#allocation2 + $0x146] sm:$0xff]  ;;  %v1046_v55 = vld [vmem:[#allocation2 + $0x14e] sm:$0xff]  ;;  %456 = vst.msk [vmem:[#allocation2 + $0x208] sm:$0xff] %vm310_vm0, %v8295_v53  ;;  %457 = vst.msk [vmem:[#allocation2 + $0x210] sm:$0xff] %vm310_vm0, %v295_v33  ;;  %6369 = vmatprep.mubr.msk.bf16.mxu1 %vm310_vm0, %v480_v35 }
  0x4f   : > { %v1077_v48 = vld [vmem:[#allocation2 + $0x148] sm:$0xff]  ;;  %v1078_v56 = vld [vmem:[#allocation2 + $0x150] sm:$0xff]  ;;  %v8306_v60 = vpack.i.bf16 %v1046_v55, %v1045_v47  ;;  %v297_v41 = vld [vmem:[%s8207_s23 + $0x98] sm:$0xff]  ;;  %v5341_v42 = vadd.f32 %v5340_v29, %v5339_v34  ;;  %462 = vst.msk [vmem:[#allocation2 + $0x268] sm:$0xff] %vm310_vm0, %v8368_v37  ;;  %v5360_v34 = vsel %vm310_vm0, %v8368_v37, 0.0 }
  0x50   : > { %v948_v51 = vld [vmem:[#allocation2 + $0x106] sm:$0xff]  ;;  %6759 = vrot.lane.b32.xlu0 %v8287_v46, %s7907_s8  ;;  %v949_v57 = vld [vmem:[#allocation2 + $0x10e] sm:$0xff]  ;;  %v8308_v61 = vpack.i.bf16 %v1078_v56, %v1077_v48  ;;  %459 = vst.msk [vmem:[#allocation2 + $0x230] sm:$0xff] %vm310_vm0, %v297_v41  ;;  %463 = vst.msk [vmem:[#allocation2 + $0x270] sm:$0xff] %vm310_vm0, %v8381_v52  ;;  %v5346_v56 = vsel %vm310_vm0, %v8269_v39, 0.0 }
  0x51   : > { %v1014_v62 = vld [vmem:[#allocation2 + $0x12a] sm:$0xff]  ;;  %v1015_v63 = vld [vmem:[#allocation2 + $0x132] sm:$0xff]  ;;  %6764 = vrot.lane.b32.xlu1 %v8306_v60, %s7906_s29  ;;  %v6773_v4 = vpack.i.bf16 %v949_v57, %v948_v51  ;;  %v298_v47 = vld [vmem:[%s8207_s23 + $0xa0] sm:$0xff]  ;;  %v5343_v54 = vadd.f32 %v5342_v36, %v5341_v42  ;;  %464 = vst.msk [vmem:[#allocation2 + $0x288] sm:$0xff] %vm310_vm0, %v302_v5 }
  0x52   : > { %v8321_v6 = vpack.i.bf16 %v1015_v63, %v1014_v62  ;;  %v1047_v10 = vld [vmem:[#allocation2 + $0x166] sm:$0xff]  ;;  %v1048_v11 = vld [vmem:[#allocation2 + $0x16e] sm:$0xff]  ;;  %460 = vst.msk [vmem:[#allocation2 + $0x248] sm:$0xff] %vm310_vm0, %v298_v47  ;;  %v7711_v62 = vld [vmem:[%s10539_s2 + $0x58] sm:$0xff]  }
  0x53   : > { %v1016_v15 = vld [vmem:[#allocation2 + $0x14a] sm:$0xff]  ;;  %v1017_v16 = vld [vmem:[#allocation2 + $0x152] sm:$0xff]  ;;  %v8333_v19 = vpack.i.bf16 %v1048_v11, %v1047_v10  ;;  %v5345_v57 = vadd.f32 %v5344_v49, %v5343_v54  ;;  %466 = vst.msk [vmem:[#allocation2 + $0x2a8] sm:$0xff] %vm310_vm0, %v304_v22  ;;  %v7714_v26 = vld [vmem:[%s10539_s2 + $0x20] sm:$0xff]  }
  0x54   : > { %6769 = vrot.lane.b32.xlu0 %v8308_v61, %s7908_s18  ;;  %v950_v20 = vld [vmem:[#allocation2 + $0x126] sm:$0xff]  ;;  %v951_v21 = vld [vmem:[#allocation2 + $0x12e] sm:$0xff]  ;;  %v2105_v23 = vpack.c.bf16 %v1017_v16, %v1016_v15  ;;  %v8374_v50 = vpack.i.bf16 %v1017_v16, %v1016_v15  ;;  %v7712_v53 = vld [vmem:[%s10539_s2 + $0x18] sm:$0xff]  }
  0x55   : > { %6774 = vrot.lane.b32.xlu1 %v6773_v4, %s7908_s18  ;;  %v1079_v24 = vld [vmem:[#allocation2 + $0x168] sm:$0xff]  ;;  %v1080_v25 = vld [vmem:[#allocation2 + $0x170] sm:$0xff]  ;;  %v6798_v28 = vpack.i.bf16 %v951_v21, %v950_v20  ;;  %v5347_v1 = vadd.f32 %v5346_v56, %v5345_v57  ;;  %v5350_v4 = vsel %vm310_vm0, %v295_v33, 0.0  ;;  %v5356_v20 = vsel %vm310_vm0, %v298_v47, 0.0  ;;  %v309_v49 = vld [vmem:[%s8207_s23 + $0xf8] sm:$0xff] }
  0x56   : > { %v8343_v30 = vpack.i.bf16 %v1080_v25, %v1079_v24  ;;  %v8345_v31 = vld [vmem:[#allocation2 + $0x108] sm:$0xff]  ;;  %v8347_v32 = vld [vmem:[#allocation2 + $0x110] sm:$0xff]  ;;  %6389 = vmatprep.mubr.msk.bf16.mxu0 %vm310_vm0, %v2105_v23  ;;  %v8441_v23 = vld [vmem:[%s8207_s23 + $0xd8] sm:$0xff]  ;;  %471 = vst.msk [vmem:[#allocation2 + $0x2f0] sm:$0xff] %vm310_vm0, %v309_v49 }
  0x57   : > { %v296_v40 = vld [vmem:[%s8207_s23 + $0x90] sm:$0xff]  ;;  %v6808_v43 = vpack.i.bf16 %v8347_v32, %v8345_v31  ;;  %v1049_v44 = vld [vmem:[#allocation2 + $0x186] sm:$0xff]  ;;  %v5349_v7 = vadd.f32 %v5348_v59, %v5347_v1  ;;  %467 = vst.msk [vmem:[#allocation2 + $0x2b0] sm:$0xff] %vm310_vm0, %v8441_v23  ;;  %v485_v29 = vpack.c.bf16 %v8441_v23, %v304_v22 }
  0x58   : > { %6779 = vrot.lane.b32.xlu0 %v8321_v6, %s7907_s8  ;;  %458 = vst.msk [vmem:[#allocation2 + $0x228] sm:$0xff] %vm310_vm0, %v296_v40  ;;  %v481_v45 = vpack.c.bf16 %v297_v41, %v296_v40  ;;  %v8365_v48 = vld [vmem:[%s8207_s23 + $0xa8] sm:$0xff]  ;;  %v7709_v38 = vld [vmem:[%s10539_s2 + $0x50] sm:$0xff]   ;;  %v5352_v8 = vsel %vm310_vm0, %v296_v40, 0.0  ;;  %v7713_v25 = vld [vmem:[%s10539_s2 + $0x60] sm:$0xff]  }
  0x59   : > { %6789 = vrot.lane.b32.xlu1 %v6788_v14, %s7906_s29  ;;  %461 = vst.msk [vmem:[#allocation2 + $0x250] sm:$0xff] %vm310_vm0, %v8365_v48  ;;  %v482_v51 = vpack.c.bf16 %v8365_v48, %v298_v47  ;;  %v1050_v55 = vld [vmem:[#allocation2 + $0x18e] sm:$0xff]  ;;  %6009 = vmatprep.subr.bf16.mxu1 %v7709_v38  ;;  %v5351_v12 = vadd.f32 %v5350_v4, %v5349_v7  ;;  %v1051_v18 = vld [vmem:[#allocation2 + $0x1a6] sm:$0xff]  ;;  %v5364_v38 = vsel %vm310_vm0, %v302_v5, 0.0  ;;  %v7720_v4 = vld [vmem:[%s10539_s2 + $0x78] sm:$0xff]   ;;  %v5370_v7 = vsel %vm310_vm0, %v8441_v23, 0.0 }
  0x5a   : > { %6370 = vmatmul.mubr.msk.bf16.gmra.mrb[4].mxu1 %vm310_vm0, %v481_v45  ;;  %v8405_v39 = vpack.i.bf16 %v1050_v55, %v1049_v44  ;;  %v1081_v63 = vld [vmem:[#allocation2 + $0x188] sm:$0xff]  ;;  %v1082_v2 = vld [vmem:[#allocation2 + $0x190] sm:$0xff]  ;;  %v5362_v44 = vsel %vm310_vm0, %v8381_v52, 0.0  ;;  %v306_v45 = vld [vmem:[%s8207_s23 + $0xe0] sm:$0xff] }
  0x5b   : > { %6373 = vmatprep.mubr.msk.bf16.mxu1 %vm310_vm0, %v482_v51  ;;  %6010 = vmatpush3.bf16.msra.mxu1 %v7710_v58  ;;  %v8420_v9 = vpack.i.bf16 %v1082_v2, %v1081_v63  ;;  %v8422_v10 = vld [vmem:[#allocation2 + $0x128] sm:$0xff]  ;;  %v8424_v11 = vld [vmem:[#allocation2 + $0x130] sm:$0xff]  ;;  %v5353_v15 = vadd.f32 %v5352_v8, %v5351_v12  ;;  %468 = vst.msk [vmem:[#allocation2 + $0x2c8] sm:$0xff] %vm310_vm0, %v306_v45  ;;  %v7719_v63 = vld [vmem:[%s10539_s2 + $0x80] sm:$0xff]  }
  0x5c   : > { %6784 = vrot.lane.b32.xlu0 %v8333_v19, %s7906_s29  ;;  %6011 = vmatprep.subr.bf16.mxu1 %v7711_v62  ;;  %v8426_v13 = vld [vmem:[#allocation2 + $0x16a] sm:$0xff]  ;;  %v8428_v14 = vld [vmem:[#allocation2 + $0x172] sm:$0xff]  ;;  %v6838_v17 = vpack.i.bf16 %v8424_v11, %v8422_v10 }
  0x5d   : > { %6799 = vrot.lane.b32.xlu1 %v6798_v28, %s7908_s18  ;;  %v303_v16 = vld [vmem:[%s8207_s23 + $0xc8] sm:$0xff]  ;;  %v8447_v24 = vpack.i.bf16 %v8428_v14, %v8426_v13  ;;  %v5358_v28 = vsel %vm310_vm0, %v8365_v48, 0.0  ;;  %v308_v37 = vld [vmem:[%s8207_s23 + $0xf0] sm:$0xff]  ;;  %6385 = vmatprep.subr.bf16.mxu0 %v7719_v63 }
  0x5e   : > { %465 = vst.msk [vmem:[#allocation2 + $0x290] sm:$0xff] %vm310_vm0, %v303_v16  ;;  %v484_v21 = vpack.c.bf16 %v303_v16, %v302_v5  ;;  %v1052_v27 = vld [vmem:[#allocation2 + $0x1ae] sm:$0xff]  ;;  %470 = vst.msk [vmem:[#allocation2 + $0x2e8] sm:$0xff] %vm310_vm0, %v308_v37  ;;  %v5366_v57 = vsel %vm310_vm0, %v303_v16, 0.0  ;;  %v487_v58 = vpack.c.bf16 %v309_v49, %v308_v37  ;;  %v1053_v1 = vld [vmem:[#allocation2 + $0x1c6] sm:$0xff]  ;;  %6386 = vmatpush3.bf16.msra.mxu0 %v7719_v63 }
  0x5f   : > { %6012 = vmatpush3.bf16.msra.mxu1 %v7712_v53  ;;  %v7715_v35 = vld [vmem:[%s10539_s2 + $0x68] sm:$0xff]   ;;  %v8470_v36 = vpack.i.bf16 %v1052_v27, %v1051_v18  ;;  %v1021_v54 = vld [vmem:[#allocation2 + $0x192] sm:$0xff] }
  0x60   : > { %6794 = vrot.lane.b32.xlu0 %v8343_v30, %s7908_s18  ;;  %6013 = vmatprep.subr.bf16.mxu1 %v7713_v25  ;;  %v1083_v42 = vld [vmem:[#allocation2 + $0x1a8] sm:$0xff]  ;;  %v7718_v59 = vld [vmem:[%s10539_s2 + $0x30] sm:$0xff]  }
  0x61   : > { %6809 = vrot.lane.b32.xlu1 %v6808_v43, %s7907_s8  ;;  %v1084_v43 = vld [vmem:[#allocation2 + $0x1b0] sm:$0xff]  ;;  %v307_v48 = vld [vmem:[%s8207_s23 + $0xe8] sm:$0xff] }
  0x62   : > { %6374 = vmatmul.mubr.msk.bf16.gmra.mrb[8].mxu1 %vm310_vm0, %v483_v3  ;;  %v1020_v51 = vld [vmem:[#allocation2 + $0x18a] sm:$0xff]  ;;  %469 = vst.msk [vmem:[#allocation2 + $0x2d0] sm:$0xff] %vm310_vm0, %v307_v48  ;;  %v486_v52 = vpack.c.bf16 %v307_v48, %v306_v45  ;;  %v8491_v55 = vpack.i.bf16 %v1084_v43, %v1083_v42  ;;  %v5368_v3 = vsel %vm310_vm0, %v304_v22, 0.0  ;;  %v1114_v27 = vld [vmem:[#allocation2 + $0x192] sm:$0xff] }
  0x63   : > { %6377 = vmatprep.mubr.msk.bf16.mxu1 %vm310_vm0, %v484_v21  ;;  %6014 = vmatpush3.bf16.msra.mxu1 %v7714_v26  ;;  %v1054_v2 = vld [vmem:[#allocation2 + $0x1ce] sm:$0xff]  ;;  %v8512_v53 = vpack.i.bf16 %v1021_v54, %v1020_v51  ;;  %v5374_v21 = vsel %vm310_vm0, %v307_v48, 0.0 }
  0x64   : > { %6804 = vrot.lane.b32.xlu0 %v8374_v50, %s7907_s8  ;;  %6015 = vmatprep.subr.bf16.mxu1 %v7715_v35  ;;  %v7722_v8 = vld [vmem:[%s10539_s2 + $0x88] sm:$0xff]  }
  0x65   : > { %6819 = vrot.lane.b32.xlu1 %v8287_v46, %s7906_s29  ;;  %v5354_v46 = vsel %vm310_vm0, %v297_v41, 0.0  ;;  %v7716_v41 = vld [vmem:[%s10539_s2 + $0x28] sm:$0xff]   ;;  %6387 = vmatprep.subr.bf16.mxu0 %v7722_v8 }
  0x66   : > { %v1085_v18 = vld [vmem:[#allocation2 + $0x1c8] sm:$0xff]  ;;  %6388 = vmatpush3.bf16.msra.mxu0 %v7722_v8 }
  0x67   : > { %6016 = vmatpush3.bf16.msra.mxu1 %v7716_v41  ;;  %v1113_v26 = vld [vmem:[#allocation2 + $0x18a] sm:$0xff] }
  0x68   : > { %6814 = vrot.lane.b32.xlu0 %v8405_v39, %s7906_s29  ;;  %v1055_v41 = vld [vmem:[#allocation2 + $0x1e6] sm:$0xff]  ;;  %v1056_v42 = vld [vmem:[#allocation2 + $0x1ee] sm:$0xff] }
  0x69   : > { %6829 = vrot.lane.b32.xlu1 %v8306_v60, %s7908_s18  ;;  %v5355_v60 = vadd.f32 %v5354_v46, %v5353_v15  ;;  %v5372_v46 = vsel %vm310_vm0, %v306_v45, 0.0  ;;  %v8528_v15 = vpack.i.bf16 %v1054_v2, %v1053_v1  ;;  %v6903_v43 = vpack.i.bf16 %v1056_v42, %v1055_v41  ;;  %v1117_v45 = vld [vmem:[#allocation2 + $0x1ca] sm:$0xff] }
  0x6a   : > { %6378 = vmatmul.mubr.msk.bf16.gmra.mrb[12].mxu1 %vm310_vm0, %v485_v29  ;;  %v2111_v29 = vpack.c.bf16 %v1114_v27, %v1113_v26  ;;  %v1024_v54 = vld [vmem:[#allocation2 + $0x1ca] sm:$0xff]  ;;  %v1031_v27 = vld [vmem:[#allocation2 + $0x232] sm:$0xff] }
  0x6b   : > { %v5357_v33 = vadd.f32 %v5356_v20, %v5355_v60  ;;  %6381 = vmatprep.mubr.msk.bf16.mxu1 %vm310_vm0, %v486_v52  ;;  %v1086_v20 = vld [vmem:[#allocation2 + $0x1d0] sm:$0xff]  ;;  %v1057_v52 = vld [vmem:[#allocation2 + $0x206] sm:$0xff] }
  0x6c   : > { %6824 = vrot.lane.b32.xlu0 %v8420_v9, %s7908_s18  ;;  %v8538_v23 = vpack.i.bf16 %v1086_v20, %v1085_v18  ;;  %v1022_v60 = vld [vmem:[#allocation2 + $0x1aa] sm:$0xff] }
  0x6d   : > { %6839 = vrot.lane.b32.xlu1 %v6838_v17, %s7907_s8  ;;  %v5359_v40 = vadd.f32 %v5358_v28, %v5357_v33  ;;  %v2108_v17 = vpack.c.bf16 %v8428_v14, %v8426_v13  ;;  %v1023_v13 = vld [vmem:[#allocation2 + $0x1b2] sm:$0xff]  ;;  %v5378_v14 = vsel %vm310_vm0, %v309_v49, 0.0  ;;  %v1115_v33 = vld [vmem:[#allocation2 + $0x1aa] sm:$0xff] }
  0x6e   : > { %v1120_v49 = vld [vmem:[#allocation2 + $0x1f2] sm:$0xff]  ;;  %v1123_v63 = vld [vmem:[#allocation2 + $0x22a] sm:$0xff] }
  0x6f   : > { %v5361_v47 = vadd.f32 %v5360_v34, %v5359_v40  ;;  %6390 = vmatmul.mubr.msk.bf16.vlgmr.msra.gmra.mrb[12].mxu0 %vm310_vm0, %v2108_v17  ;;  %v6893_v34 = vpack.i.bf16 %v1023_v13, %v1022_v60  ;;  %v1091_v8 = vld [vmem:[#allocation2 + $0x228] sm:$0xff]  ;;  %v8598_v60 = vld [vmem:[#allocation2 + $0x272] sm:$0xff] }
  0x70   : > { %6834 = vrot.lane.b32.xlu0 %v8447_v24, %s7907_s8  ;;  %6393 = vmatprep.mubr.msk.bf16.mxu0 %vm310_vm0, %v2111_v29  ;;  %v1061_v17 = vld [vmem:[#allocation2 + $0x246] sm:$0xff]  ;;  %v1062_v18 = vld [vmem:[#allocation2 + $0x24e] sm:$0xff] }
  0x71   : > { %6849 = vrot.lane.b32.xlu1 %v8321_v6, %s7906_s29  ;;  %v5363_v56 = vadd.f32 %v5362_v44, %v5361_v47  ;;  %v7717_v6 = vld [vmem:[%s10539_s2 + $0x70] sm:$0xff]   ;;  %v1087_v44 = vld [vmem:[#allocation2 + $0x1e8] sm:$0xff] }
  0x72   : > { %6017 = vmatprep.subr.bf16.mxu1 %v7717_v6  ;;  %6382 = vmatmul.mubr.msk.bf16.gmra.mrb[16].mxu1 %vm310_vm0, %v487_v58  ;;  %v1118_v47 = vld [vmem:[#allocation2 + $0x1d2] sm:$0xff]  ;;  %v1093_v20 = vld [vmem:[#allocation2 + $0x248] sm:$0xff] }
  0x73   : > { %v5365_v62 = vadd.f32 %v5364_v38, %v5363_v56  ;;  %6018 = vmatpush3.bf16.msra.mxu1 %v7718_v59  ;;  %v2117_v48 = vpack.c.bf16 %v1118_v47, %v1117_v45  ;;  %v1025_v38 = vld [vmem:[#allocation2 + $0x1d2] sm:$0xff]  ;;  %v1121_v59 = vld [vmem:[#allocation2 + $0x20a] sm:$0xff] }
  0x74   : > { %6844 = vrot.lane.b32.xlu0 %v8470_v36, %s7906_s29  ;;  %6019 = vmatprep.subr.bf16.mxu1 %v7720_v4  ;;  %v1058_v56 = vld [vmem:[#allocation2 + $0x20e] sm:$0xff]  ;;  %v6923_v6 = vpack.i.bf16 %v1025_v38, %v1024_v54  ;;  %v1063_v29 = vld [vmem:[#allocation2 + $0x266] sm:$0xff] }
  0x75   : > { %6859 = vrot.lane.b32.xlu1 %v8333_v19, %s7908_s18  ;;  %v5367_v5 = vadd.f32 %v5366_v57, %v5365_v62  ;;  %v7721_v19 = vld [vmem:[%s10539_s2 + $0x38] sm:$0xff]   ;;  %v1089_v57 = vld [vmem:[#allocation2 + $0x208] sm:$0xff]  ;;  %v1090_v58 = vld [vmem:[#allocation2 + $0x210] sm:$0xff] }
  0x76   : > { %v1122_v62 = vld [vmem:[#allocation2 + $0x212] sm:$0xff] }
  0x77   : > { %v5369_v12 = vadd.f32 %v5368_v3, %v5367_v5  ;;  %6020 = vmatpush3.bf16.msra.mxu1 %v7721_v19  ;;  %v2123_v1 = vpack.c.bf16 %v1122_v62, %v1121_v59  ;;  %v1026_v3 = vld [vmem:[#allocation2 + $0x1ea] sm:$0xff]  ;;  %v1027_v4 = vld [vmem:[#allocation2 + $0x1f2] sm:$0xff]  ;;  %v8570_v5 = vpack.i.bf16 %v1090_v58, %v1089_v57 }
  0x78   : > { %6854 = vrot.lane.b32.xlu0 %v8491_v55, %s7908_s18  ;;  %v1060_v19 = vld [vmem:[#allocation2 + $0x22e] sm:$0xff] }
  0x79   : > { %6869 = vrot.lane.b32.xlu1 %v8308_v61, %s7907_s8  ;;  %v5371_v16 = vadd.f32 %v5370_v7, %v5369_v12  ;;  %v5376_v61 = vsel %vm310_vm0, %v308_v37, 0.0  ;;  %v1119_v37 = vld [vmem:[#allocation2 + $0x1ea] sm:$0xff]  ;;  %v6953_v7 = vpack.i.bf16 %v1027_v4, %v1026_v3  ;;  %v1126_v13 = vld [vmem:[#allocation2 + $0x252] sm:$0xff] }
  0x7a   : > { %v1092_v12 = vld [vmem:[#allocation2 + $0x230] sm:$0xff] }
  0x7b   : > { %v5373_v22 = vadd.f32 %v5372_v46, %v5371_v16  ;;  %v1028_v46 = vld [vmem:[#allocation2 + $0x20a] sm:$0xff]  ;;  %v1029_v16 = vld [vmem:[#allocation2 + $0x212] sm:$0xff] }
  0x7c   : > { %6864 = vrot.lane.b32.xlu0 %v8512_v53, %s7907_s8  ;;  %v1096_v41 = vld [vmem:[#allocation2 + $0x270] sm:$0xff] }
  0x7d   : > { %6879 = vrot.lane.b32.xlu1 %v8374_v50, %s7906_s29  ;;  %v5375_v25 = vadd.f32 %v5374_v21, %v5373_v22  ;;  %v1116_v50 = vld [vmem:[#allocation2 + $0x1b2] sm:$0xff]  ;;  %v8594_v22 = vpack.i.bf16 %v1062_v18, %v1061_v17  ;;  %v8638_v58 = vld [vmem:[#allocation2 + $0x28a] sm:$0xff] }
  0x7e   : > { %v2114_v40 = vpack.c.bf16 %v1116_v50, %v1115_v33  ;;  %v1094_v21 = vld [vmem:[#allocation2 + $0x250] sm:$0xff] }
  0x7f   : > { %v5377_v28 = vadd.f32 %v5376_v61, %v5375_v25  ;;  %v8596_v61 = vld [vmem:[#allocation2 + $0x26a] sm:$0xff]  ;;  %v1033_v45 = vld [vmem:[#allocation2 + $0x252] sm:$0xff] }
  0x80   : > { %6874 = vrot.lane.b32.xlu0 %v8528_v15, %s7906_s29  ;;  %6394 = vmatmul.mubr.msk.bf16.gmra.mrb[16].mxu0 %vm310_vm0, %v2114_v40  ;;  %v1125_v25 = vld [vmem:[#allocation2 + $0x24a] sm:$0xff]  ;;  %v2132_v26 = vpack.c.bf16 %v8598_v60, %v8596_v61  ;;  %v8640_v59 = vld [vmem:[#allocation2 + $0x292] sm:$0xff] }
  0x81   : > { %6889 = vrot.lane.b32.xlu1 %v8405_v39, %s7908_s18  ;;  %v8546_v35 = vadd.f32 %v5378_v14, %v5377_v28  ;;  %v1088_v39 = vld [vmem:[#allocation2 + $0x1f0] sm:$0xff]  ;;  %6397 = vmatprep.mubr.msk.bf16.mxu0 %vm310_vm0, %v2117_v48  ;;  %v2129_v14 = vpack.c.bf16 %v1126_v13, %v1125_v25  ;;  %v8605_v28 = vpack.i.bf16 %v1094_v21, %v1093_v20  ;;  %v1095_v40 = vld [vmem:[#allocation2 + $0x268] sm:$0xff] }
  0x82   : > { %v8556_v51 = vpack.i.bf16 %v1088_v39, %v1087_v44  ;;  %v1064_v33 = vld [vmem:[#allocation2 + $0x26e] sm:$0xff]  ;;  %v8623_v44 = vpack.i.bf16 %v1096_v41, %v1095_v40  ;;  %v8678_v40 = vpack.i.bf16 %v8598_v60, %v8596_v61  ;;  %v854_v41 = vld [vmem:[#allocation2 + $0xe6] sm:$0xff] }
  0x83   : > { %10553 = vst [vmem:[#allocation6_spill] sm:$0xff] %v8546_v35  ;;  %v1032_v39 = vld [vmem:[#allocation2 + $0x24a] sm:$0xff]  ;;  %v8650_v4 = vld [vmem:[#allocation2 + $0x2b2] sm:$0xff] }
  0x84   : > { %6884 = vrot.lane.b32.xlu0 %v8538_v23, %s7908_s18  ;;  %v8630_v48 = vpack.i.bf16 %v1033_v45, %v1032_v39  ;;  %v1098_v54 = vld [vmem:[#allocation2 + $0x290] sm:$0xff] }
  0x85   : > { %6899 = vrot.lane.b32.xlu1 %v8343_v30, %s7907_s8  ;;  %v2120_v30 = vpack.c.bf16 %v1120_v49, %v1119_v37  ;;  %v1065_v37 = vld [vmem:[#allocation2 + $0x286] sm:$0xff]  ;;  %v1066_v49 = vld [vmem:[#allocation2 + $0x28e] sm:$0xff] }
  0x86   : > { %v8636_v57 = vpack.i.bf16 %v1066_v49, %v1065_v37  ;;  %v853_v62 = vld [vmem:[#allocation2 + $0xce] sm:$0xff] }
  0x87   : > { %v8648_v3 = vld [vmem:[#allocation2 + $0x2aa] sm:$0xff] }
  0x88   : > { %6894 = vrot.lane.b32.xlu0 %v6893_v34, %s7907_s8  ;;  %6398 = vmatmul.mubr.msk.bf16.gmra.mrb[20].mxu0 %vm310_vm0, %v2120_v30  ;;  %v1097_v30 = vld [vmem:[#allocation2 + $0x288] sm:$0xff] }
  0x89   : > { %6909 = vrot.lane.b32.xlu1 %v8447_v24, %s7906_s29  ;;  %v6933_v24 = vpack.i.bf16 %v1058_v56, %v1057_v52  ;;  %6401 = vmatprep.mubr.msk.bf16.mxu0 %vm310_vm0, %v2123_v1  ;;  %v1068_v37 = vld [vmem:[#allocation2 + $0x2ae] sm:$0xff] }
  0x8a   : > { %v855_v49 = vld [vmem:[#allocation2 + $0xee] sm:$0xff] }
  0x8c   : > { %6904 = vrot.lane.b32.xlu0 %v6903_v43, %s7906_s29 }
  0x8d   : > { %6919 = vrot.lane.b32.xlu1 %v8470_v36, %s7908_s18  ;;  %v1124_v36 = vld [vmem:[#allocation2 + $0x232] sm:$0xff] }
  0x8e   : > { %v2126_v2 = vpack.c.bf16 %v1124_v36, %v1123_v63 }
  0x90   : > { %6914 = vrot.lane.b32.xlu0 %v8556_v51, %s7908_s18  ;;  %6402 = vmatmul.mubr.msk.bf16.gmra.mrb[24].mxu0 %vm310_vm0, %v2126_v2  ;;  %v8646_v2 = vpack.i.bf16 %v1098_v54, %v1097_v30 }
  0x91   : > { %6929 = vrot.lane.b32.xlu1 %v8420_v9, %s7907_s8  ;;  %v1059_v9 = vld [vmem:[#allocation2 + $0x226] sm:$0xff]  ;;  %6405 = vmatprep.mubr.msk.bf16.mxu0 %vm310_vm0, %v2129_v14 }
  0x93   : > { %v6750_v42 = vpop.permute.xlu1 %6749 }
  0x94   : > { %6924 = vrot.lane.b32.xlu0 %v6923_v6, %s7907_s8 }
  0x95   : > { %6939 = vrot.lane.b32.xlu1 %v8512_v53, %s7906_s29  ;;  %v6963_v53 = vpack.i.bf16 %v1060_v19, %v1059_v9  ;;  %v6752_v9 = vunpack.i.h.bf16 %v6750_v42 }
  0x98   : > { %6934 = vrot.lane.b32.xlu0 %v6933_v24, %s7906_s29  ;;  %6406 = vmatmul.mubr.msk.bf16.gmra.mrb[28].mxu0 %vm310_vm0, %v2132_v26 }
  0x99   : > { %6949 = vrot.lane.b32.xlu1 %v8528_v15, %s7908_s18  ;;  %v8583_v15 = vpack.i.bf16 %v1092_v12, %v1091_v8  ;;  %v8626_v47 = vpop.permute.xlu1 %6754  ;;  %v6751_v8 = vunpack.i.l.bf16 %v6750_v42 }
  0x9a   : > { %v6757_v42 = vunpack.i.h.bf16 %v8626_v47 }
  0x9c   : > { %6944 = vrot.lane.b32.xlu0 %v8570_v5, %s7908_s18 }
  0x9d   : > { %6959 = vrot.lane.b32.xlu1 %v8491_v55, %s7907_s8  ;;  %v8588_v55 = vpack.i.bf16 %v1029_v16, %v1028_v46 }
  0xa0   : > { %6954 = vrot.lane.b32.xlu0 %v6953_v7, %s7907_s8 }
  0xa1   : > { %6969 = vrot.lane.b32.xlu1 %v6893_v34, %s7906_s29  ;;  %v8618_v34 = vpack.i.bf16 %v1064_v33, %v1063_v29 }
  0xa4   : > { %6964 = vrot.lane.b32.xlu0 %v6963_v53, %s7906_s29 }
  0xa5   : > { %6979 = vrot.lane.b32.xlu1 %v6903_v43, %s7908_s18  ;;  %v6745_v43 = vpop.permute.xlu0 %6744 }
  0xa6   : > { %v6746_v38 = vunpack.i.l.bf16 %v6745_v43 }
  0xa8   : > { %6974 = vrot.lane.b32.xlu0 %v8583_v15, %s7908_s18 }
  0xa9   : > { %6989 = vrot.lane.b32.xlu1 %v8538_v23, %s7907_s8  ;;  %v1030_v23 = vld [vmem:[#allocation2 + $0x22a] sm:$0xff] }
  0xaa   : > { %v8612_v50 = vpack.i.bf16 %v1031_v27, %v1030_v23 }
  0xac   : > { %6984 = vrot.lane.b32.xlu0 %v8588_v55, %s7907_s8 }
  0xad   : > { %6999 = vrot.lane.b32.xlu1 %v6923_v6, %s7906_s29  ;;  %v6747_v6 = vunpack.i.h.bf16 %v6745_v43  ;;  %v6756_v43 = vunpack.i.l.bf16 %v8626_v47 }
  0xaf   : > { %v1910_v16 = vsel %vm310_vm0, %v853_v62, %v6747_v6  ;;  %v1911_v62 = vsel %vm310_vm0, %v854_v41, %v6756_v43  ;;  %v1070_v41 = vld [vmem:[#allocation2 + $0x2ce] sm:$0xff] }
  0xb0   : > { %6994 = vrot.lane.b32.xlu0 %v8594_v22, %s7906_s29  ;;  %v1943_v27 = vsel %vm1941_vm1, %v1910_v16, %v6752_v9 }
  0xb1   : > { %7009 = vrot.lane.b32.xlu1 %v6933_v24, %s7908_s18  ;;  %v852_v24 = vld [vmem:[#allocation2 + $0xc6] sm:$0xff] }
  0xb4   : > { %7004 = vrot.lane.b32.xlu0 %v8605_v28, %s7908_s18 }
  0xb5   : > { %7019 = vrot.lane.b32.xlu1 %v8556_v51, %s7907_s8 }
  0xb8   : > { %7014 = vrot.lane.b32.xlu0 %v8612_v50, %s7907_s8 }
  0xb9   : > { %7029 = vrot.lane.b32.xlu1 %v6953_v7, %s7906_s29 }
  0xbc   : > { %7024 = vrot.lane.b32.xlu0 %v8618_v34, %s7906_s29 }
  0xbd   : > { %7039 = vrot.lane.b32.xlu1 %v6963_v53, %s7908_s18 }
  0xc0   : > { %7034 = vrot.lane.b32.xlu0 %v8623_v44, %s7908_s18 }
  0xc1   : > { %7049 = vrot.lane.b32.xlu1 %v8570_v5, %s7907_s8  ;;  %v2135_v5 = vpack.c.bf16 %v8640_v59, %v8638_v58 }
  0xc2   : > { %v6760_v51 = vpop.permute.xlu0 %6759 }
  0xc3   : > { %v6762_v52 = vunpack.i.h.bf16 %v6760_v51  ;;  %v6761_v56 = vunpack.i.l.bf16 %v6760_v51  ;;  %v6765_v1 = vpop.permute.xlu1 %6764  ;;  %6409 = vmatprep.mubr.msk.bf16.mxu0 %vm310_vm0, %v2135_v5 }
  0xc4   : > { %7044 = vrot.lane.b32.xlu0 %v8630_v48, %s7907_s8  ;;  %v6767_v19 = vunpack.i.h.bf16 %v6765_v1  ;;  %v6766_v7 = vunpack.i.l.bf16 %v6765_v1 }
  0xc5   : > { %v2008_v63 = vsel %vm310_vm0, %v8347_v32, %v6762_v52  ;;  %v2007_v36 = vsel %vm310_vm0, %v8345_v31, %v6761_v56  ;;  %v2138_v32 = vpack.c.bf16 %v8650_v4, %v8648_v3  ;;  %v1909_v31 = vsel %vm310_vm0, %v852_v24, %v6746_v38  ;;  %7059 = vrot.lane.b32.xlu1 %v8588_v55, %s7906_s29  ;;  %v1099_v38 = vld [vmem:[#allocation2 + $0x2a8] sm:$0xff]  ;;  %v1100_v52 = vld [vmem:[#allocation2 + $0x2b0] sm:$0xff] }
  0xc6   : > { %v6770_v53 = vpop.permute.xlu0 %6769  ;;  %v2039_v17 = vsel %vm1941_vm1, %v2007_v36, %v6766_v7  ;;  %v2040_v18 = vsel %vm1941_vm1, %v2008_v63, %v6767_v19  ;;  %v1942_v23 = vsel %vm1941_vm1, %v1909_v31, %v6751_v8  ;;  %v1912_v24 = vsel %vm310_vm0, %v855_v49, %v6757_v42 }
  0xc7   : > { %v6772_v12 = vunpack.i.h.bf16 %v6770_v53  ;;  %v6771_v46 = vunpack.i.l.bf16 %v6770_v53  ;;  %6410 = vmatmul.mubr.msk.bf16.gmra.mrb[32].mxu0 %vm310_vm0, %v2138_v32  ;;  %v6775_v20 = vpop.permute.xlu1 %6774  ;;  %v8690_v36 = vpack.i.bf16 %v1100_v52, %v1099_v38 }
  0xc8   : > { %7054 = vrot.lane.b32.xlu0 %v8636_v57, %s7906_s29  ;;  %v6777_v13 = vunpack.i.h.bf16 %v6775_v20  ;;  %v6776_v55 = vunpack.i.l.bf16 %v6775_v20 }
  0xc9   : > { %v2071_v21 = vsel %vm1974_vm2, %v2039_v17, %v6771_v46  ;;  %v2072_v25 = vsel %vm1974_vm2, %v2040_v18, %v6772_v12  ;;  %7069 = vrot.lane.b32.xlu1 %v8594_v22, %s7908_s18  ;;  %v1067_v22 = vld [vmem:[#allocation2 + $0x2a6] sm:$0xff] }
  0xca   : > { %v6780_v14 = vpop.permute.xlu0 %6779  ;;  %v2104_v26 = vpack.c.bf16 %v2072_v25, %v2071_v21  ;;  %v1976_v29 = vsel %vm1974_vm2, %v1943_v27, %v6777_v13  ;;  %v1975_v33 = vsel %vm1974_vm2, %v1942_v23, %v6776_v55  ;;  %v8686_v47 = vpack.i.bf16 %v1068_v37, %v1067_v22  ;;  %v856_v13 = vld [vmem:[#allocation2 + $0x106] sm:$0xff]  ;;  %v857_v55 = vld [vmem:[#allocation2 + $0x10e] sm:$0xff] }
  0xcb   : > { %v2103_v39 = vpack.c.bf16 %v1976_v29, %v1975_v33  ;;  %v6790_v45 = vpop.permute.xlu1 %6789  ;;  %v6782_v51 = vunpack.i.h.bf16 %v6780_v14  ;;  %v6781_v30 = vunpack.i.l.bf16 %v6780_v14  ;;  %v8714_v14 = vpack.i.bf16 %v8640_v59, %v8638_v58  ;;  %v1069_v33 = vld [vmem:[#allocation2 + $0x2c6] sm:$0xff] }
  0xcc   : > { %7064 = vrot.lane.b32.xlu0 %v8646_v2, %s7908_s18  ;;  %2375 = vmatprep.mubr.bf16.mxu1 %v2104_v26  ;;  %v6792_v56 = vunpack.i.h.bf16 %v6790_v45  ;;  %v6791_v6 = vunpack.i.l.bf16 %v6790_v45  ;;  %v984_v26 = vld [vmem:[#allocation2 + $0x148] sm:$0xff]  ;;  %v1102_v45 = vld [vmem:[#allocation2 + $0x2d0] sm:$0xff] }
  0xcd   : > { %2376 = vmatmul.mubr.bf16.vlgmr.msra.gmra.mrb[20].mxu1 %v2103_v39  ;;  %7079 = vrot.lane.b32.xlu1 %v8583_v15, %s7907_s8  ;;  %v2010_v1 = vsel %vm310_vm0, %v8424_v11, %v6782_v51  ;;  %v2009_v15 = vsel %vm310_vm0, %v8422_v10, %v6781_v30  ;;  %v1101_v39 = vld [vmem:[#allocation2 + $0x2c8] sm:$0xff]  ;;  %v8722_v51 = vpack.i.bf16 %v1070_v41, %v1069_v33  ;;  %v987_v33 = vld [vmem:[#allocation2 + $0x170] sm:$0xff] }
  0xce   : > { %v6785_v54 = vpop.permute.xlu0 %6784  ;;  %v1944_v32 = vsel %vm1941_vm1, %v1911_v62, %v6791_v6  ;;  %v1945_v8 = vsel %vm1941_vm1, %v1912_v24, %v6792_v56  ;;  %v8724_v30 = vld [vmem:[#allocation2 + $0x2ca] sm:$0xff]  ;;  %v7123_v6 = vpack.i.bf16 %v1102_v45, %v1101_v39 }
  0xcf   : > { %v6787_v61 = vunpack.i.h.bf16 %v6785_v54  ;;  %v6786_v60 = vunpack.i.l.bf16 %v6785_v54  ;;  %v6800_v63 = vpop.permute.xlu1 %6799  ;;  %v8726_v54 = vld [vmem:[#allocation2 + $0x2d2] sm:$0xff] }
  0xd0   : > { %7074 = vrot.lane.b32.xlu0 %v8678_v40, %s7907_s8  ;;  %v6802_v5 = vunpack.i.h.bf16 %v6800_v63  ;;  %v6801_v9 = vunpack.i.l.bf16 %v6800_v63 }
  0xd1   : > { %7089 = vrot.lane.b32.xlu1 %v8612_v50, %s7906_s29  ;;  %v2041_v11 = vsel %vm1941_vm1, %v2009_v15, %v6786_v60  ;;  %v2042_v31 = vsel %vm1941_vm1, %v2010_v1, %v6787_v61  ;;  %v8730_v61 = vld [vmem:[#allocation2 + $0x2ea] sm:$0xff]  ;;  %v2141_v60 = vpack.c.bf16 %v8726_v54, %v8724_v30 }
  0xd2   : > { %v6795_v19 = vpop.permute.xlu0 %6794  ;;  %v1977_v10 = vsel %vm1974_vm2, %v1944_v32, %v6801_v9  ;;  %v1978_v12 = vsel %vm1974_vm2, %v1945_v8, %v6802_v5 }
  0xd3   : > { %v6797_v7 = vunpack.i.h.bf16 %v6795_v19  ;;  %v6796_v53 = vunpack.i.l.bf16 %v6795_v19  ;;  %v6810_v46 = vpop.permute.xlu1 %6809  ;;  %v2106_v21 = vpack.c.bf16 %v1978_v12, %v1977_v10  ;;  %6413 = vmatprep.mubr.msk.bf16.mxu0 %vm310_vm0, %v2141_v60 }
  0xd4   : > { %7084 = vrot.lane.b32.xlu0 %v8686_v47, %s7906_s29  ;;  %v6811_v20 = vunpack.i.l.bf16 %v6810_v46  ;;  %v6812_v25 = vunpack.i.h.bf16 %v6810_v46 }
  0xd5   : > { %v2073_v16 = vsel %vm1974_vm2, %v2041_v11, %v6796_v53  ;;  %v2074_v50 = vsel %vm1974_vm2, %v2042_v31, %v6797_v7  ;;  %7099 = vrot.lane.b32.xlu1 %v8618_v34, %s7908_s18  ;;  %v985_v34 = vld [vmem:[#allocation2 + $0x150] sm:$0xff] }
  0xd6   : > { %v6805_v17 = vpop.permute.xlu0 %6804  ;;  %v2107_v18 = vpack.c.bf16 %v2074_v50, %v2073_v16  ;;  %v1913_v22 = vsel %vm310_vm0, %v856_v13, %v6811_v20  ;;  %v1914_v58 = vsel %vm310_vm0, %v857_v55, %v6812_v25  ;;  %v1072_v20 = vld [vmem:[#allocation2 + $0x2ee] sm:$0xff] }
  0xd7   : > { %v6807_v23 = vunpack.i.h.bf16 %v6805_v17  ;;  %v6806_v27 = vunpack.i.l.bf16 %v6805_v17  ;;  %v6820_v29 = vpop.permute.xlu1 %6819  ;;  %v8757_v17 = vpack.i.bf16 %v8650_v4, %v8648_v3  ;;  %v859_v25 = vld [vmem:[#allocation2 + $0x12e] sm:$0xff] }
  0xd8   : > { %7094 = vrot.lane.b32.xlu0 %v8690_v36, %s7908_s18  ;;  %2383 = vmatprep.mubr.bf16.mxu1 %v2107_v18  ;;  %v6821_v42 = vunpack.i.l.bf16 %v6820_v29  ;;  %v6822_v37 = vunpack.i.h.bf16 %v6820_v29  ;;  %v1071_v18 = vld [vmem:[#allocation2 + $0x2e6] sm:$0xff] }
  0xd9   : > { %2384 = vmatmul.mubr.bf16.gmra.mrb[24].mxu1 %v2106_v21  ;;  %7109 = vrot.lane.b32.xlu1 %v8605_v28, %s7907_s8  ;;  %v2012_v38 = vsel %vm310_vm0, %v985_v34, %v6807_v23  ;;  %v2011_v52 = vsel %vm310_vm0, %v984_v26, %v6806_v27  ;;  %v8732_v28 = vld [vmem:[#allocation2 + $0x2f2] sm:$0xff]  ;;  %v858_v21 = vld [vmem:[#allocation2 + $0x126] sm:$0xff]  ;;  %v8761_v3 = vpack.i.bf16 %v1072_v20, %v1071_v18 }
  0xda   : > { %v6815_v43 = vpop.permute.xlu0 %6814  ;;  %v1946_v1 = vsel %vm1941_vm1, %v1913_v22, %v6821_v42  ;;  %v2144_v15 = vpack.c.bf16 %v8732_v28, %v8730_v61  ;;  %v1947_v7 = vsel %vm1941_vm1, %v1914_v58, %v6822_v37  ;;  %v1104_v27 = vld [vmem:[#allocation2 + $0x2f0] sm:$0xff]  ;;  %v986_v29 = vld [vmem:[#allocation2 + $0x168] sm:$0xff] }
  0xdb   : > { %v6816_v49 = vunpack.i.l.bf16 %v6815_v43  ;;  %v6817_v59 = vunpack.i.h.bf16 %v6815_v43  ;;  %v6830_v56 = vpop.permute.xlu1 %6829  ;;  %v1105_v20 = vld [vmem:[#allocation2 + $0x308] sm:$0xff] }
  0xdc   : > { %7104 = vrot.lane.b32.xlu0 %v8714_v14, %s7907_s8  ;;  %v6832_v24 = vunpack.i.h.bf16 %v6830_v56  ;;  %v6831_v62 = vunpack.i.l.bf16 %v6830_v56  ;;  %6414 = vmatmul.mubr.msk.bf16.gmra.mrb[36].mxu0 %vm310_vm0, %v2144_v15 }
  0xdd   : > { %7119 = vrot.lane.b32.xlu1 %v8630_v48, %s7906_s29  ;;  %v2043_v19 = vsel %vm1941_vm1, %v2011_v52, %v6816_v49  ;;  %v2044_v53 = vsel %vm1941_vm1, %v2012_v38, %v6817_v59 }
  0xde   : > { %v6825_v63 = vpop.permute.xlu0 %6824  ;;  %v1979_v32 = vsel %vm1974_vm2, %v1946_v1, %v6831_v62  ;;  %v1980_v8 = vsel %vm1974_vm2, %v1947_v7, %v6832_v24 }
  0xdf   : > { %v6827_v5 = vunpack.i.h.bf16 %v6825_v63  ;;  %v6826_v9 = vunpack.i.l.bf16 %v6825_v63  ;;  %v6840_v11 = vpop.permute.xlu1 %6839  ;;  %v2109_v46 = vpack.c.bf16 %v1980_v8, %v1979_v32  ;;  %v861_v32 = vld [vmem:[#allocation2 + $0x14e] sm:$0xff] }
  0xe0   : > { %7114 = vrot.lane.b32.xlu0 %v8722_v51, %s7906_s29  ;;  %v6842_v16 = vunpack.i.h.bf16 %v6840_v11  ;;  %v6841_v50 = vunpack.i.l.bf16 %v6840_v11  ;;  %v7163_v11 = vpack.i.bf16 %v8726_v54, %v8724_v30 }
  0xe1   : > { %v2075_v48 = vsel %vm1974_vm2, %v2043_v19, %v6826_v9  ;;  %v2076_v31 = vsel %vm1974_vm2, %v2044_v53, %v6827_v5  ;;  %7129 = vrot.lane.b32.xlu1 %v8636_v57, %s7908_s18  ;;  %v1103_v57 = vld [vmem:[#allocation2 + $0x2e8] sm:$0xff] }
  0xe2   : > { %v6835_v10 = vpop.permute.xlu0 %6834  ;;  %v2110_v12 = vpack.c.bf16 %v2076_v31, %v2075_v48  ;;  %v1916_v4 = vsel %vm310_vm0, %v859_v25, %v6842_v16  ;;  %v1915_v42 = vsel %vm310_vm0, %v858_v21, %v6841_v50  ;;  %v7153_v22 = vpack.i.bf16 %v1104_v27, %v1103_v57  ;;  %v860_v53 = vld [vmem:[#allocation2 + $0x146] sm:$0xff]  ;;  %v1074_v16 = vld [vmem:[#allocation2 + $0x30e] sm:$0xff] }
  0xe3   : > { %v6850_v13 = vpop.permute.xlu1 %6849  ;;  %v6837_v55 = vunpack.i.h.bf16 %v6835_v10  ;;  %v6836_v26 = vunpack.i.l.bf16 %v6835_v10  ;;  %v988_v48 = vld [vmem:[#allocation2 + $0x188] sm:$0xff]  ;;  %v989_v50 = vld [vmem:[#allocation2 + $0x190] sm:$0xff] }
  0xe4   : > { %7124 = vrot.lane.b32.xlu0 %v7123_v6, %s7908_s18  ;;  %2391 = vmatprep.mubr.bf16.mxu1 %v2110_v12  ;;  %v6852_v41 = vunpack.i.h.bf16 %v6850_v13  ;;  %v6851_v34 = vunpack.i.l.bf16 %v6850_v13  ;;  %v1106_v21 = vld [vmem:[#allocation2 + $0x310] sm:$0xff] }
  0xe5   : > { %2392 = vmatmul.mubr.bf16.gmra.mrb[28].mxu1 %v2109_v46  ;;  %7139 = vrot.lane.b32.xlu1 %v8623_v44, %s7907_s8  ;;  %v2014_v37 = vsel %vm310_vm0, %v987_v33, %v6837_v55  ;;  %v2013_v49 = vsel %vm310_vm0, %v986_v29, %v6836_v26  ;;  %v1073_v46 = vld [vmem:[#allocation2 + $0x306] sm:$0xff]  ;;  %v1138_v57 = vld [vmem:[#allocation2 + $0x312] sm:$0xff] }
  0xe6   : > { %v6845_v23 = vpop.permute.xlu0 %6844  ;;  %v1948_v56 = vsel %vm1941_vm1, %v1915_v42, %v6851_v34  ;;  %v1949_v6 = vsel %vm1941_vm1, %v1916_v4, %v6852_v41  ;;  %v7173_v26 = vpack.i.bf16 %v1074_v16, %v1073_v46  ;;  %v7183_v41 = vpack.i.bf16 %v1106_v21, %v1105_v20  ;;  %v1139_v4 = vld [vmem:[#allocation2 + $0x32a] sm:$0xff]  ;;  %v1140_v42 = vld [vmem:[#allocation2 + $0x332] sm:$0xff] }
  0xe7   : > { %v6847_v43 = vunpack.i.h.bf16 %v6845_v23  ;;  %v6846_v39 = vunpack.i.l.bf16 %v6845_v23  ;;  %v6860_v45 = vpop.permute.xlu1 %6859  ;;  %v1137_v23 = vld [vmem:[#allocation2 + $0x30a] sm:$0xff] }
  0xe8   : > { %7134 = vrot.lane.b32.xlu0 %v8757_v17, %s7907_s8  ;;  %v6862_v58 = vunpack.i.h.bf16 %v6860_v45  ;;  %v6861_v59 = vunpack.i.l.bf16 %v6860_v45  ;;  %v2147_v34 = vpack.c.bf16 %v1138_v57, %v1137_v23 }
  0xe9   : > { %7149 = vrot.lane.b32.xlu1 %v8678_v40, %s7906_s29  ;;  %v2045_v60 = vsel %vm1941_vm1, %v2013_v49, %v6846_v39  ;;  %v2046_v24 = vsel %vm1941_vm1, %v2014_v37, %v6847_v43 }
  0xea   : > { %v6855_v44 = vpop.permute.xlu0 %6854  ;;  %v1981_v62 = vsel %vm1974_vm2, %v1948_v56, %v6861_v59  ;;  %v1982_v63 = vsel %vm1974_vm2, %v1949_v6, %v6862_v58  ;;  %6417 = vmatprep.mubr.msk.bf16.mxu0 %vm310_vm0, %v2147_v34 }
  0xeb   : > { %v6857_v38 = vunpack.i.h.bf16 %v6855_v44  ;;  %v6856_v52 = vunpack.i.l.bf16 %v6855_v44  ;;  %v6870_v1 = vpop.permute.xlu1 %6869  ;;  %v2112_v7 = vpack.c.bf16 %v1982_v63, %v1981_v62 }
  0xec   : > { %7144 = vrot.lane.b32.xlu0 %v8761_v3, %s7906_s29  ;;  %v6871_v19 = vunpack.i.l.bf16 %v6870_v1  ;;  %v6872_v8 = vunpack.i.h.bf16 %v6870_v1 }
  0xed   : > { %v2077_v15 = vsel %vm1974_vm2, %v2045_v60, %v6856_v52  ;;  %v2078_v40 = vsel %vm1974_vm2, %v2046_v24, %v6857_v38  ;;  %7159 = vrot.lane.b32.xlu1 %v8686_v47, %s7908_s18 }
  0xee   : > { %v6865_v5 = vpop.permute.xlu0 %6864  ;;  %v2113_v9 = vpack.c.bf16 %v2078_v40, %v2077_v15  ;;  %v1917_v25 = vsel %vm310_vm0, %v860_v53, %v6871_v19  ;;  %v1918_v30 = vsel %vm310_vm0, %v861_v32, %v6872_v8  ;;  %v7193_v15 = vpack.i.bf16 %v8732_v28, %v8730_v61  ;;  %v1075_v40 = vld [vmem:[#allocation2 + $0x326] sm:$0xff]  ;;  %v863_v19 = vld [vmem:[#allocation2 + $0x16e] sm:$0xff] }
  0xef   : > { %v6867_v31 = vunpack.i.h.bf16 %v6865_v5  ;;  %v6866_v10 = vunpack.i.l.bf16 %v6865_v5  ;;  %v6880_v12 = vpop.permute.xlu1 %6879  ;;  %v1076_v5 = vld [vmem:[#allocation2 + $0x32e] sm:$0xff] }
  0xf0   : > { %7154 = vrot.lane.b32.xlu0 %v7153_v22, %s7908_s18  ;;  %2399 = vmatprep.mubr.bf16.mxu1 %v2113_v9  ;;  %v6881_v18 = vunpack.i.l.bf16 %v6880_v12  ;;  %v6882_v13 = vunpack.i.h.bf16 %v6880_v12  ;;  %v2150_v22 = vpack.c.bf16 %v1140_v42, %v1139_v4  ;;  %v862_v9 = vld [vmem:[#allocation2 + $0x166] sm:$0xff]  ;;  %v7203_v46 = vpack.i.bf16 %v1076_v5, %v1075_v40  ;;  %v993_v5 = vld [vmem:[#allocation2 + $0x1d0] sm:$0xff] }
  0xf1   : > { %2400 = vmatmul.mubr.bf16.gmra.mrb[32].mxu1 %v2112_v7  ;;  %7169 = vrot.lane.b32.xlu1 %v8646_v2, %s7907_s8  ;;  %v2016_v27 = vsel %vm310_vm0, %v989_v50, %v6867_v31  ;;  %v2015_v29 = vsel %vm310_vm0, %v988_v48, %v6866_v10  ;;  %v990_v48 = vld [vmem:[#allocation2 + $0x1a8] sm:$0xff]  ;;  %v991_v31 = vld [vmem:[#allocation2 + $0x1b0] sm:$0xff] }
  0xf2   : > { %v6875_v47 = vpop.permute.xlu0 %6874  ;;  %v1950_v45 = vsel %vm1941_vm1, %v1917_v25, %v6881_v18  ;;  %v1951_v59 = vsel %vm1941_vm1, %v1918_v30, %v6882_v13  ;;  %6418 = vmatmul.mubr.msk.bf16.gmra.mrb[40].mxu0 %vm310_vm0, %v2150_v22  ;;  %v8829_v42 = vld [vmem:[#allocation2 + $0x10c] sm:$0xff] }
  0xf3   : > { %v6876_v55 = vunpack.i.l.bf16 %v6875_v47  ;;  %v6877_v54 = vunpack.i.h.bf16 %v6875_v47  ;;  %v6890_v33 = vpop.permute.xlu1 %6889  ;;  %v992_v40 = vld [vmem:[#allocation2 + $0x1c8] sm:$0xff] }
  0xf4   : > { %7164 = vrot.lane.b32.xlu0 %v7163_v11, %s7907_s8  ;;  %v6892_v43 = vunpack.i.h.bf16 %v6890_v33  ;;  %v6891_v39 = vunpack.i.l.bf16 %v6890_v33  ;;  %v1107_v11 = vld [vmem:[#allocation2 + $0x328] sm:$0xff] }
  0xf5   : > { %7179 = vrot.lane.b32.xlu1 %v8714_v14, %s7906_s29  ;;  %v2047_v58 = vsel %vm1941_vm1, %v2015_v29, %v6876_v55  ;;  %v2048_v44 = vsel %vm1941_vm1, %v2016_v27, %v6877_v54  ;;  %v3254_v33 = vld [vmem:[#allocation2 + $0x88] sm:$0xff] }
  0xf6   : > { %v6885_v2 = vpop.permute.xlu0 %6884  ;;  %v1983_v38 = vsel %vm1974_vm2, %v1950_v45, %v6891_v39  ;;  %v1984_v52 = vsel %vm1974_vm2, %v1951_v59, %v6892_v43  ;;  %v3334_v43 = vld [vmem:[#allocation2 + $0x114] sm:$0xff] }
  0xf7   : > { %v6887_v37 = vunpack.i.h.bf16 %v6885_v2  ;;  %v6886_v49 = vunpack.i.l.bf16 %v6885_v2  ;;  %v6900_v56 = vpop.permute.xlu1 %6899  ;;  %v2115_v62 = vpack.c.bf16 %v1984_v52, %v1983_v38  ;;  %v8835_v59 = vpack.i.bf16 %v3334_v43, %v8829_v42  ;;  %v3223_v38 = vld [vmem:[#allocation2 + $0x8c] sm:$0xff]  ;;  %v3286_v52 = vld [vmem:[#allocation2 + $0x94] sm:$0xff] }
  0xf8   : > { %7174 = vrot.lane.b32.xlu0 %v7173_v26, %s7906_s29  ;;  %v6902_v63 = vunpack.i.h.bf16 %v6900_v56  ;;  %v6901_v1 = vunpack.i.l.bf16 %v6900_v56  ;;  %v864_v56 = vld [vmem:[#allocation2 + $0x186] sm:$0xff] }
  0xf9   : > { %v2079_v6 = vsel %vm1974_vm2, %v2047_v58, %v6886_v49  ;;  %v2080_v14 = vsel %vm1974_vm2, %v2048_v44, %v6887_v37  ;;  %7189 = vrot.lane.b32.xlu1 %v8722_v51, %s7908_s18  ;;  %v1108_v51 = vld [vmem:[#allocation2 + $0x330] sm:$0xff]  ;;  %v3351_v37 = vld [vmem:[#allocation2 + $0x184] sm:$0xff] }
  0xfa   : > { %v6895_v60 = vpop.permute.xlu0 %6894  ;;  %v2116_v24 = vpack.c.bf16 %v2080_v14, %v2079_v6  ;;  %v1920_v61 = vsel %vm310_vm0, %v863_v19, %v6902_v63  ;;  %v1919_v28 = vsel %vm310_vm0, %v862_v9, %v6901_v1  ;;  %v7213_v47 = vpack.i.bf16 %v1108_v51, %v1107_v11  ;;  %v8837_v44 = vld [vmem:[#allocation2 + $0x18c] sm:$0xff] }
  0xfb   : > { %v6910_v7 = vpop.permute.xlu1 %6909  ;;  %v6897_v53 = vunpack.i.h.bf16 %v6895_v60  ;;  %v6896_v32 = vunpack.i.l.bf16 %v6895_v60  ;;  %v865_v6 = vld [vmem:[#allocation2 + $0x18e] sm:$0xff] }
  0xfc   : > { %7184 = vrot.lane.b32.xlu0 %v7183_v41, %s7908_s18  ;;  %2407 = vmatprep.mubr.bf16.mxu1 %v2116_v24  ;;  %v6912_v10 = vunpack.i.h.bf16 %v6910_v7  ;;  %v6911_v12 = vunpack.i.l.bf16 %v6910_v7  ;;  %v3255_v41 = vld [vmem:[#allocation2 + $0x90] sm:$0xff]  ;;  %v3383_v63 = vld [vmem:[#allocation2 + $0x188] sm:$0xff]  ;;  %v8844_v7 = vpack.i.bf16 %v8837_v44, %v3351_v37 }
  0xfd   : > { %2408 = vmatmul.mubr.bf16.gmra.mrb[36].mxu1 %v2115_v62  ;;  %7199 = vrot.lane.b32.xlu1 %v8690_v36, %s7907_s8  ;;  %v2018_v20 = vsel %vm310_vm0, %v991_v31, %v6897_v53  ;;  %v2017_v21 = vsel %vm310_vm0, %v990_v48, %v6896_v32  ;;  %v7228_v22 = vpack.i.bf16 %v3255_v41, %v3254_v33  ;;  %v3384_v1 = vld [vmem:[#allocation2 + $0x190] sm:$0xff]  ;;  %v7724_v32 = vld [vmem:[%s10541_s4 + $0x48] sm:$0xff]  }
  0xfe   : > { %v6905_v8 = vpop.permute.xlu0 %6904  ;;  %v1952_v54 = vsel %vm1941_vm1, %v1919_v28, %v6911_v12  ;;  %v1953_v26 = vsel %vm1941_vm1, %v1920_v61, %v6912_v10  ;;  %v7238_v53 = vpack.i.bf16 %v3286_v52, %v3223_v38  ;;  %v8854_v12 = vpack.i.bf16 %v3384_v1, %v3383_v63  ;;  %v866_v37 = vld [vmem:[#allocation2 + $0x1a6] sm:$0xff] }
  0xff   : > { %v6907_v16 = vunpack.i.h.bf16 %v6905_v8  ;;  %v6906_v50 = vunpack.i.l.bf16 %v6905_v8  ;;  %v6920_v18 = vpop.permute.xlu1 %6919 }
 0x100   : > { %7194 = vrot.lane.b32.xlu0 %v7193_v15, %s7907_s8  ;;  %v6922_v25 = vunpack.i.h.bf16 %v6920_v18  ;;  %v6921_v13 = vunpack.i.l.bf16 %v6920_v18  ;;  %v7723_v15 = vld [vmem:[%s10541_s4 + $0x40] sm:$0xff]  }
 0x101   : > { %7209 = vrot.lane.b32.xlu1 %v8757_v17, %s7906_s29  ;;  %v2049_v23 = vsel %vm1941_vm1, %v2017_v21, %v6906_v50  ;;  %v2050_v57 = vsel %vm1941_vm1, %v2018_v20, %v6907_v16  ;;  %6421 = vmatprep.subr.bf16.mxu0 %v7723_v15 }
 0x102   : > { %v6915_v55 = vpop.permute.xlu0 %6914  ;;  %v1985_v27 = vsel %vm1974_vm2, %v1952_v54, %v6921_v13  ;;  %v1986_v29 = vsel %vm1974_vm2, %v1953_v26, %v6922_v25  ;;  %6422 = vmatpush3.bf16.msra.mxu0 %v7723_v15  ;;  %v3257_v54 = vld [vmem:[#allocation2 + $0xb0] sm:$0xff] }
 0x103   : > { %v6917_v30 = vunpack.i.h.bf16 %v6915_v55  ;;  %v6916_v36 = vunpack.i.l.bf16 %v6915_v55  ;;  %v6930_v34 = vpop.permute.xlu1 %6929  ;;  %v2118_v45 = vpack.c.bf16 %v1986_v29, %v1985_v27  ;;  %6423 = vmatprep.subr.bf16.mxu0 %v7724_v32  ;;  %v8869_v27 = vld [vmem:[#allocation2 + $0x12c] sm:$0xff]  ;;  %v3335_v29 = vld [vmem:[#allocation2 + $0x134] sm:$0xff] }
 0x104   : > { %7204 = vrot.lane.b32.xlu0 %v7203_v46, %s7906_s29  ;;  %v6932_v49 = vunpack.i.h.bf16 %v6930_v34  ;;  %v6931_v58 = vunpack.i.l.bf16 %v6930_v34 }
 0x105   : > { %v2081_v4 = vsel %vm1974_vm2, %v2049_v23, %v6916_v36  ;;  %v2082_v17 = vsel %vm1974_vm2, %v2050_v57, %v6917_v30  ;;  %7219 = vrot.lane.b32.xlu1 %v8761_v3, %s7908_s18  ;;  %v3302_v3 = vld [vmem:[#allocation2 + $0x104] sm:$0xff] }
 0x106   : > { %v6925_v39 = vpop.permute.xlu0 %6924  ;;  %v2119_v2 = vpack.c.bf16 %v2082_v17, %v2081_v4  ;;  %v1922_v8 = vsel %vm310_vm0, %v865_v6, %v6932_v49  ;;  %v1921_v11 = vsel %vm310_vm0, %v864_v56, %v6931_v58  ;;  %v7248_v10 = vpack.i.bf16 %v8829_v42, %v3302_v3  ;;  %v3256_v36 = vld [vmem:[#allocation2 + $0xa8] sm:$0xff]  ;;  %6424 = vmatpush3.bf16.msra.mxu0 %v7724_v32 }
 0x107   : > { %v6940_v14 = vpop.permute.xlu1 %6939  ;;  %v6927_v60 = vunpack.i.h.bf16 %v6925_v39  ;;  %v6926_v24 = vunpack.i.l.bf16 %v6925_v39  ;;  %v7258_v4 = vpack.i.bf16 %v3257_v54, %v3256_v36  ;;  %v3353_v17 = vld [vmem:[#allocation2 + $0x1a4] sm:$0xff]  ;;  %v8875_v39 = vpack.i.bf16 %v3335_v29, %v8869_v27  ;;  %v867_v49 = vld [vmem:[#allocation2 + $0x1ae] sm:$0xff] }
 0x108   : > { %7214 = vrot.lane.b32.xlu0 %v7213_v47, %s7908_s18  ;;  %2415 = vmatprep.mubr.bf16.mxu1 %v2119_v2  ;;  %v6942_v9 = vunpack.i.h.bf16 %v6940_v14  ;;  %v6941_v19 = vunpack.i.l.bf16 %v6940_v14  ;;  %v8877_v2 = vld [vmem:[#allocation2 + $0x1ac] sm:$0xff]  ;;  %v3304_v3 = vld [vmem:[#allocation2 + $0x124] sm:$0xff]  ;;  %v3336_v54 = vld [vmem:[#allocation2 + $0x154] sm:$0xff] }
 0x109   : > { %2416 = vmatmul.mubr.bf16.gmra.mrb[40].mxu1 %v2118_v45  ;;  %7229 = vrot.lane.b32.xlu1 %v7228_v22, %s7907_s8  ;;  %v2020_v46 = vsel %vm310_vm0, %v993_v5, %v6927_v60  ;;  %v2019_v61 = vsel %vm310_vm0, %v992_v40, %v6926_v24  ;;  %v3225_v45 = vld [vmem:[#allocation2 + $0xac] sm:$0xff]  ;;  %v3287_v22 = vld [vmem:[#allocation2 + $0xb4] sm:$0xff]  ;;  %v8881_v1 = vpack.i.bf16 %v8877_v2, %v3353_v17 }
 0x10a   : > { %v6935_v62 = vpop.permute.xlu0 %6934  ;;  %v1954_v20 = vsel %vm1941_vm1, %v1921_v11, %v6941_v19  ;;  %v1955_v21 = vsel %vm1941_vm1, %v1922_v8, %v6942_v9  ;;  %v3385_v6 = vld [vmem:[#allocation2 + $0x1a8] sm:$0xff]  ;;  %v3386_v14 = vld [vmem:[#allocation2 + $0x1b0] sm:$0xff]  ;;  %v7268_v15 = vpack.i.bf16 %v3287_v22, %v3225_v45  ;;  %v7278_v8 = vpack.i.bf16 %v8869_v27, %v3304_v3  ;;  %v6355_v27 = vpop.f32.mrb[0].mxu0 }
 0x10b   : > { %v6937_v51 = vunpack.i.h.bf16 %v6935_v62  ;;  %v6936_v48 = vunpack.i.l.bf16 %v6935_v62  ;;  %v6950_v31 = vpop.permute.xlu1 %6949  ;;  %v994_v60 = vld [vmem:[#allocation2 + $0x1e8] sm:$0xff]  ;;  %v995_v24 = vld [vmem:[#allocation2 + $0x1f0] sm:$0xff]  ;;  %v8887_v32 = vpack.i.bf16 %v3386_v14, %v3385_v6  ;;  %v8922_v14 = vld [vmem:[%s10543_s6] ss:$0 sm:$0xff] }
 0x10c   : > { %7224 = vrot.lane.b32.xlu0 %v8835_v59, %s7907_s8  ;;  %v6952_v28 = vunpack.i.h.bf16 %v6950_v31  ;;  %v6951_v16 = vunpack.i.l.bf16 %v6950_v31  ;;  %v8903_v36 = vld [vmem:[#allocation2 + $0x14c] sm:$0xff]  ;;  %v3355_v3 = vld [vmem:[#allocation2 + $0x1c4] sm:$0xff] }
 0x10d   : > { %7239 = vrot.lane.b32.xlu1 %v7238_v53, %s7906_s29  ;;  %v2051_v25 = vsel %vm1941_vm1, %v2019_v61, %v6936_v48  ;;  %v2052_v13 = vsel %vm1941_vm1, %v2020_v46, %v6937_v51  ;;  %10554 = vst [vmem:[#allocation7_spill] sm:$0xff] %v8887_v32  ;;  %v868_v29 = vld [vmem:[#allocation2 + $0x1c6] sm:$0xff]  ;;  %v997_v22 = vld [vmem:[#allocation2 + $0x210] sm:$0xff] }
 0x10e   : > { %v6945_v50 = vpop.permute.xlu0 %6944  ;;  %v1987_v55 = vsel %vm1974_vm2, %v1954_v20, %v6951_v16  ;;  %v1988_v30 = vsel %vm1974_vm2, %v1955_v21, %v6952_v28  ;;  %v3258_v21 = vld [vmem:[#allocation2 + $0xc8] sm:$0xff] }
 0x10f   : > { %v6947_v18 = vunpack.i.h.bf16 %v6945_v50  ;;  %v6946_v47 = vunpack.i.l.bf16 %v6945_v50  ;;  %v6960_v26 = vpop.permute.xlu1 %6959  ;;  %v2121_v34 = vpack.c.bf16 %v1988_v30, %v1987_v55  ;;  %v996_v45 = vld [vmem:[#allocation2 + $0x208] sm:$0xff] }
 0x110   : > { %7234 = vrot.lane.b32.xlu0 %v8844_v7, %s7906_s29  ;;  %v6962_v42 = vunpack.i.h.bf16 %v6960_v26  ;;  %v6961_v43 = vunpack.i.l.bf16 %v6960_v26 }
 0x111   : > { %v2083_v23 = vsel %vm1974_vm2, %v2051_v25, %v6946_v47  ;;  %v2084_v57 = vsel %vm1974_vm2, %v2052_v13, %v6947_v18  ;;  %7249 = vrot.lane.b32.xlu1 %v7248_v10, %s7908_s18  ;;  %v3259_v25 = vld [vmem:[#allocation2 + $0xd0] sm:$0xff] }
 0x112   : > { %v6955_v33 = vpop.permute.xlu0 %6954  ;;  %v2122_v41 = vpack.c.bf16 %v2084_v57, %v2083_v23  ;;  %v1924_v40 = vsel %vm310_vm0, %v867_v49, %v6962_v42  ;;  %v1923_v5 = vsel %vm310_vm0, %v866_v37, %v6961_v43  ;;  %v8908_v57 = vld [vmem:[%s10542_s5] ss:$0 sm:$0xff]  ;;  %v8912_v42 = vpop.f32.mrb[1].mxu0  ;;  %v8917_v37 = vpack.i.bf16 %v3336_v54, %v8903_v36  ;;  %v3227_v49 = vld [vmem:[#allocation2 + $0xcc] sm:$0xff] }
 0x113   : > { %v6970_v58 = vpop.permute.xlu1 %6969  ;;  %v6957_v38 = vunpack.i.h.bf16 %v6955_v33  ;;  %v6956_v52 = vunpack.i.l.bf16 %v6955_v33  ;;  %v869_v33 = vld [vmem:[#allocation2 + $0x1ce] sm:$0xff]  ;;  %v720_v17 = vmul.f32 %v6355_v27, %v8908_v57 }
 0x114   : > { %2423 = vmatprep.mubr.bf16.mxu1 %v2122_v41  ;;  %7244 = vrot.lane.b32.xlu0 %v8854_v12, %s7908_s18  ;;  %v6972_v62 = vunpack.i.h.bf16 %v6970_v58  ;;  %v6971_v63 = vunpack.i.l.bf16 %v6970_v58  ;;  %v3288_v58 = vld [vmem:[#allocation2 + $0xd4] sm:$0xff] }
 0x115   : > { %2424 = vmatmul.mubr.bf16.gmra.mrb[44].mxu1 %v2121_v34  ;;  %7259 = vrot.lane.b32.xlu1 %v7258_v4, %s7907_s8  ;;  %v2022_v11 = vsel %vm310_vm0, %v995_v24, %v6957_v38  ;;  %v2021_v51 = vsel %vm310_vm0, %v994_v60, %v6956_v52  ;;  %v7288_v4 = vpack.i.bf16 %v3259_v25, %v3258_v21  ;;  %v6356_v38 = vpop.f32.mrb[2].mxu0  ;;  %v8924_v60 = vld [vmem:[#allocation2 + $0x1cc] sm:$0xff] }
 0x116   : > { %v6965_v56 = vpop.permute.xlu0 %6964  ;;  %v1956_v28 = vsel %vm1941_vm1, %v1923_v5, %v6971_v63  ;;  %v1957_v16 = vsel %vm1941_vm1, %v1924_v40, %v6972_v62  ;;  %v721_v24 = vmul.f32 %v6356_v38, %v8908_v57  ;;  %v8927_v62 = vpop.f32.mrb[3].mxu0  ;;  %v3387_v40 = vld [vmem:[#allocation2 + $0x1c8] sm:$0xff]  ;;  %v3388_v5 = vld [vmem:[#allocation2 + $0x1d0] sm:$0xff] }
 0x117   : > { %v6967_v9 = vunpack.i.h.bf16 %v6965_v56  ;;  %v6966_v19 = vunpack.i.l.bf16 %v6965_v56  ;;  %v6980_v53 = vpop.permute.xlu1 %6979  ;;  %v8950_v21 = vpack.i.bf16 %v3388_v5, %v3387_v40 }
 0x118   : > { %7254 = vrot.lane.b32.xlu0 %v8875_v39, %s7907_s8  ;;  %v6982_v48 = vunpack.i.h.bf16 %v6980_v53  ;;  %v6981_v31 = vunpack.i.l.bf16 %v6980_v53 }
 0x119   : > { %7269 = vrot.lane.b32.xlu1 %v7268_v15, %s7906_s29  ;;  %v2053_v50 = vsel %vm1941_vm1, %v2021_v51, %v6966_v19  ;;  %v2054_v18 = vsel %vm1941_vm1, %v2022_v11, %v6967_v9  ;;  %v3306_v9 = vld [vmem:[#allocation2 + $0x144] sm:$0xff]  ;;  %v757_v19 = vadd.f32 %v8922_v14, %v720_v17  ;;  %v8932_v11 = vpop.f32.mrb[0].mxu1  ;;  %v7298_v51 = vpack.i.bf16 %v3288_v58, %v3227_v49  ;;  %v3261_v49 = vld [vmem:[#allocation2 + $0xf0] sm:$0xff] }
 0x11a   : > { %v6975_v10 = vpop.permute.xlu0 %6974  ;;  %v1989_v47 = vsel %vm1974_vm2, %v1956_v28, %v6981_v31  ;;  %v1990_v20 = vsel %vm1974_vm2, %v1957_v16, %v6982_v48  ;;  %v758_v48 = vadd.f32 %v8922_v14, %v721_v24  ;;  %v7725_v31 = vld [vmem:[%s10541_s4 + $0x50] sm:$0xff]   ;;  %v8941_v28 = vpop.f32.mrb[1].mxu1  ;;  %v8944_v16 = vpack.i.bf16 %v8924_v60, %v3355_v3  ;;  %10555 = vst [vmem:[#allocation8_spill] sm:$0xff] %v8950_v21 }
 0x11b   : > { %v6977_v46 = vunpack.i.h.bf16 %v6975_v10  ;;  %v6976_v61 = vunpack.i.l.bf16 %v6975_v10  ;;  %v6990_v13 = vpop.permute.xlu1 %6989  ;;  %v2124_v34 = vpack.c.bf16 %v1990_v20, %v1989_v47  ;;  %v8948_v20 = vpop.f32.mrb[2].mxu1  ;;  %v7308_v25 = vpack.i.bf16 %v8903_v36, %v3306_v9  ;;  %6425 = vmatprep.subr.bf16.mxu0 %v7725_v31  ;;  %v7726_v36 = vld [vmem:[%s10541_s4 + $0x58] sm:$0xff]  }
 0x11c   : > { %7264 = vrot.lane.b32.xlu0 %v8881_v1, %s7906_s29  ;;  %v6991_v41 = vunpack.i.l.bf16 %v6990_v13  ;;  %v6992_v43 = vunpack.i.h.bf16 %v6990_v13  ;;  %6426 = vmatpush3.bf16.msra.mxu0 %v7725_v31  ;;  %v3337_v3 = vld [vmem:[#allocation2 + $0x174] sm:$0xff] }
 0x11d   : > { %v2085_v55 = vsel %vm1974_vm2, %v2053_v50, %v6976_v61  ;;  %v2086_v30 = vsel %vm1974_vm2, %v2054_v18, %v6977_v46  ;;  %7279 = vrot.lane.b32.xlu1 %v7278_v8, %s7908_s18  ;;  %6427 = vmatprep.subr.bf16.mxu0 %v7726_v36 }
 0x11e   : > { %v6985_v26 = vpop.permute.xlu0 %6984  ;;  %v2125_v23 = vpack.c.bf16 %v2086_v30, %v2085_v55  ;;  %v1925_v53 = vsel %vm310_vm0, %v868_v29, %v6991_v41  ;;  %v1926_v10 = vsel %vm310_vm0, %v869_v33, %v6992_v43  ;;  %v790_v41 = vmax.f32 %v758_v48, 0.0 }
 0x11f   : > { %v6987_v52 = vunpack.i.h.bf16 %v6985_v26  ;;  %v6986_v56 = vunpack.i.l.bf16 %v6985_v26  ;;  %v7000_v6 = vpop.permute.xlu1 %6999  ;;  %v8954_v26 = vpop.f32.mrb[3].mxu1 }
 0x120   : > { %2431 = vmatprep.mubr.bf16.mxu1 %v2125_v23  ;;  %7274 = vrot.lane.b32.xlu0 %v8887_v32, %s7908_s18  ;;  %v7001_v63 = vunpack.i.l.bf16 %v7000_v6  ;;  %v7002_v8 = vunpack.i.h.bf16 %v7000_v6  ;;  %v789_v23 = vmax.f32 %v757_v19, 0.0  ;;  %v8973_v6 = vld [vmem:[#allocation2 + $0x16c] sm:$0xff] }
 0x121   : > { %2432 = vmatmul.mubr.bf16.gmra.mrb[48].mxu1 %v2124_v34  ;;  %7289 = vrot.lane.b32.xlu1 %v7288_v4, %s7907_s8  ;;  %v2024_v50 = vsel %vm310_vm0, %v997_v22, %v6987_v52  ;;  %v2023_v18 = vsel %vm310_vm0, %v996_v45, %v6986_v56  ;;  %v8958_v34 = vpop.f32.mrb[4].mxu0  ;;  %v3260_v22 = vld [vmem:[#allocation2 + $0xe8] sm:$0xff]  ;;  %v8988_v31 = vpack.i.bf16 %v3337_v3, %v8973_v6 }
 0x122   : > { %v6995_v15 = vpop.permute.xlu0 %6994  ;;  %v1958_v54 = vsel %vm1941_vm1, %v1925_v53, %v7001_v63  ;;  %v1959_v33 = vsel %vm1941_vm1, %v1926_v10, %v7002_v8  ;;  %v8969_v58 = vpop.f32.mrb[5].mxu0  ;;  %6428 = vmatpush3.bf16.msra.mxu0 %v7726_v36  ;;  %v7318_v9 = vpack.i.bf16 %v3261_v49, %v3260_v22  ;;  %v8980_v19 = vpack.c.bf16 %v790_v41, %v789_v23  ;;  %v3357_v53 = vld [vmem:[#allocation2 + $0x1e4] sm:$0xff]  ;;  %v8990_v10 = vld [vmem:[#allocation2 + $0x1ec] sm:$0xff] }
 0x123   : > { %v6997_v46 = vunpack.i.h.bf16 %v6995_v15  ;;  %v6996_v61 = vunpack.i.l.bf16 %v6995_v15  ;;  %v7010_v47 = vpop.permute.xlu1 %7009  ;;  %10556 = vst [vmem:[#allocation9_spill] sm:$0xff] %v8969_v58  ;;  %v8975_v24 = vpop.f32.mrb[6].mxu0  ;;  %v7727_v8 = vld [vmem:[%s10541_s4 + $0x60] sm:$0xff]   ;;  %v998_v23 = vld [vmem:[#allocation2 + $0x228] sm:$0xff]  ;;  %v8996_v41 = vpack.i.bf16 %v8990_v10, %v3357_v53 }
 0x124   : > { %7284 = vrot.lane.b32.xlu0 %v8917_v37, %s7907_s8  ;;  %v7012_v13 = vunpack.i.h.bf16 %v7010_v47  ;;  %v7011_v55 = vunpack.i.l.bf16 %v7010_v47  ;;  %10557 = vst [vmem:[#allocation10_spill] sm:$0xff] %v8975_v24  ;;  %v8977_v40 = vpop.f32.mrb[7].mxu0  ;;  %10559 = vst [vmem:[#allocation12_spill] sm:$0xff] %v8980_v19  ;;  %6429 = vmatprep.subr.bf16.mxu0 %v7727_v8  ;;  %v3359_v24 = vld [vmem:[#allocation2 + $0x204] sm:$0xff]  ;;  %v9154_v58 = vld [vmem:[#allocation2 + $0x20c] sm:$0xff] }
 0x125   : > { %7299 = vrot.lane.b32.xlu1 %v7298_v51, %s7906_s29  ;;  %v2055_v4 = vsel %vm1941_vm1, %v2023_v18, %v6996_v61  ;;  %v2056_v17 = vsel %vm1941_vm1, %v2024_v50, %v6997_v46  ;;  %10558 = vst [vmem:[#allocation11_spill] sm:$0xff] %v8977_v40  ;;  %v3229_v46 = vld [vmem:[#allocation2 + $0xec] sm:$0xff]  ;;  %v3289_v61 = vld [vmem:[#allocation2 + $0xf4] sm:$0xff] }
 0x126   : > { %v7005_v30 = vpop.permute.xlu0 %7004  ;;  %v1991_v43 = vsel %vm1974_vm2, %v1958_v54, %v7011_v55  ;;  %v1992_v45 = vsel %vm1974_vm2, %v1959_v33, %v7012_v13  ;;  %v870_v50 = vld [vmem:[#allocation2 + $0x1e6] sm:$0xff]  ;;  %v871_v18 = vld [vmem:[#allocation2 + $0x1ee] sm:$0xff]  ;;  %6430 = vmatpush3.bf16.msra.mxu0 %v7727_v8  ;;  %v7328_v36 = vpack.i.bf16 %v3289_v61, %v3229_v46 }
 0x127   : > { %v7007_v27 = vunpack.i.h.bf16 %v7005_v30  ;;  %v7006_v29 = vunpack.i.l.bf16 %v7005_v30  ;;  %v7020_v38 = vpop.permute.xlu1 %7019  ;;  %v2127_v5 = vpack.c.bf16 %v1992_v45, %v1991_v43  ;;  %v8992_v30 = vpop.f32.mrb[8].mxu0  ;;  %v3308_v54 = vld [vmem:[#allocation2 + $0x164] sm:$0xff] }
 0x128   : > { %7294 = vrot.lane.b32.xlu0 %v8944_v16, %s7906_s29  ;;  %v7022_v51 = vunpack.i.h.bf16 %v7020_v38  ;;  %v7021_v48 = vunpack.i.l.bf16 %v7020_v38  ;;  %10560 = vst [vmem:[#allocation13_spill] sm:$0xff] %v8992_v30  ;;  %v3389_v8 = vld [vmem:[#allocation2 + $0x1e8] sm:$0xff] }
 0x129   : > { %v2087_v52 = vsel %vm1974_vm2, %v2055_v4, %v7006_v29  ;;  %v2088_v56 = vsel %vm1974_vm2, %v2056_v17, %v7007_v27  ;;  %7309 = vrot.lane.b32.xlu1 %v7308_v25, %s7908_s18  ;;  %v999_v27 = vld [vmem:[#allocation2 + $0x230] sm:$0xff]  ;;  %v8998_v4 = vpop.f32.mrb[9].mxu0  ;;  %v7728_v17 = vld [vmem:[%s10541_s4 + $0x68] sm:$0xff]  }
 0x12a   : > { %v7015_v63 = vpop.permute.xlu0 %7014  ;;  %v2128_v15 = vpack.c.bf16 %v2088_v56, %v2087_v52  ;;  %10561 = vst [vmem:[#allocation14_spill] sm:$0xff] %v8998_v4  ;;  %v1928_v43 = vsel %vm310_vm0, %v871_v18, %v7022_v51  ;;  %v1927_v45 = vsel %vm310_vm0, %v870_v50, %v7021_v48  ;;  %v9007_v38 = vpop.f32.mrb[10].mxu0  ;;  %v7338_v56 = vpack.i.bf16 %v8973_v6, %v3308_v54  ;;  %v3390_v51 = vld [vmem:[#allocation2 + $0x1f0] sm:$0xff] }
 0x12b   : > { %v7030_v47 = vpop.permute.xlu1 %7029  ;;  %v7017_v25 = vunpack.i.h.bf16 %v7015_v63  ;;  %v7016_v13 = vunpack.i.l.bf16 %v7015_v63  ;;  %10562 = vst [vmem:[#allocation15_spill] sm:$0xff] %v9007_v38  ;;  %v9010_v3 = vpop.f32.mrb[11].mxu0  ;;  %6431 = vmatprep.subr.bf16.mxu0 %v7728_v17  ;;  %v7729_v6 = vld [vmem:[%s10541_s4 + $0x70] sm:$0xff]  }
 0x12c   : > { %2439 = vmatprep.mubr.bf16.mxu1 %v2128_v15  ;;  %7304 = vrot.lane.b32.xlu0 %v8950_v21, %s7908_s18  ;;  %v7032_v29 = vunpack.i.h.bf16 %v7030_v47  ;;  %v7031_v33 = vunpack.i.l.bf16 %v7030_v47  ;;  %10563 = vst [vmem:[#allocation16_spill] sm:$0xff] %v9010_v3  ;;  %v3262_v3 = vld [vmem:[#allocation2 + $0x108] sm:$0xff] }
 0x12d   : > { %2440 = vmatmul.mubr.bf16.gmra.mrb[52].mxu1 %v2127_v5  ;;  %7319 = vrot.lane.b32.xlu1 %v7318_v9, %s7907_s8  ;;  %v2026_v63 = vsel %vm310_vm0, %v999_v27, %v7017_v25  ;;  %v2025_v15 = vsel %vm310_vm0, %v998_v23, %v7016_v13 }
 0x12e   : > { %v7025_v55 = vpop.permute.xlu0 %7024  ;;  %6432 = vmatpush3.bf16.msra.mxu0 %v7728_v17  ;;  %v1960_v61 = vsel %vm1941_vm1, %v1927_v45, %v7031_v33  ;;  %v1961_v50 = vsel %vm1941_vm1, %v1928_v43, %v7032_v29  ;;  %v9028_v33 = vpack.i.bf16 %v3390_v51, %v3389_v8  ;;  %v732_v43 = vmul.f32 %v8932_v11, %v8908_v57  ;;  %v872_v11 = vld [vmem:[#allocation2 + $0x206] sm:$0xff] }
 0x12f   : > { %v7027_v22 = vunpack.i.h.bf16 %v7025_v55  ;;  %v7026_v49 = vunpack.i.l.bf16 %v7025_v55  ;;  %v7040_v52 = vpop.permute.xlu1 %7039  ;;  %v6371_v55 = vpop.f32.mrb[4].mxu1  ;;  %6433 = vmatprep.subr.bf16.mxu0 %v7729_v6 }
 0x130   : > { %7314 = vrot.lane.b32.xlu0 %v8988_v31, %s7907_s8  ;;  %v7042_v5 = vunpack.i.h.bf16 %v7040_v52  ;;  %v7041_v9 = vunpack.i.l.bf16 %v7040_v52  ;;  %v650_v29 = vpop.f32.mrb[5].mxu1  ;;  %10564 = vst [vmem:[#allocation17_spill] sm:$0xff] %v9028_v33  ;;  %v733_v52 = vmul.f32 %v8948_v20, %v8908_v57 }
 0x131   : > { %7329 = vrot.lane.b32.xlu1 %v7328_v36, %s7906_s29  ;;  %v2057_v18 = vsel %vm1941_vm1, %v2025_v15, %v7026_v49  ;;  %v2058_v47 = vsel %vm1941_vm1, %v2026_v63, %v7027_v22  ;;  %v6372_v45 = vpop.f32.mrb[6].mxu1  ;;  %v730_v49 = vmul.f32 %v8908_v57, %v8941_v28  ;;  %v7730_v15 = vld [vmem:[%s10541_s4 + $0x78] sm:$0xff]   ;;  %v731_v28 = vmul.f32 %v8908_v57, %v8954_v26 }
 0x132   : > { %v7035_v53 = vpop.permute.xlu0 %7034  ;;  %v1993_v25 = vsel %vm1974_vm2, %v1960_v61, %v7041_v9  ;;  %v1994_v13 = vsel %vm1974_vm2, %v1961_v50, %v7042_v5  ;;  %6434 = vmatpush3.bf16.msra.mxu0 %v7729_v6  ;;  %v653_v63 = vpop.f32.mrb[7].mxu1  ;;  %v1001_v61 = vld [vmem:[#allocation2 + $0x250] sm:$0xff] }
 0x133   : > { %v7037_v48 = vunpack.i.h.bf16 %v7035_v53  ;;  %v7036_v46 = vunpack.i.l.bf16 %v7035_v53  ;;  %v7050_v54 = vpop.permute.xlu1 %7049  ;;  %v2130_v22 = vpack.c.bf16 %v1994_v13, %v1993_v25  ;;  %v873_v53 = vld [vmem:[#allocation2 + $0x20e] sm:$0xff]  ;;  %6435 = vmatprep.subr.bf16.mxu0 %v7730_v15 }
 0x134   : > { %7324 = vrot.lane.b32.xlu0 %v8996_v41, %s7906_s29  ;;  %v7052_v5 = vunpack.i.h.bf16 %v7050_v54  ;;  %v7051_v9 = vunpack.i.l.bf16 %v7050_v54 }
 0x135   : > { %v2089_v23 = vsel %vm1974_vm2, %v2057_v18, %v7036_v46  ;;  %v2090_v27 = vsel %vm1974_vm2, %v2058_v47, %v7037_v48  ;;  %7339 = vrot.lane.b32.xlu1 %v7338_v56, %s7908_s18  ;;  %v9045_v48 = vadd.f32 %v8922_v14, %v732_v43  ;;  %v1000_v46 = vld [vmem:[#allocation2 + $0x248] sm:$0xff]  ;;  %v9048_v18 = vadd.f32 %v8922_v14, %v730_v49 }
 0x136   : > { %v7045_v36 = vpop.permute.xlu0 %7044  ;;  %v2131_v17 = vpack.c.bf16 %v2090_v27, %v2089_v23  ;;  %v9051_v47 = vadd.f32 %v8922_v14, %v733_v52  ;;  %6436 = vmatpush3.bf16.msra.mxu0 %v7730_v15  ;;  %v1930_v26 = vsel %vm310_vm0, %v873_v53, %v7052_v5  ;;  %v1929_v25 = vsel %vm310_vm0, %v872_v11, %v7051_v9  ;;  %v6375_v23 = vpop.f32.mrb[8].mxu1 }
 0x137   : > { %v7060_v8 = vpop.permute.xlu1 %7059  ;;  %v7047_v20 = vunpack.i.h.bf16 %v7045_v36  ;;  %v7046_v51 = vunpack.i.l.bf16 %v7045_v36  ;;  %v9056_v36 = vadd.f32 %v8922_v14, %v731_v28  ;;  %v734_v43 = vmul.f32 %v8908_v57, %v650_v29  ;;  %v666_v49 = vpop.f32.mrb[9].mxu1 }
 0x138   : > { %2447 = vmatprep.mubr.bf16.mxu1 %v2131_v17  ;;  %7334 = vrot.lane.b32.xlu0 %v9028_v33, %s7908_s18  ;;  %v7062_v50 = vunpack.i.h.bf16 %v7060_v8  ;;  %v7061_v6 = vunpack.i.l.bf16 %v7060_v8  ;;  %v736_v17 = vmul.f32 %v6371_v55, %v8908_v57  ;;  %v6376_v53 = vpop.f32.mrb[10].mxu1 }
 0x139   : > { %2448 = vmatmul.mubr.bf16.gmra.mrb[56].mxu1 %v2130_v22  ;;  %v737_v22 = vmul.f32 %v6372_v45, %v8908_v57  ;;  %v2028_v52 = vsel %vm310_vm0, %v1001_v61, %v7047_v20  ;;  %v2027_v15 = vsel %vm310_vm0, %v1000_v46, %v7046_v51  ;;  %v669_v55 = vpop.f32.mrb[11].mxu1 }
 0x13a   : > { %v7055_v56 = vpop.permute.xlu0 %7054  ;;  %v1962_v28 = vsel %vm1941_vm1, %v1929_v25, %v7061_v6  ;;  %v1963_v0 = vsel %vm1941_vm1, %v1930_v26, %v7062_v50  ;;  %v9073_v50 = vadd.f32 %v8922_v14, %v736_v17  ;;  %v9076_v26 = vadd.f32 %v8922_v14, %v734_v43  ;;  %v874_v43 = vld [vmem:[#allocation2 + $0x226] sm:$0xff] }
 0x13b   : > { %v7057_v13 = vunpack.i.h.bf16 %v7055_v56  ;;  %v7056_v54 = vunpack.i.l.bf16 %v7055_v56  ;;  %v7070_v27 = vpop.permute.xlu1 %7069  ;;  %v735_v25 = vmul.f32 %v8908_v57, %v653_v63 }
 0x13c   : > { %v7072_v5 = vunpack.i.h.bf16 %v7070_v27  ;;  %v7071_v9 = vunpack.i.l.bf16 %v7070_v27  ;;  %v1002_v27 = vld [vmem:[#allocation2 + $0x268] sm:$0xff] }
 0x13d   : > { %v2059_v29 = vsel %vm1941_vm1, %v2027_v15, %v7056_v54  ;;  %v2060_v45 = vsel %vm1941_vm1, %v2028_v52, %v7057_v13  ;;  %v9081_v54 = vadd.f32 %v8922_v14, %v737_v22  ;;  %v740_v52 = vmul.f32 %v6375_v23, %v8908_v57 }
 0x13e   : > { %v7065_v11 = vpop.permute.xlu0 %7064  ;;  %v1995_v19 = vsel %vm1974_vm2, %v1962_v28, %v7071_v9  ;;  %v1996_v20 = vsel %vm1974_vm2, %v1963_v0, %v7072_v5  ;;  %v741_v22 = vmul.f32 %v6376_v53, %v8908_v57 }
 0x13f   : > { %v7067_v8 = vunpack.i.h.bf16 %v7065_v11  ;;  %v7066_v56 = vunpack.i.l.bf16 %v7065_v11  ;;  %v7080_v51 = vpop.permute.xlu1 %7079  ;;  %v2133_v13 = vpack.c.bf16 %v1996_v20, %v1995_v19  ;;  %v738_v19 = vmul.f32 %v8908_v57, %v666_v49 }
 0x140   : > { %v7082_v15 = vunpack.i.h.bf16 %v7080_v51  ;;  %v7081_v5 = vunpack.i.l.bf16 %v7080_v51  ;;  %v9096_v53 = vadd.f32 %v8922_v14, %v740_v52 }
 0x141   : > { %v2091_v46 = vsel %vm1974_vm2, %v2059_v29, %v7066_v56  ;;  %v2092_v61 = vsel %vm1974_vm2, %v2060_v45, %v7067_v8  ;;  %v6379_v8 = vpop.f32.mrb[12].mxu1  ;;  %v875_v56 = vld [vmem:[#allocation2 + $0x22e] sm:$0xff]  ;;  %v739_v29 = vmul.f32 %v8908_v57, %v669_v55  ;;  %v9102_v33 = vadd.f32 %v8922_v14, %v738_v19 }
 0x142   : > { %v7075_v11 = vpop.permute.xlu0 %7074  ;;  %v2134_v6 = vpack.c.bf16 %v2092_v61, %v2091_v46  ;;  %v682_v23 = vpop.f32.mrb[13].mxu1  ;;  %v1003_v45 = vld [vmem:[#allocation2 + $0x270] sm:$0xff]  ;;  %v1931_v0 = vsel %vm310_vm0, %v874_v43, %v7081_v5  ;;  %v744_v5 = vmul.f32 %v6379_v8, %v8908_v57 }
 0x143   : > { %v7077_v28 = vunpack.i.h.bf16 %v7075_v11  ;;  %v7090_v63 = vpop.permute.xlu1 %7089  ;;  %v7076_v20 = vunpack.i.l.bf16 %v7075_v11  ;;  %v6380_v9 = vpop.f32.mrb[14].mxu1  ;;  %v1932_v11 = vsel %vm310_vm0, %v875_v56, %v7082_v15  ;;  %v9108_v49 = vadd.f32 %v8922_v14, %v739_v29 }
 0x144   : > { %2455 = vmatprep.mubr.bf16.mxu1 %v2134_v6  ;;  %v9092_v6 = vadd.f32 %v8922_v14, %v735_v25  ;;  %v7091_v17 = vunpack.i.l.bf16 %v7090_v63  ;;  %v685_v55 = vpop.f32.mrb[15].mxu1  ;;  %v9146_v4 = vpop.f32.mrb[12].mxu0 }
 0x145   : > { %2456 = vmatmul.mubr.bf16.gmra.mrb[60].mxu1 %v2133_v13  ;;  %v7092_v13 = vunpack.i.h.bf16 %v7090_v63  ;;  %v2030_v61 = vsel %vm310_vm0, %v1003_v45, %v7077_v28  ;;  %v9105_v63 = vadd.f32 %v8922_v14, %v741_v22  ;;  %v2029_v52 = vsel %vm310_vm0, %v1002_v27, %v7076_v20  ;;  %v6383_v27 = vpop.f32.mrb[16].mxu1  ;;  %10565 = vst [vmem:[#allocation18_spill] sm:$0xff] %v9146_v4 }
 0x146   : > { %v7085_v51 = vpop.permute.xlu0 %7084  ;;  %v1964_v28 = vsel %vm1941_vm1, %v1931_v0, %v7091_v17  ;;  %v745_v0 = vmul.f32 %v6380_v9, %v8908_v57  ;;  %v698_v17 = vpop.f32.mrb[17].mxu1  ;;  %v3338_v9 = vld [vmem:[#allocation2 + $0x194] sm:$0xff] }
 0x147   : > { %v7087_v46 = vunpack.i.h.bf16 %v7085_v51  ;;  %v7086_v35 = vunpack.i.l.bf16 %v7085_v51  ;;  %v7100_v25 = vpop.permute.xlu1 %7099  ;;  %v1965_v19 = vsel %vm1941_vm1, %v1932_v11, %v7092_v13 }
 0x148   : > { %v7102_v21 = vunpack.i.h.bf16 %v7100_v25  ;;  %v7101_v15 = vunpack.i.l.bf16 %v7100_v25 }
 0x149   : > { %v2061_v45 = vsel %vm1941_vm1, %v2029_v52, %v7086_v35  ;;  %v2062_v22 = vsel %vm1941_vm1, %v2030_v61, %v7087_v46  ;;  %v9124_v46 = vadd.f32 %v8922_v14, %v744_v5  ;;  %v6384_v61 = vpop.f32.mrb[18].mxu1  ;;  %v748_v5 = vmul.f32 %v6383_v27, %v8908_v57 }
 0x14a   : > { %v7095_v56 = vpop.permute.xlu0 %7094  ;;  %v1997_v29 = vsel %vm1974_vm2, %v1964_v28, %v7101_v15  ;;  %v1998_v32 = vsel %vm1974_vm2, %v1965_v19, %v7102_v21  ;;  %v743_v21 = vmul.f32 %v8908_v57, %v685_v55  ;;  %v701_v28 = vpop.f32.mrb[19].mxu1  ;;  %v877_v19 = vld [vmem:[#allocation2 + $0x24e] sm:$0xff]  ;;  %v746_v27 = vmul.f32 %v8908_v57, %v698_v17 }
 0x14b   : > { %v7097_v43 = vunpack.i.h.bf16 %v7095_v56  ;;  %v7096_v51 = vunpack.i.l.bf16 %v7095_v56  ;;  %v7110_v20 = vpop.permute.xlu1 %7109  ;;  %v742_v56 = vmul.f32 %v8908_v57, %v682_v23  ;;  %v876_v23 = vld [vmem:[#allocation2 + $0x246] sm:$0xff]  ;;  %v1005_v55 = vld [vmem:[#allocation2 + $0x290] sm:$0xff]  ;;  %v9152_v17 = vpop.f32.mrb[13].mxu0 }
 0x14c   : > { %v7112_v52 = vunpack.i.h.bf16 %v7110_v20  ;;  %v7111_v15 = vunpack.i.l.bf16 %v7110_v20  ;;  %10566 = vst [vmem:[#allocation19_spill] sm:$0xff] %v9152_v17 }
 0x14d   : > { %v2093_v25 = vsel %vm1974_vm2, %v2061_v45, %v7096_v51  ;;  %v2094_v8 = vsel %vm1974_vm2, %v2062_v22, %v7097_v43  ;;  %v2136_v51 = vpack.c.bf16 %v1998_v32, %v1997_v29  ;;  %v9133_v32 = vadd.f32 %v8922_v14, %v742_v56 }
 0x14e   : > { %v7105_v13 = vpop.permute.xlu0 %7104  ;;  %v2137_v11 = vpack.c.bf16 %v2094_v8, %v2093_v25  ;;  %v1004_v25 = vld [vmem:[#allocation2 + $0x288] sm:$0xff]  ;;  %v9136_v29 = vadd.f32 %v8922_v14, %v745_v0  ;;  %v9140_v22 = vadd.f32 %v8922_v14, %v743_v21  ;;  %v1933_v56 = vsel %vm310_vm0, %v876_v23, %v7111_v15 }
 0x14f   : > { %v7107_v8 = vunpack.i.h.bf16 %v7105_v13  ;;  %v7106_v35 = vunpack.i.l.bf16 %v7105_v13  ;;  %v7120_v20 = vpop.permute.xlu1 %7119  ;;  %v3263_v13 = vld [vmem:[#allocation2 + $0x110] sm:$0xff]  ;;  %v749_v0 = vmul.f32 %v6384_v61, %v8908_v57  ;;  %v9149_v45 = vadd.f32 %v8922_v14, %v748_v5 }
 0x150   : > { %2463 = vmatprep.mubr.bf16.mxu1 %v2137_v11  ;;  %v7121_v11 = vunpack.i.l.bf16 %v7120_v20  ;;  %v7122_v38 = vunpack.i.h.bf16 %v7120_v20  ;;  %v747_v21 = vmul.f32 %v8908_v57, %v701_v28  ;;  %v9159_v61 = vpack.i.bf16 %v3338_v9, %v8837_v44 }
 0x151   : > { %2464 = vmatmul.mubr.bf16.gmra.mrb[64].mxu1 %v2136_v51  ;;  %v1934_v51 = vsel %vm310_vm0, %v877_v19, %v7112_v52  ;;  %v2032_v52 = vsel %vm310_vm0, %v1005_v55, %v7107_v8  ;;  %v2031_v15 = vsel %vm310_vm0, %v1004_v25, %v7106_v35  ;;  %v7348_v19 = vpack.i.bf16 %v3263_v13, %v3262_v3 }
 0x152   : > { %v7115_v43 = vpop.permute.xlu0 %7114  ;;  %v1966_v57 = vsel %vm1941_vm1, %v1933_v56, %v7121_v11  ;;  %v9165_v28 = vadd.f32 %v8922_v14, %v746_v27  ;;  %v1967_v35 = vsel %vm1941_vm1, %v1934_v51, %v7122_v38  ;;  %7344 = vrot.lane.b32.xlu0 %v9159_v61, %s7907_s8  ;;  %v9174_v44 = vpack.i.bf16 %v9154_v58, %v3359_v24  ;;  %v3391_v27 = vld [vmem:[#allocation2 + $0x208] sm:$0xff] }
 0x153   : > { %v7117_v30 = vunpack.i.h.bf16 %v7115_v43  ;;  %v7116_v40 = vunpack.i.l.bf16 %v7115_v43  ;;  %v7130_v23 = vpop.permute.xlu1 %7129  ;;  %v9161_v43 = vpop.f32.mrb[14].mxu0  ;;  %7349 = vrot.lane.b32.xlu1 %v7348_v19, %s7907_s8  ;;  %v9183_v56 = vadd.f32 %v8922_v14, %v749_v0  ;;  %v9186_v24 = vadd.f32 %v8922_v14, %v747_v21  ;;  %v3264_v0 = vld [vmem:[#allocation2 + $0x128] sm:$0xff]  ;;  %v3265_v21 = vld [vmem:[#allocation2 + $0x130] sm:$0xff] }
 0x154   : > { %10567 = vst [vmem:[#allocation20_spill] sm:$0xff] %v9161_v43  ;;  %v7132_v5 = vunpack.i.h.bf16 %v7130_v23  ;;  %v7131_v20 = vunpack.i.l.bf16 %v7130_v23  ;;  %v9167_v17 = vpop.f32.mrb[15].mxu0 }
 0x155   : > { %10568 = vst [vmem:[#allocation21_spill] sm:$0xff] %v9167_v17  ;;  %v2063_v3 = vsel %vm1941_vm1, %v2031_v15, %v7116_v40  ;;  %v2064_v9 = vsel %vm1941_vm1, %v2032_v52, %v7117_v30  ;;  %v878_v40 = vld [vmem:[#allocation2 + $0x266] sm:$0xff]  ;;  %v879_v15 = vld [vmem:[#allocation2 + $0x26e] sm:$0xff] }
 0x156   : > { %v7125_v4 = vpop.permute.xlu0 %7124  ;;  %v1999_v25 = vsel %vm1974_vm2, %v1966_v57, %v7131_v20  ;;  %v2000_v11 = vsel %vm1974_vm2, %v1967_v35, %v7132_v5  ;;  %v3416_v5 = vld [vmem:[#allocation2 + $0x1b4] sm:$0xff]  ;;  %v811_v20 = vmax.f32 %v9133_v32, 0.0  ;;  %7354 = vrot.lane.b32.xlu0 %v9174_v44, %s7906_s29  ;;  %v812_v32 = vmax.f32 %v9140_v22, 0.0 }
 0x157   : > { %v7127_v55 = vunpack.i.h.bf16 %v7125_v4  ;;  %v7126_v8 = vunpack.i.l.bf16 %v7125_v4  ;;  %v3392_v4 = vld [vmem:[#allocation2 + $0x210] sm:$0xff]  ;;  %v7140_v13 = vpop.permute.xlu1 %7139  ;;  %7359 = vrot.lane.b32.xlu1 %v8835_v59, %s7906_s29  ;;  %v9209_v22 = vpack.i.bf16 %v3416_v5, %v8877_v2 }
 0x158   : > { %v7142_v30 = vunpack.i.h.bf16 %v7140_v13  ;;  %v7141_v52 = vunpack.i.l.bf16 %v7140_v13  ;;  %v1007_v57 = vld [vmem:[#allocation2 + $0x2b0] sm:$0xff]  ;;  %v9194_v14 = vpack.i.bf16 %v3392_v4, %v3391_v27  ;;  %v1006_v27 = vld [vmem:[#allocation2 + $0x2a8] sm:$0xff] }
 0x159   : > { %v2095_v38 = vsel %vm1974_vm2, %v2063_v3, %v7126_v8  ;;  %v2096_v51 = vsel %vm1974_vm2, %v2064_v9, %v7127_v55  ;;  %v2139_v8 = vpack.c.bf16 %v2000_v11, %v1999_v25  ;;  %v814_v55 = vmax.f32 %v9136_v29, 0.0  ;;  %v9196_v3 = vpop.f32.mrb[16].mxu0  ;;  %v3361_v11 = vld [vmem:[#allocation2 + $0x224] sm:$0xff]  ;;  %v9201_v13 = vld [vmem:[#allocation2 + $0x22c] sm:$0xff] }
 0x15a   : > { %v7135_v23 = vpop.permute.xlu0 %7134  ;;  %v2140_v19 = vpack.c.bf16 %v2096_v51, %v2095_v38  ;;  %10569 = vst [vmem:[#allocation22_spill] sm:$0xff] %v9196_v3  ;;  %v817_v25 = vmax.f32 %v9149_v45, 0.0  ;;  %v815_v29 = vmax.f32 %v9165_v28, 0.0  ;;  %v9203_v38 = vpop.f32.mrb[17].mxu0  ;;  %v1935_v59 = vsel %vm310_vm0, %v878_v40, %v7141_v52  ;;  %7364 = vrot.lane.b32.xlu0 %v9194_v14, %s7908_s18 }
 0x15b   : > { %v7137_v35 = vunpack.i.h.bf16 %v7135_v23  ;;  %v7136_v9 = vunpack.i.l.bf16 %v7135_v23  ;;  %10570 = vst [vmem:[#allocation23_spill] sm:$0xff] %v9203_v38  ;;  %v7150_v4 = vpop.permute.xlu1 %7149  ;;  %v818_v51 = vmax.f32 %v9183_v56, 0.0  ;;  %v816_v23 = vmax.f32 %v9186_v24, 0.0  ;;  %v9211_v45 = vpop.f32.mrb[18].mxu0  ;;  %7369 = vrot.lane.b32.xlu1 %v8844_v7, %s7908_s18 }
 0x15c   : > { %2471 = vmatprep.mubr.bf16.mxu1 %v2140_v19  ;;  %v1936_v28 = vsel %vm310_vm0, %v879_v15, %v7142_v30  ;;  %v7152_v19 = vunpack.i.h.bf16 %v7150_v4  ;;  %v7151_v3 = vunpack.i.l.bf16 %v7150_v4  ;;  %v7378_v38 = vpack.i.bf16 %v3265_v21, %v3264_v0  ;;  %v9214_v17 = vpop.f32.mrb[19].mxu0 }
 0x15d   : > { %2472 = vmatmul.mubr.bf16.gmra.mrb[68].mxu1 %v2139_v8  ;;  %v2034_v40 = vsel %vm310_vm0, %v1007_v57, %v7137_v35  ;;  %v9222_v2 = vpack.i.bf16 %v9201_v13, %v3361_v11  ;;  %v2033_v56 = vsel %vm310_vm0, %v1006_v27, %v7136_v9  ;;  %v10571_v15 = vmax.f32 %v9048_v18, 0.0 }
 0x15e   : > { %v7145_v43 = vpop.permute.xlu0 %7144  ;;  %v1968_v24 = vsel %vm1941_vm1, %v1935_v59, %v7151_v3  ;;  %v10572_v30 = vmax.f32 %v9056_v36, 0.0  ;;  %v10575_v57 = vmax.f32 %v9051_v47, 0.0  ;;  %v1969_v21 = vsel %vm1941_vm1, %v1936_v28, %v7152_v19  ;;  %7374 = vrot.lane.b32.xlu0 %v9209_v22, %s7907_s8 }
 0x15f   : > { %v7147_v52 = vunpack.i.h.bf16 %v7145_v43  ;;  %v7146_v8 = vunpack.i.l.bf16 %v7145_v43  ;;  %v10574_v43 = vmax.f32 %v9045_v48, 0.0  ;;  %v7160_v7 = vpop.permute.xlu1 %7159  ;;  %v10577_v9 = vmax.f32 %v9076_v26, 0.0  ;;  %7379 = vrot.lane.b32.xlu1 %v7378_v38, %s7907_s8 }
 0x160   : > { %v9230_v5 = vpack.c.bf16 %v10572_v30, %v10571_v15  ;;  %v10578_v3 = vmax.f32 %v9092_v6, 0.0  ;;  %v10580_v36 = vmax.f32 %v9073_v50, 0.0  ;;  %v10581_v11 = vmax.f32 %v9081_v54, 0.0  ;;  %v9262_v50 = vpop.f32.mrb[20].mxu0  ;;  %v3393_v15 = vld [vmem:[#allocation2 + $0x228] sm:$0xff]  ;;  %v3394_v30 = vld [vmem:[#allocation2 + $0x230] sm:$0xff] }
 0x161   : > { %v9236_v35 = vpack.c.bf16 %v10575_v57, %v10574_v43  ;;  %v2065_v0 = vsel %vm1941_vm1, %v2033_v56, %v7146_v8  ;;  %v7162_v47 = vunpack.i.h.bf16 %v7160_v7  ;;  %v7161_v59 = vunpack.i.l.bf16 %v7160_v7  ;;  %v9274_v43 = vpop.f32.mrb[21].mxu0 }
 0x162   : > { %10573 = vst [vmem:[#allocation24_spill] sm:$0xff] %v9230_v5  ;;  %v9244_v18 = vpack.c.bf16 %v10578_v3, %v10577_v9  ;;  %v9250_v48 = vpack.c.bf16 %v10581_v11, %v10580_v36  ;;  %v7155_v27 = vpop.permute.xlu0 %7154  ;;  %v2066_v4 = vsel %vm1941_vm1, %v2034_v40, %v7147_v52  ;;  %v10583_v8 = vmax.f32 %v9102_v33, 0.0  ;;  %7384 = vrot.lane.b32.xlu0 %v9222_v2, %s7906_s29  ;;  %v3267_v11 = vld [vmem:[#allocation2 + $0x150] sm:$0xff]  ;;  %v7781_v5 = vld [vmem:[#allocation2 + $0x108] sm:$0xff] }
 0x163   : > { %10576 = vst [vmem:[#allocation25_spill] sm:$0xff] %v9236_v35  ;;  %v10584_v28 = vmax.f32 %v9108_v49, 0.0  ;;  %v7157_v6 = vunpack.i.h.bf16 %v7155_v27  ;;  %v7156_v19 = vunpack.i.l.bf16 %v7155_v27  ;;  %v10586_v54 = vmax.f32 %v9096_v53, 0.0  ;;  %v7170_v53 = vpop.permute.xlu1 %7169  ;;  %7389 = vrot.lane.b32.xlu1 %v8875_v39, %s7906_s29  ;;  %v7731_v39 = vld [vmem:[%s10539_s2 + $0xd0] sm:$0xff]  }
 0x164   : > { %10579 = vst [vmem:[#allocation26_spill] sm:$0xff] %v9244_v18  ;;  %10582 = vst [vmem:[#allocation27_spill] sm:$0xff] %v9250_v48  ;;  %v10587_v56 = vmax.f32 %v9105_v63, 0.0  ;;  %v9270_v33 = vpack.c.bf16 %v812_v32, %v811_v20  ;;  %v2001_v49 = vsel %vm1974_vm2, %v1968_v24, %v7161_v59  ;;  %v2002_v52 = vsel %vm1974_vm2, %v1969_v21, %v7162_v47  ;;  %v9284_v32 = vpop.f32.mrb[22].mxu0  ;;  %v880_v47 = vld [vmem:[#allocation2 + $0x286] sm:$0xff]  ;;  %v881_v59 = vld [vmem:[#allocation2 + $0x28e] sm:$0xff] }
 0x165   : > { %v9257_v26 = vpack.c.bf16 %v10584_v28, %v10583_v8  ;;  %v10590_v38 = vmax.f32 %v9124_v46, 0.0  ;;  %v9280_v7 = vpack.c.bf16 %v816_v23, %v815_v29  ;;  %v2097_v63 = vsel %vm1974_vm2, %v2065_v0, %v7156_v19  ;;  %v9286_v21 = vpop.f32.mrb[23].mxu0  ;;  %v3340_v23 = vld [vmem:[#allocation2 + $0x1d4] sm:$0xff]  ;;  %v3266_v0 = vld [vmem:[#allocation2 + $0x148] sm:$0xff]  ;;  %6183 = vmatprep.subr.bf16.mxu1 %v7731_v39 }
 0x166   : > { %v9268_v40 = vpack.c.bf16 %v10587_v56, %v10586_v54  ;;  %10589 = vst [vmem:[#allocation30_spill] sm:$0xff] %v9270_v33  ;;  %v2098_v20 = vsel %vm1974_vm2, %v2066_v4, %v7157_v6  ;;  %v7165_v24 = vpop.permute.xlu0 %7164  ;;  %v9288_v3 = vpack.c.bf16 %v818_v51, %v817_v25  ;;  %v2142_v36 = vpack.c.bf16 %v2002_v52, %v2001_v49  ;;  %v3363_v8 = vld [vmem:[#allocation2 + $0x244] sm:$0xff]  ;;  %v9296_v28 = vld [vmem:[#allocation2 + $0x24c] sm:$0xff] }
 0x167   : > { %10585 = vst [vmem:[#allocation28_spill] sm:$0xff] %v9257_v26  ;;  %v9278_v57 = vpack.c.bf16 %v814_v55, %v10590_v38  ;;  %10592 = vst [vmem:[#allocation32_spill] sm:$0xff] %v9280_v7  ;;  %v2143_v9 = vpack.c.bf16 %v2098_v20, %v2097_v63  ;;  %v9294_v46 = vpack.i.bf16 %v3394_v30, %v3393_v15  ;;  %v7172_v55 = vunpack.i.h.bf16 %v7170_v53  ;;  %v7180_v27 = vpop.permute.xlu1 %7179  ;;  %v1008_v6 = vld [vmem:[#allocation2 + $0x2c8] sm:$0xff]  ;;  %v1009_v19 = vld [vmem:[#allocation2 + $0x2d0] sm:$0xff]  ;;  %v9310_v63 = vpop.f32.mrb[24].mxu0 }
 0x168   : > { %10588 = vst [vmem:[#allocation29_spill] sm:$0xff] %v9268_v40  ;;  %10593 = vst [vmem:[#allocation33_spill] sm:$0xff] %v9288_v3  ;;  %v7171_v29 = vunpack.i.l.bf16 %v7170_v53  ;;  %v7167_v25 = vunpack.i.h.bf16 %v7165_v24  ;;  %v7166_v51 = vunpack.i.l.bf16 %v7165_v24  ;;  %v7182_v54 = vunpack.i.h.bf16 %v7180_v27  ;;  %7399 = vrot.lane.b32.xlu1 %v8881_v1, %s7908_s18  ;;  %v3395_v39 = vld [vmem:[#allocation2 + $0x248] sm:$0xff]  ;;  %v10603_v33 = vld [vmem:[#allocation14_spill] sm:$0xff] }
 0x169   : > { %10591 = vst [vmem:[#allocation31_spill] sm:$0xff] %v9278_v57  ;;  %2479 = vmatprep.mubr.bf16.mxu1 %v2143_v9  ;;  %v7181_v56 = vunpack.i.l.bf16 %v7180_v27  ;;  %7394 = vrot.lane.b32.xlu0 %v9294_v46, %s7908_s18  ;;  %v9306_v49 = vpack.i.bf16 %v3340_v23, %v8924_v60  ;;  %v7408_v52 = vpack.i.bf16 %v3267_v11, %v3266_v0  ;;  %v9315_v9 = vpop.f32.mrb[25].mxu0  ;;  %v7776_v3 = vld [vmem:[#allocation2 + $0x2e8] sm:$0xff] }
 0x16a   : > { %2480 = vmatmul.mubr.bf16.gmra.mrb[72].mxu1 %v2142_v36  ;;  %v7175_v4 = vpop.permute.xlu0 %7174  ;;  %v1938_v15 = vsel %vm310_vm0, %v881_v59, %v7172_v55  ;;  %v1937_v30 = vsel %vm310_vm0, %v880_v47, %v7171_v29  ;;  %v9313_v24 = vpack.i.bf16 %v9296_v28, %v3363_v8  ;;  %v2036_v1 = vsel %vm310_vm0, %v1009_v19, %v7167_v25  ;;  %v9319_v0 = vpop.f32.mrb[26].mxu0 }
 0x16b   : > { %v7177_v38 = vunpack.i.h.bf16 %v7175_v4  ;;  %v7176_v53 = vunpack.i.l.bf16 %v7175_v4  ;;  %v7190_v20 = vpop.permute.xlu1 %7189  ;;  %v2035_v60 = vsel %vm310_vm0, %v1008_v6, %v7166_v51  ;;  %v1970_v47 = vsel %vm1941_vm1, %v1937_v30, %v7181_v56  ;;  %v9326_v27 = vpop.f32.mrb[27].mxu0  ;;  %v3396_v6 = vld [vmem:[#allocation2 + $0x250] sm:$0xff] }
 0x16c   : > { %v7192_v36 = vunpack.i.h.bf16 %v7190_v20  ;;  %v7191_v23 = vunpack.i.l.bf16 %v7190_v20  ;;  %v1971_v59 = vsel %vm1941_vm1, %v1938_v15, %v7182_v54  ;;  %7409 = vrot.lane.b32.xlu1 %v7408_v52, %s7907_s8  ;;  %v7732_v52 = vld [vmem:[%s10539_s2 + $0x90] sm:$0xff]  }
 0x16d   : > { %7404 = vrot.lane.b32.xlu0 %v9306_v49, %s7907_s8  ;;  %v2067_v25 = vsel %vm1941_vm1, %v2035_v60, %v7176_v53  ;;  %v2068_v51 = vsel %vm1941_vm1, %v2036_v1, %v7177_v38  ;;  %v9341_v38 = vpack.i.bf16 %v3396_v6, %v3395_v39  ;;  %v3341_v60 = vld [vmem:[#allocation2 + $0x1f4] sm:$0xff]  ;;  %6184 = vmatpush3.bf16.msra.mxu1 %v7732_v52 }
 0x16e   : > { %v7185_v55 = vpop.permute.xlu0 %7184  ;;  %v2003_v4 = vsel %vm1974_vm2, %v1970_v47, %v7191_v23  ;;  %v2004_v8 = vsel %vm1974_vm2, %v1971_v59, %v7192_v36  ;;  %v3268_v36 = vld [vmem:[#allocation2 + $0x168] sm:$0xff]  ;;  %v3269_v23 = vld [vmem:[#allocation2 + $0x170] sm:$0xff]  ;;  %v9350_v39 = vpack.i.bf16 %v3341_v60, %v8990_v10 }
 0x16f   : > { %v7187_v29 = vunpack.i.h.bf16 %v7185_v55  ;;  %v7186_v11 = vunpack.i.l.bf16 %v7185_v55  ;;  %v7200_v19 = vpop.permute.xlu1 %7199  ;;  %v2145_v53 = vpack.c.bf16 %v2004_v8, %v2003_v4  ;;  %v882_v55 = vld [vmem:[#allocation2 + $0x2a6] sm:$0xff]  ;;  %v7438_v6 = vpack.i.bf16 %v3269_v23, %v3268_v36 }
 0x170   : > { %7419 = vrot.lane.b32.xlu1 %v8917_v37, %s7906_s29  ;;  %v7202_v20 = vunpack.i.h.bf16 %v7200_v19  ;;  %v7201_v1 = vunpack.i.l.bf16 %v7200_v19  ;;  %v9343_v4 = vld [vmem:[#allocation2 + $0x26c] sm:$0xff] }
 0x171   : > { %v2099_v54 = vsel %vm1974_vm2, %v2067_v25, %v7186_v11  ;;  %v2100_v56 = vsel %vm1974_vm2, %v2068_v51, %v7187_v29  ;;  %7414 = vrot.lane.b32.xlu0 %v9313_v24, %s7906_s29  ;;  %v883_v29 = vld [vmem:[#allocation2 + $0x2ae] sm:$0xff]  ;;  %v3365_v51 = vld [vmem:[#allocation2 + $0x264] sm:$0xff] }
 0x172   : > { %v7195_v15 = vpop.permute.xlu0 %7194  ;;  %v2146_v30 = vpack.c.bf16 %v2100_v56, %v2099_v54  ;;  %v1940_v19 = vsel %vm310_vm0, %v883_v29, %v7202_v20  ;;  %v1939_v54 = vsel %vm310_vm0, %v882_v55, %v7201_v1  ;;  %v9355_v52 = vpack.i.bf16 %v9343_v4, %v3365_v51  ;;  %v3397_v55 = vld [vmem:[#allocation2 + $0x268] sm:$0xff]  ;;  %v7733_v51 = vld [vmem:[%s10539_s2 + $0xd8] sm:$0xff]  }
 0x173   : > { %v7210_v11 = vpop.permute.xlu1 %7209  ;;  %v7197_v47 = vunpack.i.h.bf16 %v7195_v15  ;;  %v7196_v59 = vunpack.i.l.bf16 %v7195_v15  ;;  %6185 = vmatprep.subr.bf16.mxu1 %v7733_v51  ;;  %v3400_v51 = vld [vmem:[#allocation2 + $0x290] sm:$0xff] }
 0x174   : > { %2487 = vmatprep.mubr.bf16.mxu1 %v2146_v30  ;;  %v7212_v37 = vunpack.i.h.bf16 %v7210_v11  ;;  %v7211_v8 = vunpack.i.l.bf16 %v7210_v11  ;;  %7429 = vrot.lane.b32.xlu1 %v8944_v16, %s7908_s18 }
 0x175   : > { %2488 = vmatmul.mubr.bf16.gmra.mrb[76].mxu1 %v2145_v53  ;;  %7424 = vrot.lane.b32.xlu0 %v9341_v38, %s7908_s18  ;;  %v7775_v53 = vld [vmem:[#allocation2 + $0x2f0] sm:$0xff]  ;;  %v2037_v16 = vsel %vm310_vm0, %v7776_v3, %v7196_v59 }
 0x176   : > { %v7205_v25 = vpop.permute.xlu0 %7204  ;;  %v2038_v11 = vsel %vm310_vm0, %v7775_v53, %v7197_v47  ;;  %v1972_v20 = vsel %vm1941_vm1, %v1939_v54, %v7211_v8  ;;  %v1973_v1 = vsel %vm1941_vm1, %v1940_v19, %v7212_v37  ;;  %v7734_v37 = vld [vmem:[%s10539_s2 + $0x98] sm:$0xff]   ;;  %v7777_v53 = vld [vmem:[%s10542_s5] ss:$0 sm:$0xff] }
 0x177   : > { %v7207_v56 = vunpack.i.h.bf16 %v7205_v25  ;;  %v7206_v15 = vunpack.i.l.bf16 %v7205_v25  ;;  %v7220_v30 = vpop.permute.xlu1 %7219  ;;  %v3398_v25 = vld [vmem:[#allocation2 + $0x270] sm:$0xff]  ;;  %6186 = vmatpush3.bf16.msra.mxu1 %v7734_v37 }
 0x178   : > { %v7222_v7 = vunpack.i.h.bf16 %v7220_v30  ;;  %v7221_v10 = vunpack.i.l.bf16 %v7220_v30  ;;  %7439 = vrot.lane.b32.xlu1 %v7438_v6, %s7907_s8  ;;  %v3342_v30 = vld [vmem:[#allocation2 + $0x214] sm:$0xff] }
 0x179   : > { %7434 = vrot.lane.b32.xlu0 %v9350_v39, %s7907_s8  ;;  %v2069_v29 = vsel %vm1941_vm1, %v2037_v16, %v7206_v15  ;;  %v2070_v47 = vsel %vm1941_vm1, %v2038_v11, %v7207_v56  ;;  %v718_v11 = vmul.f32 %v7777_v53, %v8912_v42  ;;  %v719_v16 = vmul.f32 %v7777_v53, %v8927_v62  ;;  %v7778_v42 = vld [vmem:[%s10543_s6] ss:$0 sm:$0xff] }
 0x17a   : > { %v7215_v60 = vpop.permute.xlu0 %7214  ;;  %v2005_v3 = vsel %vm1974_vm2, %v1972_v20, %v7221_v10  ;;  %v2006_v59 = vsel %vm1974_vm2, %v1973_v1, %v7222_v7  ;;  %v7453_v7 = vpack.i.bf16 %v3398_v25, %v3397_v55  ;;  %v3399_v25 = vld [vmem:[#allocation2 + $0x288] sm:$0xff] }
 0x17b   : > { %v7217_v36 = vunpack.i.h.bf16 %v7215_v60  ;;  %v7216_v23 = vunpack.i.l.bf16 %v7215_v60  ;;  %v2148_v56 = vpack.c.bf16 %v2006_v59, %v2005_v3  ;;  %v9382_v15 = vpop.permute.xlu1 %7229  ;;  %v3367_v60 = vld [vmem:[#allocation2 + $0x284] sm:$0xff]  ;;  %v755_v62 = vadd.f32 %v7778_v42, %v718_v11  ;;  %v10598_v3 = vld [vmem:[#allocation9_spill] sm:$0xff] }
 0x17c   : > { %7449 = vrot.lane.b32.xlu1 %v8988_v31, %s7906_s29  ;;  %v9393_v31 = vpack.i.bf16 %v3342_v30, %v9154_v58  ;;  %v756_v20 = vadd.f32 %v7778_v42, %v719_v16  ;;  %v722_v59 = vmul.f32 %v7777_v53, %v10598_v3 }
 0x17d   : > { %v2101_v8 = vsel %vm1974_vm2, %v2069_v29, %v7216_v23  ;;  %v2102_v6 = vsel %vm1974_vm2, %v2070_v47, %v7217_v36  ;;  %7444 = vrot.lane.b32.xlu0 %v9355_v52, %s7906_s29  ;;  %v9397_v36 = vld [vmem:[#allocation2 + $0x28c] sm:$0xff]  ;;  %v9399_v23 = vpop.f32.mrb[28].mxu0  ;;  %v724_v47 = vmul.f32 %v7777_v53, %v8958_v34  ;;  %v787_v37 = vmax.f32 %v755_v62, 0.0  ;;  %v7735_v62 = vld [vmem:[%s10539_s2 + $0xe0] sm:$0xff]  }
 0x17e   : > { %v2149_v19 = vpack.c.bf16 %v2102_v6, %v2101_v8  ;;  %v9376_v54 = vpop.permute.xlu0 %7224  ;;  %10594 = vst [vmem:[#allocation34_spill] sm:$0xff] %v9399_v23  ;;  %v9406_v55 = vpop.f32.mrb[29].mxu0  ;;  %v9415_v58 = vpack.i.bf16 %v9397_v36, %v3367_v60  ;;  %v788_v8 = vmax.f32 %v756_v20, 0.0  ;;  %v10599_v6 = vld [vmem:[#allocation10_spill] sm:$0xff]  ;;  %v759_v16 = vadd.f32 %v7778_v42, %v722_v59  ;;  %v3343_v60 = vld [vmem:[#allocation2 + $0x234] sm:$0xff]  ;;  %6187 = vmatprep.subr.bf16.mxu1 %v7735_v62  ;;  %v10604_v62 = vld [vmem:[#allocation15_spill] sm:$0xff] }
 0x17f   : > { %v9404_v1 = vpop.permute.xlu1 %7239  ;;  %10595 = vst [vmem:[#allocation35_spill] sm:$0xff] %v9406_v55  ;;  %v761_v11 = vadd.f32 %v7778_v42, %v724_v47  ;;  %v7736_v20 = vld [vmem:[%s10539_s2 + $0xa0] sm:$0xff]   ;;  %v729_v40 = vmul.f32 %v7777_v53, %v10604_v62 }
 0x180   : > { %2495 = vmatprep.mubr.bf16.mxu1 %v2149_v19  ;;  %7459 = vrot.lane.b32.xlu1 %v8996_v41, %s7908_s18  ;;  %v9408_v41 = vpop.f32.mrb[30].mxu0  ;;  %v725_v19 = vmul.f32 %v7777_v53, %v10599_v6 }
 0x181   : > { %2496 = vmatmul.mubr.bf16.gmra.mrb[80].mxu1 %v2148_v56  ;;  %7454 = vrot.lane.b32.xlu0 %v7453_v7, %s7908_s18  ;;  %10596 = vst [vmem:[#allocation36_spill] sm:$0xff] %v9408_v41  ;;  %v9417_v29 = vpop.f32.mrb[31].mxu0  ;;  %v10600_v56 = vld [vmem:[#allocation11_spill] sm:$0xff]  ;;  %v793_v59 = vmax.f32 %v761_v11, 0.0  ;;  %v766_v62 = vadd.f32 %v7778_v42, %v729_v40  ;;  %v7231_v40 = vunpack.i.l.bf16 %v9382_v15  ;;  %v3346_v41 = vld [vmem:[#allocation2 + $0x294] sm:$0xff] }
 0x182   : > { %v9395_v10 = vpop.permute.xlu0 %7234  ;;  %10597 = vst [vmem:[#allocation37_spill] sm:$0xff] %v9417_v29  ;;  %v723_v7 = vmul.f32 %v7777_v53, %v10600_v56  ;;  %v762_v3 = vadd.f32 %v7778_v42, %v725_v19  ;;  %v9437_v56 = vpack.c.bf16 %v788_v8, %v787_v37  ;;  %v726_v19 = vmul.f32 %v7777_v53, %v10603_v33  ;;  %v9449_v37 = vld [vmem:[#allocation2 + $0x2ac] sm:$0xff] }
 0x183   : > { %v9429_v34 = vpop.permute.xlu1 %7249  ;;  %6188 = vmatpush3.bf16.msra.mxu1 %v7736_v20  ;;  %v7737_v11 = vld [vmem:[%s10539_s2 + $0xe8] sm:$0xff]  }
 0x184   : > { %7469 = vrot.lane.b32.xlu1 %v8854_v12, %s7907_s8  ;;  %v7483_v12 = vpack.i.bf16 %v3400_v51, %v3399_v25  ;;  %v760_v6 = vadd.f32 %v7778_v42, %v723_v7  ;;  %10601 = vst [vmem:[#allocation9_spill] sm:$0xff] %v9437_v56  ;;  %v791_v25 = vmax.f32 %v759_v16, 0.0  ;;  %v10602_v51 = vld [vmem:[#allocation13_spill] sm:$0xff]  ;;  %v3369_v7 = vld [vmem:[#allocation2 + $0x2a4] sm:$0xff]  ;;  %v794_v8 = vmax.f32 %v762_v3, 0.0  ;;  %6189 = vmatprep.subr.bf16.mxu1 %v7737_v11 }
 0x185   : > { %7464 = vrot.lane.b32.xlu0 %v9393_v31, %s7907_s8  ;;  %v728_v57 = vmul.f32 %v7777_v53, %v10602_v51  ;;  %v7738_v33 = vld [vmem:[%s10539_s2 + $0xa8] sm:$0xff]   ;;  %v763_v20 = vadd.f32 %v7778_v42, %v726_v19  ;;  %v7739_v51 = vld [vmem:[%s10539_s2 + $0xf0] sm:$0xff]   ;;  %v7227_v11 = vunpack.i.h.bf16 %v9376_v54 }
 0x186   : > { %v9423_v30 = vpop.permute.xlu0 %7244  ;;  %v10606_v16 = vld [vmem:[#allocation7_spill] sm:$0xff] }
 0x187   : > { %v3401_v3 = vld [vmem:[#allocation2 + $0x2a8] sm:$0xff]  ;;  %6190 = vmatpush3.bf16.msra.mxu1 %v7738_v33  ;;  %v795_v33 = vmax.f32 %v763_v20, 0.0 }
 0x188   : > { %7479 = vrot.lane.b32.xlu1 %v9159_v61, %s7906_s29  ;;  %v9443_v61 = vpack.i.bf16 %v3343_v60, %v9201_v13  ;;  %v9453_v13 = vpop.permute.xlu1 %7259  ;;  %v9466_v60 = vpack.i.bf16 %v9449_v37, %v3369_v7  ;;  %6191 = vmatprep.subr.bf16.mxu1 %v7739_v51  ;;  %v798_v51 = vmax.f32 %v766_v62, 0.0 }
 0x189   : > { %7474 = vrot.lane.b32.xlu0 %v9415_v58, %s7906_s29 }
 0x18a   : > { %v9445_v47 = vpop.permute.xlu0 %7254 }
 0x18c   : > { %7489 = vrot.lane.b32.xlu1 %v9174_v44, %s7908_s18  ;;  %v10605_v44 = vld [vmem:[#allocation16_spill] sm:$0xff]  ;;  %v9486_v19 = vpop.permute.xlu1 %7269 }
 0x18d   : > { %7484 = vrot.lane.b32.xlu0 %v7483_v12, %s7908_s18  ;;  %v792_v12 = vmax.f32 %v760_v6, 0.0  ;;  %v727_v26 = vmul.f32 %v7777_v53, %v10605_v44  ;;  %v765_v53 = vadd.f32 %v7778_v42, %v728_v57  ;;  %v3402_v6 = vld [vmem:[#allocation2 + $0x2b0] sm:$0xff]  ;;  %v9478_v57 = vpack.c.bf16 %v794_v8, %v793_v59  ;;  %v3222_v59 = vld [vmem:[#allocation2 + $0x84] sm:$0xff] }
 0x18e   : > { %v9471_v48 = vpop.permute.xlu0 %7264  ;;  %v9490_v8 = vld [vmem:[#allocation2 + $0x254] sm:$0xff] }
 0x18f   : > { %v764_v44 = vadd.f32 %v7778_v42, %v727_v26  ;;  %v9476_v7 = vpack.c.bf16 %v792_v12, %v791_v25  ;;  %10608 = vst [vmem:[#allocation11_spill] sm:$0xff] %v9478_v57  ;;  %v7232_v26 = vunpack.i.h.bf16 %v9382_v15  ;;  %v7513_v42 = vpack.i.bf16 %v3402_v6, %v3401_v3  ;;  %v7779_v6 = vld [vmem:[#allocation2 + $0x8c] sm:$0xff] }
 0x190   : > { %7499 = vrot.lane.b32.xlu1 %v10606_v16, %s7907_s8  ;;  %v7740_v16 = vld [vmem:[%s10539_s2 + $0xb0] sm:$0xff]   ;;  %v7226_v25 = vunpack.i.l.bf16 %v9376_v54  ;;  %v797_v12 = vmax.f32 %v765_v53, 0.0  ;;  %v7242_v15 = vunpack.i.h.bf16 %v9404_v1  ;;  %v7241_v3 = vunpack.i.l.bf16 %v9404_v1  ;;  %v7742_v54 = vld [vmem:[%s10539_s2 + $0xb8] sm:$0xff]  }
 0x191   : > { %7494 = vrot.lane.b32.xlu0 %v9443_v61, %s7907_s8  ;;  %10607 = vst [vmem:[#allocation10_spill] sm:$0xff] %v9476_v7  ;;  %v796_v18 = vmax.f32 %v764_v44, 0.0  ;;  %6192 = vmatpush3.bf16.msra.mxu1 %v7740_v16  ;;  %v4184_v35 = vsel %vm310_vm0, %v7779_v6, %v7232_v26  ;;  %v4183_v53 = vsel %vm310_vm0, %v3222_v59, %v7231_v40  ;;  %v7780_v44 = vld [vmem:[#allocation2 + $0x110] sm:$0xff]  ;;  %v7237_v40 = vunpack.i.h.bf16 %v9395_v10  ;;  %v3371_v59 = vld [vmem:[#allocation2 + $0x2c4] sm:$0xff]  ;;  %v9521_v7 = vpop.permute.xlu1 %7279 }
 0x192   : > { %v7523_v20 = vpack.i.bf16 %v9490_v8, %v9296_v28  ;;  %v9507_v62 = vpop.permute.xlu0 %7274  ;;  %v4280_v16 = vsel %vm310_vm0, %v7780_v44, %v7227_v11  ;;  %v4279_v26 = vsel %vm310_vm0, %v7781_v5, %v7226_v25  ;;  %v9515_v6 = vld [vmem:[#allocation2 + $0x2cc] sm:$0xff]  ;;  %v7252_v28 = vunpack.i.h.bf16 %v9429_v34  ;;  %v7743_v5 = vld [vmem:[%s10539_s2 + $0x100] sm:$0xff]  }
 0x193   : > { %v7251_v57 = vunpack.i.l.bf16 %v9429_v34  ;;  %v9530_v25 = vpack.c.bf16 %v798_v51, %v797_v12  ;;  %v4216_v44 = vsel %vm1941_vm1, %v4184_v35, %v7242_v15  ;;  %v7744_v34 = vld [vmem:[%s10539_s2 + $0xc0] sm:$0xff]   ;;  %v7246_v12 = vunpack.i.l.bf16 %v9423_v30  ;;  %v3403_v15 = vld [vmem:[#allocation2 + $0x2c8] sm:$0xff] }
 0x194   : > { %7509 = vrot.lane.b32.xlu1 %v9209_v22, %s7906_s29  ;;  %v7741_v22 = vld [vmem:[%s10539_s2 + $0xf8] sm:$0xff]   ;;  %v4312_v51 = vsel %vm1941_vm1, %v4280_v16, %v7237_v40 }
 0x195   : > { %7504 = vrot.lane.b32.xlu0 %v9466_v60, %s7906_s29  ;;  %6193 = vmatprep.subr.bf16.mxu1 %v7741_v22  ;;  %10613 = vst [vmem:[#allocation7_spill] sm:$0xff] %v9530_v25  ;;  %v4215_v22 = vsel %vm1941_vm1, %v4183_v53, %v7241_v3  ;;  %v3404_v3 = vld [vmem:[#allocation2 + $0x2d0] sm:$0xff]  ;;  %v9563_v40 = vpop.permute.xlu1 %7289 }
 0x196   : > { %6194 = vmatpush3.bf16.msra.mxu1 %v7742_v54  ;;  %v10615_v54 = vld [vmem:[#allocation8_spill] sm:$0xff]  ;;  %v4247_v53 = vsel %vm1974_vm2, %v4215_v22, %v7251_v57  ;;  %v9551_v25 = vpop.permute.xlu0 %7284  ;;  %v7543_v57 = vpack.i.bf16 %v3404_v3, %v3403_v15  ;;  %v7256_v15 = vunpack.i.l.bf16 %v9445_v47  ;;  %v10617_v3 = vmov 0.0  }
 0x197   : > { %6195 = vmatprep.subr.bf16.mxu1 %v7743_v5  ;;  %v7287_v29 = vunpack.i.h.bf16 %v9551_v25  ;;  %v7292_v55 = vunpack.i.h.bf16 %v9563_v40 }
 0x198   : > { %7519 = vrot.lane.b32.xlu1 %v9222_v2, %s7908_s18 }
 0x199   : > { %7514 = vrot.lane.b32.xlu0 %v7513_v42, %s7908_s18  ;;  %v7236_v42 = vunpack.i.l.bf16 %v9395_v10  ;;  %v9528_v10 = vpack.c.bf16 %v796_v18, %v795_v33  ;;  %v7247_v18 = vunpack.i.h.bf16 %v9423_v30  ;;  %v9545_v33 = vpack.i.bf16 %v9515_v6, %v3371_v59  ;;  %v7745_v30 = vld [vmem:[%s10539_s2 + $0x108] sm:$0xff]  }
 0x19a   : > { %v9509_v1 = vpop.f32.mrb[32].mxu0  ;;  %6196 = vmatpush3.bf16.msra.mxu1 %v7744_v34  ;;  %v9567_v34 = vld [vmem:[#allocation2 + $0x274] sm:$0xff] }
 0x19b   : > { %10609 = vst [vmem:[#allocation13_spill] sm:$0xff] %v9509_v1  ;;  %v9517_v2 = vpop.f32.mrb[33].mxu0  ;;  %10612 = vst [vmem:[#allocation16_spill] sm:$0xff] %v9528_v10  ;;  %v4311_v35 = vsel %vm1941_vm1, %v4279_v26, %v7236_v42  ;;  %v7746_v26 = vld [vmem:[%s10539_s2 + $0xc8] sm:$0xff]   ;;  %6197 = vmatprep.subr.bf16.mxu1 %v7745_v30  ;;  %v7262_v30 = vunpack.i.h.bf16 %v9453_v13 }
 0x19c   : > { %10610 = vst [vmem:[#allocation14_spill] sm:$0xff] %v9517_v2  ;;  %v9523_v11 = vpop.f32.mrb[34].mxu0  ;;  %7529 = vrot.lane.b32.xlu1 %v10615_v54, %s7907_s8  ;;  %v4343_v42 = vsel %vm1974_vm2, %v4311_v35, %v7246_v12  ;;  %v7784_v1 = vld [vmem:[#allocation2 + $0xac] sm:$0xff] }
 0x19d   : > { %10611 = vst [vmem:[#allocation15_spill] sm:$0xff] %v9523_v11  ;;  %v9534_v56 = vpop.f32.mrb[35].mxu0  ;;  %7524 = vrot.lane.b32.xlu0 %v7523_v20, %s7907_s8  ;;  %v4248_v20 = vsel %vm1974_vm2, %v4216_v44, %v7252_v28  ;;  %v4344_v28 = vsel %vm1974_vm2, %v4312_v51, %v7247_v18  ;;  %v9572_v11 = vld [vmem:[%s10542_s5 + $0x1] ss:$0 sm:$0xff]  ;;  %v10616_v18 = vld [vmem:[#allocation19_spill] sm:$0xff]  ;;  %v7261_v51 = vunpack.i.l.bf16 %v9453_v13 }
 0x19e   : > { %10614 = vst [vmem:[#allocation38_spill] sm:$0xff] %v9534_v56  ;;  %v4375_v44 = vpack.c.bf16 %v4248_v20, %v4247_v53  ;;  %v4376_v54 = vpack.c.bf16 %v4344_v28, %v4343_v42  ;;  %6198 = vmatpush3.bf16.msra.mxu1 %v7746_v26  ;;  %v9582_v53 = vld [vmem:[%s10543_s6 + $0x1] ss:$0 sm:$0xff]  ;;  %v3224_v20 = vld [vmem:[#allocation2 + $0xa4] sm:$0xff]  ;;  %v10618_v26 = vld [vmem:[#allocation21_spill] sm:$0xff]  ;;  %v7267_v42 = vunpack.i.h.bf16 %v9471_v48  ;;  %v7266_v28 = vunpack.i.l.bf16 %v9471_v48 }
 0x19f   : > { %6601 = vmatprep.subr.bf16.mxu1 %v10617_v3  ;;  %v9596_v13 = vld [vmem:[#allocation2 + $0x2ec] sm:$0xff]  ;;  %v4185_v48 = vsel %vm310_vm0, %v3224_v20, %v7261_v51 }
 0x1a0   : > { %v6021_v59 = vpop.f32.mrb[20].mxu1  ;;  %7539 = vrot.lane.b32.xlu1 %v9306_v49, %s7906_s29  ;;  %v7257_v49 = vunpack.i.h.bf16 %v9445_v47  ;;  %4648 = vmatprep.mubr.bf16.mxu1 %v4376_v54  ;;  %v7553_v47 = vpack.i.bf16 %v9567_v34, %v9343_v4  ;;  %v7271_v54 = vunpack.i.l.bf16 %v9486_v19 }
 0x1a1   : > { %v6022_v16 = vpop.f32.mrb[21].mxu1  ;;  %7534 = vrot.lane.b32.xlu0 %v9545_v33, %s7906_s29  ;;  %4649 = vmatmul.mubr.bf16.vlgmr.msra.gmra.mrb[84].mxu1 %v4375_v44  ;;  %v4186_v44 = vsel %vm310_vm0, %v7784_v1, %v7262_v30  ;;  %v3405_v1 = vld [vmem:[#allocation2 + $0x2e8] sm:$0xff]  ;;  %v3406_v30 = vld [vmem:[#allocation2 + $0x2f0] sm:$0xff] }
 0x1a2   : > { %v6023_v5 = vadd.f32 %v6022_v16, %v6021_v59  ;;  %v6024_v22 = vpop.f32.mrb[22].mxu1 }
 0x1a3   : > { %v6025_v10 = vpop.f32.mrb[23].mxu1 }
 0x1a4   : > { %v6026_v12 = vadd.f32 %v6025_v10, %v6024_v22  ;;  %v2539_v35 = vadd.f32 %v6023_v5, %v10616_v18  ;;  %7549 = vrot.lane.b32.xlu1 %v9313_v24, %s7908_s18  ;;  %v9590_v10 = vpop.permute.xlu0 %7294  ;;  %v3373_v5 = vld [vmem:[#allocation2 + $0x2e4] sm:$0xff]  ;;  %v9601_v18 = vpop.permute.xlu1 %7299 }
 0x1a5   : > { %7544 = vrot.lane.b32.xlu0 %v7543_v57, %s7908_s18  ;;  %v7782_v57 = vld [vmem:[#allocation2 + $0x130] sm:$0xff]  ;;  %v7783_v22 = vld [vmem:[#allocation2 + $0x128] sm:$0xff] }
 0x1a6   : > { %v2670_v59 = vmul.f32 %v9572_v11, %v2539_v35  ;;  %v2542_v16 = vadd.f32 %v6026_v12, %v10618_v26  ;;  %v4282_v24 = vsel %vm310_vm0, %v7782_v57, %v7257_v49  ;;  %v4281_v4 = vsel %vm310_vm0, %v7783_v22, %v7256_v15  ;;  %v10619_v49 = vld [vmem:[#allocation17_spill] sm:$0xff] }
 0x1a7   : > { %v7272_v26 = vunpack.i.h.bf16 %v9486_v19  ;;  %v7277_v15 = vunpack.i.h.bf16 %v9507_v62  ;;  %v7276_v57 = vunpack.i.l.bf16 %v9507_v62  ;;  %v4313_v19 = vsel %vm1941_vm1, %v4281_v4, %v7266_v28 }
 0x1a8   : > { %v2707_v12 = vadd.f32 %v9582_v53, %v2670_v59  ;;  %v2671_v35 = vmul.f32 %v9572_v11, %v2542_v16  ;;  %7559 = vrot.lane.b32.xlu1 %v10619_v49, %s7907_s8  ;;  %v9614_v59 = vpack.i.bf16 %v9596_v13, %v3373_v5  ;;  %v4314_v20 = vsel %vm1941_vm1, %v4282_v24, %v7267_v42 }
 0x1a9   : > { %7554 = vrot.lane.b32.xlu0 %v7553_v47, %s7907_s8  ;;  %v9622_v47 = vld [vmem:[%s10541_s4] sm:$0xff]   ;;  %v4217_v62 = vsel %vm1941_vm1, %v4185_v48, %v7271_v54  ;;  %v7282_v5 = vunpack.i.h.bf16 %v9521_v7  ;;  %v7281_v49 = vunpack.i.l.bf16 %v9521_v7  ;;  %v4218_v24 = vsel %vm1941_vm1, %v4186_v44, %v7272_v26  ;;  %v9636_v48 = vpop.permute.xlu1 %7309 }
 0x1aa   : > { %v2708_v16 = vadd.f32 %v9582_v53, %v2671_v35  ;;  %v9627_v35 = vpop.permute.xlu0 %7304  ;;  %v2739_v56 = vmax.f32 %v2707_v12, 0.0  ;;  %6469 = vmatprep.subr.bf16.mxu0 %v9622_v47  ;;  %v7286_v54 = vunpack.i.l.bf16 %v9551_v25  ;;  %v7573_v7 = vpack.i.bf16 %v3406_v30, %v3405_v1 }
 0x1ab   : > { %v4345_v12 = vsel %vm1974_vm2, %v4313_v19, %v7276_v57  ;;  %v4249_v1 = vsel %vm1974_vm2, %v4217_v62, %v7281_v49  ;;  %v4250_v30 = vsel %vm1974_vm2, %v4218_v24, %v7282_v5  ;;  %v10621_v19 = vld [vmem:[#allocation20_spill] sm:$0xff]  ;;  %v7296_v62 = vunpack.i.l.bf16 %v9590_v10 }
 0x1ac   : > { %v6027_v51 = vpop.f32.mrb[24].mxu1  ;;  %v2740_v28 = vmax.f32 %v2708_v16, 0.0  ;;  %7569 = vrot.lane.b32.xlu1 %v9350_v39, %s7906_s29  ;;  %v4346_v16 = vsel %vm1974_vm2, %v4314_v20, %v7277_v15  ;;  %v9643_v39 = vld [vmem:[#allocation2 + $0x304] sm:$0xff]  ;;  %v4378_v25 = vpack.c.bf16 %v4250_v30, %v4249_v1  ;;  %v7583_v5 = vpack.i.bf16 %v3346_v41, %v9397_v36 }
 0x1ad   : > { %v6028_v22 = vpop.f32.mrb[25].mxu1  ;;  %7564 = vrot.lane.b32.xlu0 %v9614_v59, %s7906_s29  ;;  %v4379_v23 = vpack.c.bf16 %v4346_v16, %v4345_v12  ;;  %v9650_v20 = vld [vmem:[#allocation2 + $0x308] sm:$0xff]  ;;  %v7301_v36 = vunpack.i.l.bf16 %v9601_v18 }
 0x1ae   : > { %v6029_v4 = vadd.f32 %v6028_v22, %v6027_v51  ;;  %v6030_v42 = vpop.f32.mrb[26].mxu1  ;;  %v10620_v51 = vld [vmem:[#allocation18_spill] sm:$0xff]  ;;  %v2771_v22 = vpack.c.bf16 %v2740_v28, %v2739_v56  ;;  %v3376_v56 = vld [vmem:[#allocation2 + $0x30c] sm:$0xff]  ;;  %v9659_v49 = vpop.permute.xlu0 %7314 }
 0x1af   : > { %v6031_v2 = vpop.f32.mrb[27].mxu1  ;;  %v9652_v28 = vld [vmem:[#allocation2 + $0x310] sm:$0xff]  ;;  %4656 = vmatprep.mubr.bf16.mxu1 %v4379_v23  ;;  %v7785_v23 = vld [vmem:[#allocation2 + $0x148] sm:$0xff]  ;;  %v7593_v41 = vpack.i.bf16 %v3376_v56, %v9643_v39  ;;  %v7306_v56 = vunpack.i.l.bf16 %v9627_v35 }
 0x1b0   : > { %v2547_v26 = vadd.f32 %v10620_v51, %v6029_v4  ;;  %v6032_v44 = vadd.f32 %v6031_v2, %v6030_v42  ;;  %6437 = vmatprep.mubr.bf16.mxu0 %v2771_v22  ;;  %v7291_v2 = vunpack.i.l.bf16 %v9563_v40  ;;  %v3226_v4 = vld [vmem:[#allocation2 + $0xc4] sm:$0xff]  ;;  %7579 = vrot.lane.b32.xlu1 %v9355_v52, %s7908_s18  ;;  %v9661_v40 = vpop.f32.mrb[36].mxu0  ;;  %v4283_v12 = vsel %vm310_vm0, %v7785_v23, %v7286_v54  ;;  %v7786_v52 = vld [vmem:[#allocation2 + $0x150] sm:$0xff] }
 0x1b1   : > { %7574 = vrot.lane.b32.xlu0 %v7573_v7, %s7908_s18  ;;  %v7297_v7 = vunpack.i.h.bf16 %v9590_v10  ;;  %4657 = vmatmul.mubr.bf16.gmra.mrb[88].mxu1 %v4378_v25  ;;  %v9667_v16 = vpop.f32.mrb[37].mxu0  ;;  %v4284_v51 = vsel %vm310_vm0, %v7786_v52, %v7287_v29  ;;  %v7787_v10 = vld [vmem:[#allocation2 + $0xcc] sm:$0xff]  ;;  %v7302_v29 = vunpack.i.h.bf16 %v9601_v18  ;;  %v4315_v39 = vsel %vm1941_vm1, %v4283_v12, %v7296_v62 }
 0x1b2   : > { %v2672_v57 = vmul.f32 %v9572_v11, %v2547_v26  ;;  %v2550_v15 = vadd.f32 %v10621_v19, %v6032_v44  ;;  %v9672_v26 = vpop.permute.xlu1 %7319  ;;  %v9676_v22 = vpop.f32.mrb[38].mxu0  ;;  %v4188_v1 = vsel %vm310_vm0, %v7787_v10, %v7292_v55  ;;  %v4187_v30 = vsel %vm310_vm0, %v3226_v4, %v7291_v2  ;;  %v7789_v44 = vld [vmem:[#allocation2 + $0x168] sm:$0xff] }
 0x1b3   : > { %10622 = vst [vmem:[#allocation8_spill] sm:$0xff] %v9676_v22  ;;  %v9684_v19 = vpop.f32.mrb[39].mxu0  ;;  %v7317_v55 = vunpack.i.h.bf16 %v9659_v49  ;;  %v4316_v4 = vsel %vm1941_vm1, %v4284_v51, %v7297_v7  ;;  %v4219_v62 = vsel %vm1941_vm1, %v4187_v30, %v7301_v36  ;;  %v7325_v12 = vpop.permute.xlu0 %7324  ;;  %v7322_v7 = vunpack.i.h.bf16 %v9672_v26  ;;  %v7748_v51 = vld [vmem:[%s10541_s4 + $0x8] sm:$0xff]  }
 0x1b4   : > { %v2709_v42 = vadd.f32 %v9582_v53, %v2672_v57  ;;  %v2673_v24 = vmul.f32 %v9572_v11, %v2550_v15  ;;  %v9682_v57 = vld [vmem:[#allocation2 + $0x2b4] sm:$0xff]  ;;  %7589 = vrot.lane.b32.xlu1 %v9194_v14, %s7907_s8  ;;  %v7307_v15 = vunpack.i.h.bf16 %v9627_v35  ;;  %v7316_v14 = vunpack.i.l.bf16 %v9659_v49 }
 0x1b5   : > { %7584 = vrot.lane.b32.xlu0 %v7583_v5, %s7907_s8  ;;  %v7312_v5 = vunpack.i.h.bf16 %v9636_v48  ;;  %v7613_v35 = vpack.i.bf16 %v9682_v57, %v9449_v37  ;;  %v7321_v49 = vunpack.i.l.bf16 %v9672_v26  ;;  %v10623_v57 = vld [vmem:[#allocation23_spill] sm:$0xff]  ;;  %v7327_v22 = vunpack.i.h.bf16 %v7325_v12 }
 0x1b6   : > { %v2710_v54 = vadd.f32 %v9582_v53, %v2673_v24  ;;  %v2741_v2 = vmax.f32 %v2709_v42, 0.0  ;;  %v7311_v24 = vunpack.i.l.bf16 %v9636_v48  ;;  %v7788_v48 = vld [vmem:[#allocation2 + $0x170] sm:$0xff]  ;;  %v7330_v30 = vpop.permute.xlu1 %7329 }
 0x1b7   : > { %v4286_v37 = vsel %vm310_vm0, %v7788_v48, %v7317_v55  ;;  %v7326_v55 = vunpack.i.l.bf16 %v7325_v12 }
 0x1b8   : > { %v2742_v25 = vmax.f32 %v2710_v54, 0.0  ;;  %v6033_v18 = vpop.f32.mrb[28].mxu1  ;;  %v4220_v54 = vsel %vm1941_vm1, %v4188_v1, %v7302_v29  ;;  %7599 = vrot.lane.b32.xlu1 %v9393_v31, %s7906_s29  ;;  %v4347_v1 = vsel %vm1974_vm2, %v4315_v39, %v7306_v56  ;;  %v4348_v29 = vsel %vm1974_vm2, %v4316_v4, %v7307_v15  ;;  %v7749_v56 = vld [vmem:[%s10541_s4 + $0x10] sm:$0xff]  }
 0x1b9   : > { %v6034_v23 = vpop.f32.mrb[29].mxu1  ;;  %7594 = vrot.lane.b32.xlu0 %v7593_v41, %s7906_s29  ;;  %v4251_v41 = vsel %vm1974_vm2, %v4219_v62, %v7311_v24  ;;  %v4285_v31 = vsel %vm310_vm0, %v7789_v44, %v7316_v14  ;;  %v4252_v26 = vsel %vm1974_vm2, %v4220_v54, %v7312_v5  ;;  %v7790_v24 = vld [vmem:[#allocation2 + $0xec] sm:$0xff]  ;;  %v7331_v5 = vunpack.i.l.bf16 %v7330_v30  ;;  %v7335_v14 = vpop.permute.xlu0 %7334  ;;  %v3377_v54 = vld [vmem:[#allocation2 + $0x324] sm:$0xff] }
 0x1ba   : > { %v2772_v52 = vpack.c.bf16 %v2742_v25, %v2741_v2  ;;  %v6035_v10 = vadd.f32 %v6034_v23, %v6033_v18  ;;  %v6036_v42 = vpop.f32.mrb[30].mxu1  ;;  %v3228_v18 = vld [vmem:[#allocation2 + $0xe4] sm:$0xff]  ;;  %v4382_v23 = vpack.c.bf16 %v4348_v29, %v4347_v1  ;;  %v4381_v4 = vpack.c.bf16 %v4252_v26, %v4251_v41 }
 0x1bb   : > { %v6037_v36 = vpop.f32.mrb[31].mxu1  ;;  %v4190_v44 = vsel %vm310_vm0, %v7790_v24, %v7322_v7  ;;  %v4189_v62 = vsel %vm310_vm0, %v3228_v18, %v7321_v49  ;;  %v3378_v7 = vld [vmem:[#allocation2 + $0x32c] sm:$0xff] }
 0x1bc   : > { %v2555_v2 = vadd.f32 %v6035_v10, %v10623_v57  ;;  %v6038_v25 = vadd.f32 %v6037_v36, %v6036_v42  ;;  %6438 = vmatmul.mubr.bf16.vlgmr.msra.gmra.mrb[44].mxu0 %v2772_v52  ;;  %4664 = vmatprep.mubr.bf16.mxu1 %v4382_v23  ;;  %v7337_v10 = vunpack.i.h.bf16 %v7335_v14  ;;  %v7336_v42 = vunpack.i.l.bf16 %v7335_v14 }
 0x1bd   : > { %6470 = vmatpush3.bf16.msra.mxu0 %v9622_v47  ;;  %v10624_v47 = vpack.i.bf16 %v9652_v28, %v9650_v20  ;;  %7609 = vrot.lane.b32.xlu1 %v9415_v58, %s7908_s18  ;;  %v4317_v36 = vsel %vm1941_vm1, %v4285_v31, %v7326_v55  ;;  %v4318_v20 = vsel %vm1941_vm1, %v4286_v37, %v7327_v22  ;;  %v7340_v28 = vpop.permute.xlu1 %7339  ;;  %v3409_v37 = vld [vmem:[#allocation2 + $0x328] sm:$0xff] }
 0x1be   : > { %v2674_v39 = vmul.f32 %v9572_v11, %v2555_v2  ;;  %v2558_v15 = vadd.f32 %v6038_v25, %v9214_v17  ;;  %6471 = vmatprep.subr.bf16.mxu0 %v7748_v51  ;;  %v7332_v17 = vunpack.i.h.bf16 %v7330_v30  ;;  %4665 = vmatmul.mubr.bf16.gmra.mrb[92].mxu1 %v4381_v4  ;;  %v7342_v48 = vunpack.i.h.bf16 %v7340_v28  ;;  %v7750_v25 = vld [vmem:[%s10541_s4 + $0x18] sm:$0xff]  }
 0x1bf   : > { %7604 = vrot.lane.b32.xlu0 %v10624_v47, %s7908_s18  ;;  %v7341_v49 = vunpack.i.l.bf16 %v7340_v28  ;;  %v4221_v30 = vsel %vm1941_vm1, %v4189_v62, %v7331_v5  ;;  %v7623_v29 = vpack.i.bf16 %v3378_v7, %v3377_v54  ;;  %v4349_v18 = vsel %vm1974_vm2, %v4317_v36, %v7336_v42  ;;  %v3348_v47 = vld [vmem:[#allocation2 + $0x2d4] sm:$0xff]  ;;  %v3230_v42 = vld [vmem:[#allocation2 + $0x104] sm:$0xff] }
 0x1c0   : > { %v2711_v12 = vadd.f32 %v9582_v53, %v2674_v39  ;;  %v2675_v52 = vmul.f32 %v9572_v11, %v2558_v15  ;;  %v4222_v1 = vsel %vm1941_vm1, %v4190_v44, %v7332_v17  ;;  %v4350_v23 = vsel %vm1974_vm2, %v4318_v20, %v7337_v10  ;;  %v10625_v44 = vld [vmem:[#allocation22_spill] sm:$0xff] }
 0x1c1   : > { %6472 = vmatpush3.bf16.msra.mxu0 %v7748_v51  ;;  %7619 = vrot.lane.b32.xlu1 %v9294_v46, %s7907_s8  ;;  %v3410_v51 = vld [vmem:[#allocation2 + $0x330] sm:$0xff]  ;;  %v4253_v26 = vsel %vm1974_vm2, %v4221_v30, %v7341_v49  ;;  %v4254_v39 = vsel %vm1974_vm2, %v4222_v1, %v7342_v48  ;;  %v7643_v7 = vpack.i.bf16 %v3348_v47, %v9515_v6 }
 0x1c2   : > { %v2712_v58 = vadd.f32 %v9582_v53, %v2675_v52  ;;  %6473 = vmatprep.subr.bf16.mxu0 %v7749_v56  ;;  %v2743_v57 = vmax.f32 %v2711_v12, 0.0  ;;  %v7633_v4 = vpack.i.bf16 %v3410_v51, %v3409_v37  ;;  %v4384_v24 = vpack.c.bf16 %v4254_v39, %v4253_v26  ;;  %v3251_v48 = vld [vmem:[#allocation2 + $0x24c] sm:$0xff] }
 0x1c3   : > { %7614 = vrot.lane.b32.xlu0 %v7613_v35, %s7907_s8  ;;  %v4385_v35 = vpack.c.bf16 %v4350_v23, %v4349_v18  ;;  %v7791_v30 = vld [vmem:[#allocation2 + $0x190] sm:$0xff] }
 0x1c4   : > { %v2744_v2 = vmax.f32 %v2712_v58, 0.0  ;;  %v6039_v22 = vpop.f32.mrb[32].mxu1  ;;  %v7345_v17 = vpop.permute.xlu0 %7344  ;;  %v3379_v58 = vld [vmem:[#allocation2 + $0x344] sm:$0xff] }
 0x1c5   : > { %v6040_v41 = vpop.f32.mrb[33].mxu1  ;;  %6474 = vmatpush3.bf16.msra.mxu0 %v7749_v56  ;;  %7629 = vrot.lane.b32.xlu1 %v9443_v61, %s7906_s29  ;;  %v7350_v5 = vpop.permute.xlu1 %7349  ;;  %v7347_v52 = vunpack.i.h.bf16 %v7345_v17  ;;  %v7346_v10 = vunpack.i.l.bf16 %v7345_v17 }
 0x1c6   : > { %v6041_v31 = vadd.f32 %v6040_v41, %v6039_v22  ;;  %v6042_v55 = vpop.f32.mrb[34].mxu1  ;;  %v2773_v46 = vpack.c.bf16 %v2744_v2, %v2743_v57  ;;  %6475 = vmatprep.subr.bf16.mxu0 %v7750_v25  ;;  %4672 = vmatprep.mubr.bf16.mxu1 %v4385_v35  ;;  %v7352_v61 = vunpack.i.h.bf16 %v7350_v5  ;;  %v7351_v54 = vunpack.i.l.bf16 %v7350_v5  ;;  %v9757_v36 = vpop.f32.mrb[40].mxu0 }
 0x1c7   : > { %v6043_v15 = vpop.f32.mrb[35].mxu1  ;;  %7624 = vrot.lane.b32.xlu0 %v7623_v29, %s7906_s29  ;;  %4673 = vmatmul.mubr.bf16.gmra.mrb[96].mxu1 %v4384_v24  ;;  %v9761_v49 = vpop.f32.mrb[41].mxu0  ;;  %v4288_v1 = vsel %vm310_vm0, %v7791_v30, %v7347_v52  ;;  %v7792_v29 = vld [vmem:[#allocation2 + $0x188] sm:$0xff]  ;;  %v3412_v24 = vld [vmem:[#allocation2 + $0x350] sm:$0xff] }
 0x1c8   : > { %v2563_v62 = vadd.f32 %v10625_v44, %v6041_v31  ;;  %v6044_v56 = vadd.f32 %v6043_v15, %v6042_v55  ;;  %6441 = vmatprep.mubr.bf16.mxu0 %v2773_v46  ;;  %v4287_v57 = vsel %vm310_vm0, %v7792_v29, %v7346_v10  ;;  %v7355_v2 = vpop.permute.xlu0 %7354  ;;  %v4191_v51 = vsel %vm310_vm0, %v3230_v42, %v7351_v54  ;;  %v9768_v23 = vpop.f32.mrb[42].mxu0  ;;  %v9776_v44 = vld [vmem:[#allocation2 + $0x2f4] sm:$0xff] }
 0x1c9   : > { %6476 = vmatpush3.bf16.msra.mxu0 %v7750_v25  ;;  %7639 = vrot.lane.b32.xlu1 %v9466_v60, %s7908_s18  ;;  %v7793_v60 = vld [vmem:[#allocation2 + $0x10c] sm:$0xff]  ;;  %v7360_v22 = vpop.permute.xlu1 %7359  ;;  %v7357_v25 = vunpack.i.h.bf16 %v7355_v2  ;;  %v7356_v18 = vunpack.i.l.bf16 %v7355_v2  ;;  %v7658_v55 = vpack.i.bf16 %v9490_v8, %v3251_v48  ;;  %v9774_v46 = vpop.f32.mrb[43].mxu0  ;;  %v7673_v48 = vpack.i.bf16 %v9776_v44, %v9596_v13 }
 0x1ca   : > { %v2676_v14 = vmul.f32 %v9572_v11, %v2563_v62  ;;  %v2566_v12 = vadd.f32 %v9211_v45, %v6044_v56  ;;  %v3380_v45 = vld [vmem:[#allocation2 + $0x34c] sm:$0xff]  ;;  %v4192_v6 = vsel %vm310_vm0, %v7793_v60, %v7352_v61  ;;  %v7362_v41 = vunpack.i.h.bf16 %v7360_v22 }
 0x1cb   : > { %7634 = vrot.lane.b32.xlu0 %v7633_v4, %s7908_s18  ;;  %v7361_v35 = vunpack.i.l.bf16 %v7360_v22  ;;  %v7653_v31 = vpack.i.bf16 %v3380_v45, %v3379_v58  ;;  %v3411_v4 = vld [vmem:[#allocation2 + $0x348] sm:$0xff]  ;;  %v4319_v56 = vsel %vm1941_vm1, %v4287_v57, %v7356_v18  ;;  %v4320_v47 = vsel %vm1941_vm1, %v4288_v1, %v7357_v25  ;;  %v3285_v54 = vld [vmem:[#allocation2 + $0x270] sm:$0xff] }
 0x1cc   : > { %v2677_v20 = vmul.f32 %v9572_v11, %v2566_v12  ;;  %v2713_v28 = vadd.f32 %v9582_v53, %v2676_v14  ;;  %v7365_v5 = vpop.permute.xlu0 %7364  ;;  %v3284_v61 = vld [vmem:[#allocation2 + $0x268] sm:$0xff]  ;;  %v7663_v45 = vpack.i.bf16 %v3412_v24, %v3411_v4  ;;  %v7794_v44 = vld [vmem:[#allocation2 + $0x1b0] sm:$0xff] }
 0x1cd   : > { %7649 = vrot.lane.b32.xlu1 %v9341_v38, %s7907_s8  ;;  %v4223_v17 = vsel %vm1941_vm1, %v4191_v51, %v7361_v35  ;;  %v4224_v38 = vsel %vm1941_vm1, %v4192_v6, %v7362_v41  ;;  %v7367_v52 = vunpack.i.h.bf16 %v7365_v5  ;;  %v7366_v10 = vunpack.i.l.bf16 %v7365_v5  ;;  %v7370_v42 = vpop.permute.xlu1 %7369  ;;  %v7752_v57 = vld [vmem:[%s10541_s4 + $0x28] sm:$0xff]  }
 0x1ce   : > { %v2714_v37 = vadd.f32 %v9582_v53, %v2677_v20  ;;  %v2745_v39 = vmax.f32 %v2713_v28, 0.0  ;;  %v7372_v28 = vunpack.i.h.bf16 %v7370_v42  ;;  %v7371_v58 = vunpack.i.l.bf16 %v7370_v42  ;;  %v3232_v41 = vld [vmem:[#allocation2 + $0x124] sm:$0xff]  ;;  %v3253_v24 = vld [vmem:[#allocation2 + $0x26c] sm:$0xff] }
 0x1cf   : > { %7644 = vrot.lane.b32.xlu0 %v7643_v7, %s7907_s8  ;;  %v7751_v7 = vld [vmem:[%s10541_s4 + $0x20] sm:$0xff]   ;;  %v4351_v29 = vsel %vm1974_vm2, %v4319_v56, %v7366_v10  ;;  %v7678_v6 = vpack.i.bf16 %v3285_v54, %v3284_v61  ;;  %v4352_v2 = vsel %vm1974_vm2, %v4320_v47, %v7367_v52  ;;  %v7795_v56 = vld [vmem:[#allocation2 + $0x1a8] sm:$0xff]  ;;  %v7688_v54 = vpack.i.bf16 %v9567_v34, %v3253_v24 }
 0x1d0   : > { %v6045_v26 = vpop.f32.mrb[36].mxu1  ;;  %v2746_v15 = vmax.f32 %v2714_v37, 0.0  ;;  %6477 = vmatprep.subr.bf16.mxu0 %v7751_v7  ;;  %v7375_v60 = vpop.permute.xlu0 %7374  ;;  %v4255_v22 = vsel %vm1974_vm2, %v4223_v17, %v7371_v58  ;;  %v4256_v13 = vsel %vm1974_vm2, %v4224_v38, %v7372_v28  ;;  %v3381_v4 = vld [vmem:[#allocation2 + $0x364] sm:$0xff]  ;;  %v7796_v17 = vld [vmem:[#allocation2 + $0x12c] sm:$0xff] }
 0x1d1   : > { %v6046_v62 = vpop.f32.mrb[37].mxu1  ;;  %7659 = vrot.lane.b32.xlu1 %v7658_v55, %s7906_s29  ;;  %6478 = vmatpush3.bf16.msra.mxu0 %v7751_v7  ;;  %v7377_v51 = vunpack.i.h.bf16 %v7375_v60  ;;  %v7376_v25 = vunpack.i.l.bf16 %v7375_v60  ;;  %v7380_v18 = vpop.permute.xlu1 %7379  ;;  %v4388_v55 = vpack.c.bf16 %v4352_v2, %v4351_v29  ;;  %v3413_v58 = vld [vmem:[#allocation2 + $0x368] sm:$0xff] }
 0x1d2   : > { %v6047_v8 = vadd.f32 %v6046_v62, %v6045_v26  ;;  %v6048_v14 = vpop.f32.mrb[38].mxu1  ;;  %v2774_v12 = vpack.c.bf16 %v2746_v15, %v2745_v39  ;;  %6479 = vmatprep.subr.bf16.mxu0 %v7752_v57  ;;  %v7382_v35 = vunpack.i.h.bf16 %v7380_v18  ;;  %v4387_v26 = vpack.c.bf16 %v4256_v13, %v4255_v22 }
 0x1d3   : > { %v6049_v20 = vpop.f32.mrb[39].mxu1  ;;  %7654 = vrot.lane.b32.xlu0 %v7653_v31, %s7906_s29  ;;  %v7381_v31 = vunpack.i.l.bf16 %v7380_v18  ;;  %v4290_v62 = vsel %vm310_vm0, %v7794_v44, %v7377_v51  ;;  %v4289_v47 = vsel %vm310_vm0, %v7795_v56, %v7376_v25  ;;  %4680 = vmatprep.mubr.bf16.mxu1 %v4388_v55  ;;  %v7754_v51 = vld [vmem:[%s10541_s4 + $0x38] sm:$0xff]  }
 0x1d4   : > { %v2571_v30 = vadd.f32 %v6047_v8, %v9274_v43  ;;  %v6050_v1 = vadd.f32 %v6049_v20, %v6048_v14  ;;  %6442 = vmatmul.mubr.bf16.gmra.mrb[48].mxu0 %v2774_v12  ;;  %v4194_v38 = vsel %vm310_vm0, %v7796_v17, %v7382_v35  ;;  %v7385_v5 = vpop.permute.xlu0 %7384  ;;  %4681 = vmatmul.mubr.bf16.gmra.mrb[100].mxu1 %v4387_v26  ;;  %v3234_v17 = vld [vmem:[#allocation2 + $0x144] sm:$0xff] }
 0x1d5   : > { %7669 = vrot.lane.b32.xlu1 %v9545_v33, %s7908_s18  ;;  %6480 = vmatpush3.bf16.msra.mxu0 %v7752_v57  ;;  %v4193_v8 = vsel %vm310_vm0, %v3232_v41, %v7381_v31  ;;  %v7387_v14 = vunpack.i.h.bf16 %v7385_v5  ;;  %v7386_v12 = vunpack.i.l.bf16 %v7385_v5  ;;  %v7390_v52 = vpop.permute.xlu1 %7389 }
 0x1d6   : > { %v2678_v43 = vmul.f32 %v9572_v11, %v2571_v30  ;;  %v2574_v37 = vadd.f32 %v6050_v1, %v9286_v21  ;;  %v3382_v21 = vld [vmem:[#allocation2 + $0x36c] sm:$0xff]  ;;  %v7392_v10 = vunpack.i.h.bf16 %v7390_v52  ;;  %v7391_v42 = vunpack.i.l.bf16 %v7390_v52 }
 0x1d7   : > { %7664 = vrot.lane.b32.xlu0 %v7663_v45, %s7908_s18  ;;  %v7683_v61 = vpack.i.bf16 %v3382_v21, %v3381_v4  ;;  %v3414_v45 = vld [vmem:[#allocation2 + $0x370] sm:$0xff]  ;;  %v4321_v29 = vsel %vm1941_vm1, %v4289_v47, %v7386_v12  ;;  %v4322_v57 = vsel %vm1941_vm1, %v4290_v62, %v7387_v14  ;;  %v7798_v52 = vld [vmem:[#allocation2 + $0x1c8] sm:$0xff] }
 0x1d8   : > { %v2715_v39 = vadd.f32 %v9582_v53, %v2678_v43  ;;  %v2679_v15 = vmul.f32 %v9572_v11, %v2574_v37  ;;  %v7753_v30 = vld [vmem:[%s10541_s4 + $0x30] sm:$0xff]   ;;  %v4226_v60 = vsel %vm1941_vm1, %v4194_v38, %v7392_v10  ;;  %v7693_v35 = vpack.i.bf16 %v3414_v45, %v3413_v58 }
 0x1d9   : > { %7679 = vrot.lane.b32.xlu1 %v7678_v6, %s7907_s8  ;;  %6481 = vmatprep.subr.bf16.mxu0 %v7753_v30  ;;  %v7797_v12 = vld [vmem:[#allocation2 + $0x1d0] sm:$0xff] }
 0x1da   : > { %v2716_v33 = vadd.f32 %v9582_v53, %v2679_v15  ;;  %v2747_v7 = vmax.f32 %v2715_v39, 0.0  ;;  %v7400_v37 = vpop.permute.xlu1 %7399  ;;  %6482 = vmatpush3.bf16.msra.mxu0 %v7753_v30 }
 0x1db   : > { %7674 = vrot.lane.b32.xlu0 %v7673_v48, %s7907_s8  ;;  %v4225_v48 = vsel %vm1941_vm1, %v4193_v8, %v7391_v42  ;;  %v7395_v6 = vpop.permute.xlu0 %7394  ;;  %v7402_v18 = vunpack.i.h.bf16 %v7400_v37  ;;  %v7401_v41 = vunpack.i.l.bf16 %v7400_v37  ;;  %6483 = vmatprep.subr.bf16.mxu0 %v7754_v51  ;;  %v7799_v42 = vld [vmem:[#allocation2 + $0x14c] sm:$0xff]  ;;  %s269_s8 = sand.u32 1, %s7895_s25  }
 0x1dc   : > { %v2748_v20 = vmax.f32 %v2716_v33, 0.0  ;;  %v6051_v28 = vpop.f32.mrb[40].mxu1  ;;  %v7397_v13 = vunpack.i.h.bf16 %v7395_v6  ;;  %v7396_v43 = vunpack.i.l.bf16 %v7395_v6  ;;  %s5812_s23 = sshll.u32 %s269_s8, 8  ;;  %s10496_s28 = scalar_lea.sflag [#allocation4], %s269_s8 }
 0x1dd   : > { %v6052_v1 = vpop.f32.mrb[41].mxu1  ;;  %7689 = vrot.lane.b32.xlu1 %v7688_v54, %s7906_s29  ;;  %v4257_v21 = vsel %vm1974_vm2, %v4225_v48, %v7401_v41  ;;  %v4258_v24 = vsel %vm1974_vm2, %v4226_v60, %v7402_v18  ;;  %s10367_s14 = scalar_lea.vmem [#allocation3], %s5812_s23 }
 0x1de   : > { %v6053_v34 = vadd.f32 %v6052_v1, %v6051_v28  ;;  %v6054_v2 = vpop.f32.mrb[42].mxu1  ;;  %v2775_v22 = vpack.c.bf16 %v2748_v20, %v2747_v7  ;;  %v4353_v26 = vsel %vm1974_vm2, %v4321_v29, %v7396_v43  ;;  %v4354_v39 = vsel %vm1974_vm2, %v4322_v57, %v7397_v13  ;;  %6484 = vmatpush3.bf16.msra.mxu0 %v7754_v51  ;;  %v7756_v7 = vld [vmem:[%s10540_s3] sm:$0xff]   ;;  %s5746_s16 = sshll.u32 %s10367_s14, 4  ;;  %s10489_s16 = int_to_ptr.vmem [resolvable:$true] %s5746_s16 }
 0x1df   : > { %v6055_v25 = vpop.f32.mrb[43].mxu1  ;;  %7684 = vrot.lane.b32.xlu0 %v7683_v61, %s7906_s29  ;;  %v7405_v15 = vpop.permute.xlu0 %7404  ;;  %v4391_v4 = vpack.c.bf16 %v4354_v39, %v4353_v26  ;;  %v4390_v33 = vpack.c.bf16 %v4258_v24, %v4257_v21  ;;  %6602 = vmatpush3.bf16.msra.mxu1 %v7756_v7  ;;  %s7841_s21 = scalar_lea.vmem %s10489_s16, 4096  ;;  %s7847_s29 = scalar_lea.vmem %s7846_s9, 8192 }
 0x1e0   : > { %v2579_v31 = vadd.f32 %v9262_v50, %v6053_v34  ;;  %v6056_v55 = vadd.f32 %v6055_v25, %v6054_v2  ;;  %6445 = vmatprep.mubr.bf16.mxu0 %v2775_v22  ;;  %v7407_v56 = vunpack.i.h.bf16 %v7405_v15  ;;  %v7406_v47 = vunpack.i.l.bf16 %v7405_v15  ;;  %v7410_v50 = vpop.permute.xlu1 %7409  ;;  %6603 = vmatprep.subr.bf16.mxu1 %v10617_v3  ;;  %p7842_p11 = scmp.ne.s32.totalorder %s10489_s16, %s7841_s21  ;;  %p7848_p0 = scmp.lt.s32.totalorder %s10489_s16, %s7846_s9 }
 0x1e1   : > { %v7412_v38 = vunpack.i.h.bf16 %v7410_v50  ;;  %v7411_v5 = vunpack.i.l.bf16 %v7410_v50  ;;  %7699 = vrot.lane.b32.xlu1 %v9614_v59, %s7908_s18  ;;  %4688 = vmatprep.mubr.bf16.mxu1 %v4391_v4  ;;  %v7755_v59 = vld [vmem:[%s10539_s2 + $0x110] sm:$0xff]   ;;  %p7849_p1 = scmp.lt.s32.totalorder %s7847_s29, %s7841_s21 }
 0x1e2   : > { %v2680_v44 = vmul.f32 %v9572_v11, %v2579_v31  ;;  %v2582_v62 = vadd.f32 %v9284_v32, %v6056_v55  ;;  %v4292_v32 = vsel %vm310_vm0, %v7797_v12, %v7407_v56  ;;  %v4291_v10 = vsel %vm310_vm0, %v7798_v52, %v7406_v47  ;;  %4689 = vmatmul.mubr.bf16.gmra.mrb[104].mxu1 %v4390_v33  ;;  %v7800_v52 = vld [vmem:[#allocation2 + $0x1f0] sm:$0xff]  ;;  %p7843_p12 = pnand %p7842_p11, %p7991_p5 }
 0x1e3   : > { %7694 = vrot.lane.b32.xlu0 %v7693_v35, %s7908_s18  ;;  %v4196_v61 = vsel %vm310_vm0, %v7799_v42, %v7412_v38  ;;  %v7415_v54 = vpop.permute.xlu0 %7414  ;;  %v4195_v28 = vsel %vm310_vm0, %v3234_v17, %v7411_v5  ;;  %6517 = vmatprep.subr.bf16.mxu0 %v7755_v59  ;;  %v7801_v42 = vld [vmem:[#allocation2 + $0x1e8] sm:$0xff]  ;;  %p7850_p2 = por %p7849_p1, %p7848_p0 }
 0x1e4   : > { %v2681_v8 = vmul.f32 %v9572_v11, %v2582_v62  ;;  %v2717_v14 = vadd.f32 %v9582_v53, %v2680_v44  ;;  %v7417_v58 = vunpack.i.h.bf16 %v7415_v54  ;;  %v7416_v45 = vunpack.i.l.bf16 %v7415_v54  ;;  %v7420_v30 = vpop.permute.xlu1 %7419  ;;  %v7802_v54 = vld [vmem:[#allocation2 + $0x16c] sm:$0xff]  ;;  %p7844_p13 = pneg %p7843_p12 }
 0x1e5   : > { %v7422_v1 = vunpack.i.h.bf16 %v7420_v30  ;;  %v7421_v29 = vunpack.i.l.bf16 %v7420_v30 }
 0x1e6   : > { %v2718_v20 = vadd.f32 %v9582_v53, %v2681_v8  ;;  %v2749_v48 = vmax.f32 %v2717_v14, 0.0  ;;  %v4323_v34 = vsel %vm1941_vm1, %v4291_v10, %v7416_v45  ;;  %v4324_v2 = vsel %vm1941_vm1, %v4292_v32, %v7417_v58  ;;  %p7851_p3 = pnand %p7850_p2, %p7844_p13 }
 0x1e7   : > { %v4227_v22 = vsel %vm1941_vm1, %v4195_v28, %v7421_v29  ;;  %v4228_v13 = vsel %vm1941_vm1, %v4196_v61, %v7422_v1  ;;  %v7425_v43 = vpop.permute.xlu0 %7424 }
 0x1e8   : > { %v6057_v57 = vpop.f32.mrb[44].mxu1  ;;  %v2750_v60 = vmax.f32 %v2718_v20, 0.0  ;;  %v7427_v18 = vunpack.i.h.bf16 %v7425_v43  ;;  %v7426_v41 = vunpack.i.l.bf16 %v7425_v43  ;;  %v7430_v35 = vpop.permute.xlu1 %7429 }
 0x1e9   : > { %v6058_v6 = vpop.f32.mrb[45].mxu1  ;;  %v7432_v55 = vunpack.i.h.bf16 %v7430_v35  ;;  %v7431_v26 = vunpack.i.l.bf16 %v7430_v35 }
 0x1ea   : > { %v6059_v37 = vadd.f32 %v6058_v6, %v6057_v57  ;;  %v6060_v51 = vpop.f32.mrb[46].mxu1  ;;  %v2776_v25 = vpack.c.bf16 %v2750_v60, %v2749_v48  ;;  %v4355_v4 = vsel %vm1974_vm2, %v4323_v34, %v7426_v41  ;;  %v4356_v21 = vsel %vm1974_vm2, %v4324_v2, %v7427_v18 }
 0x1eb   : > { %v6061_v31 = vpop.f32.mrb[47].mxu1  ;;  %v7435_v24 = vpop.permute.xlu0 %7434  ;;  %v4394_v44 = vpack.c.bf16 %v4356_v21, %v4355_v4  ;;  %v4259_v62 = vsel %vm1974_vm2, %v4227_v22, %v7431_v26  ;;  %v4260_v56 = vsel %vm1974_vm2, %v4228_v13, %v7432_v55 }
 0x1ec   : > { %v2587_v39 = vadd.f32 %v6059_v37, %v9315_v9  ;;  %v6062_v15 = vadd.f32 %v6061_v31, %v6060_v51  ;;  %6446 = vmatmul.mubr.bf16.gmra.mrb[52].mxu0 %v2776_v25  ;;  %v7437_v17 = vunpack.i.h.bf16 %v7435_v24  ;;  %v7436_v38 = vunpack.i.l.bf16 %v7435_v24  ;;  %v7440_v5 = vpop.permute.xlu1 %7439  ;;  %v3236_v9 = vld [vmem:[#allocation2 + $0x164] sm:$0xff] }
 0x1ed   : > { %v7442_v33 = vunpack.i.h.bf16 %v7440_v5  ;;  %v7441_v8 = vunpack.i.l.bf16 %v7440_v5  ;;  %4696 = vmatprep.mubr.bf16.mxu1 %v4394_v44  ;;  %v4393_v14 = vpack.c.bf16 %v4260_v56, %v4259_v62 }
 0x1ee   : > { %v2682_v47 = vmul.f32 %v9572_v11, %v2587_v39  ;;  %v2590_v50 = vadd.f32 %v6062_v15, %v9326_v27  ;;  %v4294_v10 = vsel %vm310_vm0, %v7800_v52, %v7437_v17  ;;  %v4293_v61 = vsel %vm310_vm0, %v7801_v42, %v7436_v38  ;;  %v7804_v52 = vld [vmem:[#allocation2 + $0x208] sm:$0xff] }
 0x1ef   : > { %v4198_v27 = vsel %vm310_vm0, %v7802_v54, %v7442_v33  ;;  %v7445_v59 = vpop.permute.xlu0 %7444  ;;  %4697 = vmatmul.mubr.bf16.gmra.mrb[108].mxu1 %v4393_v14  ;;  %v4197_v20 = vsel %vm310_vm0, %v3236_v9, %v7441_v8  ;;  %v9881_v42 = vld [vmem:[#allocation2 + $0x18c] sm:$0xff] }
 0x1f0   : > { %v2719_v12 = vadd.f32 %v9582_v53, %v2682_v47  ;;  %v2683_v32 = vmul.f32 %v9572_v11, %v2590_v50  ;;  %v7447_v28 = vunpack.i.h.bf16 %v7445_v59  ;;  %v7446_v58 = vunpack.i.l.bf16 %v7445_v59  ;;  %v7450_v45 = vpop.permute.xlu1 %7449 }
 0x1f1   : > { %v7452_v30 = vunpack.i.h.bf16 %v7450_v45  ;;  %v7451_v1 = vunpack.i.l.bf16 %v7450_v45 }
 0x1f2   : > { %v2720_v7 = vadd.f32 %v9582_v53, %v2683_v32  ;;  %v2751_v29 = vmax.f32 %v2719_v12, 0.0  ;;  %v4325_v6 = vsel %vm1941_vm1, %v4293_v61, %v7446_v58  ;;  %v4326_v34 = vsel %vm1941_vm1, %v4294_v10, %v7447_v28  ;;  %v7803_v12 = vld [vmem:[#allocation2 + $0x210] sm:$0xff] }
 0x1f3   : > { %v4229_v2 = vsel %vm1941_vm1, %v4197_v20, %v7451_v1  ;;  %v4230_v22 = vsel %vm1941_vm1, %v4198_v27, %v7452_v30  ;;  %v7455_v13 = vpop.permute.xlu0 %7454 }
 0x1f4   : > { %v2752_v57 = vmax.f32 %v2720_v7, 0.0  ;;  %v6063_v48 = vpop.f32.mrb[48].mxu1  ;;  %v7457_v25 = vunpack.i.h.bf16 %v7455_v13  ;;  %v7456_v18 = vunpack.i.l.bf16 %v7455_v13  ;;  %v7460_v41 = vpop.permute.xlu1 %7459 }
 0x1f5   : > { %v6064_v60 = vpop.f32.mrb[49].mxu1  ;;  %v7462_v31 = vunpack.i.h.bf16 %v7460_v41  ;;  %v7461_v55 = vunpack.i.l.bf16 %v7460_v41 }
 0x1f6   : > { %v6065_v43 = vadd.f32 %v6064_v60, %v6063_v48  ;;  %v6066_v37 = vpop.f32.mrb[50].mxu1  ;;  %v2777_v51 = vpack.c.bf16 %v2752_v57, %v2751_v29  ;;  %v4357_v15 = vsel %vm1974_vm2, %v4325_v6, %v7456_v18  ;;  %v4358_v4 = vsel %vm1974_vm2, %v4326_v34, %v7457_v25  ;;  %v10626_v18 = vld [vmem:[#allocation35_spill] sm:$0xff] }
 0x1f7   : > { %v6067_v35 = vpop.f32.mrb[51].mxu1  ;;  %v7465_v21 = vpop.permute.xlu0 %7464  ;;  %v4397_v24 = vpack.c.bf16 %v4358_v4, %v4357_v15  ;;  %v4261_v44 = vsel %vm1974_vm2, %v4229_v2, %v7461_v55  ;;  %v4262_v62 = vsel %vm1974_vm2, %v4230_v22, %v7462_v31 }
 0x1f8   : > { %v2595_v26 = vadd.f32 %v9310_v63, %v6065_v43  ;;  %v6068_v39 = vadd.f32 %v6067_v35, %v6066_v37  ;;  %6449 = vmatprep.mubr.bf16.mxu0 %v2777_v51  ;;  %v7467_v50 = vunpack.i.h.bf16 %v7465_v21  ;;  %v7466_v17 = vunpack.i.l.bf16 %v7465_v21  ;;  %v7470_v38 = vpop.permute.xlu1 %7469  ;;  %v3238_v63 = vld [vmem:[#allocation2 + $0x184] sm:$0xff]  ;;  %v9899_v21 = vld [vmem:[%s10542_s5 + $0x1] ss:$0 sm:$0xff] }
 0x1f9   : > { %v7472_v5 = vunpack.i.h.bf16 %v7470_v38  ;;  %v7471_v9 = vunpack.i.l.bf16 %v7470_v38  ;;  %4704 = vmatprep.mubr.bf16.mxu1 %v4397_v24  ;;  %v4396_v33 = vpack.c.bf16 %v4262_v62, %v4261_v44  ;;  %v10627_v44 = vld [vmem:[#allocation37_spill] sm:$0xff] }
 0x1fa   : > { %v2684_v56 = vmul.f32 %v9572_v11, %v2595_v26  ;;  %v2598_v47 = vadd.f32 %v9319_v0, %v6068_v39  ;;  %v4296_v32 = vsel %vm310_vm0, %v7803_v12, %v7467_v50  ;;  %v4295_v10 = vsel %vm310_vm0, %v7804_v52, %v7466_v17  ;;  %v3240_v17 = vld [vmem:[#allocation2 + $0x1a4] sm:$0xff] }
 0x1fb   : > { %v4200_v0 = vsel %vm310_vm0, %v9881_v42, %v7472_v5  ;;  %v7475_v61 = vpop.permute.xlu0 %7474  ;;  %4705 = vmatmul.mubr.bf16.gmra.mrb[112].mxu1 %v4396_v33  ;;  %v4199_v27 = vsel %vm310_vm0, %v3238_v63, %v7471_v9  ;;  %v9906_v9 = vld [vmem:[%s10543_s6 + $0x1] ss:$0 sm:$0xff] }
 0x1fc   : > { %v2685_v8 = vmul.f32 %v9572_v11, %v2598_v47  ;;  %v2721_v14 = vadd.f32 %v9582_v53, %v2684_v56  ;;  %v7477_v11 = vunpack.i.h.bf16 %v7475_v61  ;;  %v7476_v59 = vunpack.i.l.bf16 %v7475_v61  ;;  %v7480_v7 = vpop.permute.xlu1 %7479 }
 0x1fd   : > { %v7482_v20 = vunpack.i.h.bf16 %v7480_v7  ;;  %v7481_v28 = vunpack.i.l.bf16 %v7480_v7 }
 0x1fe   : > { %v2722_v54 = vadd.f32 %v9582_v53, %v2685_v8  ;;  %v2753_v45 = vmax.f32 %v2721_v14, 0.0  ;;  %v4327_v29 = vsel %vm1941_vm1, %v4295_v10, %v7476_v59  ;;  %v4328_v57 = vsel %vm1941_vm1, %v4296_v32, %v7477_v11  ;;  %v7808_v14 = vld [vmem:[#allocation2 + $0x230] sm:$0xff]  ;;  %v7809_v32 = vld [vmem:[#allocation2 + $0x228] sm:$0xff] }
 0x1ff   : > { %v4231_v48 = vsel %vm1941_vm1, %v4199_v27, %v7481_v28  ;;  %v4232_v60 = vsel %vm1941_vm1, %v4200_v0, %v7482_v20  ;;  %v7485_v53 = vpop.permute.xlu0 %7484  ;;  %v9912_v10 = vld [vmem:[#allocation2 + $0x1ac] sm:$0xff] }
 0x200   : > { %v6069_v58 = vpop.f32.mrb[52].mxu1  ;;  %v2754_v30 = vmax.f32 %v2722_v54, 0.0  ;;  %v7487_v22 = vunpack.i.h.bf16 %v7485_v53  ;;  %v7486_v13 = vunpack.i.l.bf16 %v7485_v53  ;;  %v7490_v43 = vpop.permute.xlu1 %7489 }
 0x201   : > { %v6070_v1 = vpop.f32.mrb[53].mxu1  ;;  %v7492_v51 = vunpack.i.h.bf16 %v7490_v43  ;;  %v7491_v25 = vunpack.i.l.bf16 %v7490_v43 }
 0x202   : > { %v6071_v6 = vadd.f32 %v6070_v1, %v6069_v58  ;;  %v6072_v34 = vpop.f32.mrb[54].mxu1  ;;  %v2778_v2 = vpack.c.bf16 %v2754_v30, %v2753_v45  ;;  %v4359_v31 = vsel %vm1974_vm2, %v4327_v29, %v7486_v13  ;;  %v4360_v55 = vsel %vm1974_vm2, %v4328_v57, %v7487_v22 }
 0x203   : > { %v6073_v37 = vpop.f32.mrb[55].mxu1  ;;  %v7495_v26 = vpop.permute.xlu0 %7494  ;;  %v4400_v39 = vpack.c.bf16 %v4360_v55, %v4359_v31  ;;  %v4263_v15 = vsel %vm1974_vm2, %v4231_v48, %v7491_v25  ;;  %v4264_v4 = vsel %vm1974_vm2, %v4232_v60, %v7492_v51 }
 0x204   : > { %v2603_v41 = vadd.f32 %v6071_v6, %v10626_v18  ;;  %v6074_v35 = vadd.f32 %v6073_v37, %v6072_v34  ;;  %6450 = vmatmul.mubr.bf16.gmra.mrb[56].mxu0 %v2778_v2  ;;  %v7497_v56 = vunpack.i.h.bf16 %v7495_v26  ;;  %v7496_v47 = vunpack.i.l.bf16 %v7495_v26  ;;  %v7500_v50 = vpop.permute.xlu1 %7499  ;;  %v10628_v18 = vld [vmem:[#allocation34_spill] sm:$0xff] }
 0x205   : > { %v7502_v38 = vunpack.i.h.bf16 %v7500_v50  ;;  %v7501_v63 = vunpack.i.l.bf16 %v7500_v50  ;;  %4712 = vmatprep.mubr.bf16.mxu1 %v4400_v39  ;;  %v4399_v5 = vpack.c.bf16 %v4264_v4, %v4263_v15 }
 0x206   : > { %v2686_v24 = vmul.f32 %v9899_v21, %v2603_v41  ;;  %v2606_v62 = vadd.f32 %v6074_v35, %v10627_v44  ;;  %v4298_v12 = vsel %vm310_vm0, %v7808_v14, %v7497_v56  ;;  %v4297_v52 = vsel %vm310_vm0, %v7809_v32, %v7496_v47  ;;  %v10629_v44 = vld [vmem:[#allocation36_spill] sm:$0xff]  ;;  %v7812_v32 = vld [vmem:[#allocation2 + $0x248] sm:$0xff] }
 0x207   : > { %v4202_v0 = vsel %vm310_vm0, %v9912_v10, %v7502_v38  ;;  %v7505_v61 = vpop.permute.xlu0 %7504  ;;  %4713 = vmatmul.mubr.bf16.gmra.mrb[116].mxu1 %v4399_v5  ;;  %v4201_v27 = vsel %vm310_vm0, %v3240_v17, %v7501_v63  ;;  %v3242_v17 = vld [vmem:[#allocation2 + $0x1c4] sm:$0xff]  ;;  %v7811_v14 = vld [vmem:[#allocation2 + $0x250] sm:$0xff] }
 0x208   : > { %v2723_v33 = vadd.f32 %v9906_v9, %v2686_v24  ;;  %v2687_v8 = vmul.f32 %v9899_v21, %v2606_v62  ;;  %v7507_v11 = vunpack.i.h.bf16 %v7505_v61  ;;  %v7506_v59 = vunpack.i.l.bf16 %v7505_v61  ;;  %v7510_v7 = vpop.permute.xlu1 %7509 }
 0x209   : > { %v7512_v20 = vunpack.i.h.bf16 %v7510_v7  ;;  %v7511_v28 = vunpack.i.l.bf16 %v7510_v7 }
 0x20a   : > { %v2724_v54 = vadd.f32 %v9906_v9, %v2687_v8  ;;  %v2755_v58 = vmax.f32 %v2723_v33, 0.0  ;;  %v4329_v29 = vsel %vm1941_vm1, %v4297_v52, %v7506_v59  ;;  %v4330_v57 = vsel %vm1941_vm1, %v4298_v12, %v7507_v11 }
 0x20b   : > { %v4233_v48 = vsel %vm1941_vm1, %v4201_v27, %v7511_v28  ;;  %v4234_v60 = vsel %vm1941_vm1, %v4202_v0, %v7512_v20  ;;  %v7515_v53 = vpop.permute.xlu0 %7514  ;;  %v9933_v0 = vld [vmem:[#allocation2 + $0x1cc] sm:$0xff] }
 0x20c   : > { %v2756_v45 = vmax.f32 %v2724_v54, 0.0  ;;  %v6075_v30 = vpop.f32.mrb[56].mxu1  ;;  %v7517_v22 = vunpack.i.h.bf16 %v7515_v53  ;;  %v7516_v13 = vunpack.i.l.bf16 %v7515_v53  ;;  %v7520_v43 = vpop.permute.xlu1 %7519 }
 0x20d   : > { %v6076_v1 = vpop.f32.mrb[57].mxu1  ;;  %v7522_v51 = vunpack.i.h.bf16 %v7520_v43  ;;  %v7521_v25 = vunpack.i.l.bf16 %v7520_v43 }
 0x20e   : > { %v6077_v6 = vadd.f32 %v6076_v1, %v6075_v30  ;;  %v6078_v34 = vpop.f32.mrb[58].mxu1  ;;  %v2779_v2 = vpack.c.bf16 %v2756_v45, %v2755_v58  ;;  %v4361_v31 = vsel %vm1974_vm2, %v4329_v29, %v7516_v13  ;;  %v4362_v55 = vsel %vm1974_vm2, %v4330_v57, %v7517_v22 }
 0x20f   : > { %v6079_v37 = vpop.f32.mrb[59].mxu1  ;;  %v7525_v26 = vpop.permute.xlu0 %7524  ;;  %v4403_v39 = vpack.c.bf16 %v4362_v55, %v4361_v31  ;;  %v4265_v15 = vsel %vm1974_vm2, %v4233_v48, %v7521_v25  ;;  %v4266_v4 = vsel %vm1974_vm2, %v4234_v60, %v7522_v51 }
 0x210   : > { %v2611_v41 = vadd.f32 %v10628_v18, %v6077_v6  ;;  %v6080_v35 = vadd.f32 %v6079_v37, %v6078_v34  ;;  %6453 = vmatprep.mubr.bf16.mxu0 %v2779_v2  ;;  %v7527_v56 = vunpack.i.h.bf16 %v7525_v26  ;;  %v7526_v47 = vunpack.i.l.bf16 %v7525_v26  ;;  %v7530_v50 = vpop.permute.xlu1 %7529 }
 0x211   : > { %v7532_v38 = vunpack.i.h.bf16 %v7530_v50  ;;  %v7531_v63 = vunpack.i.l.bf16 %v7530_v50  ;;  %4720 = vmatprep.mubr.bf16.mxu1 %v4403_v39  ;;  %v4402_v5 = vpack.c.bf16 %v4266_v4, %v4265_v15 }
 0x212   : > { %v2688_v24 = vmul.f32 %v9899_v21, %v2611_v41  ;;  %v2614_v62 = vadd.f32 %v10629_v44, %v6080_v35  ;;  %v4300_v12 = vsel %vm310_vm0, %v7811_v14, %v7527_v56  ;;  %v4299_v52 = vsel %vm310_vm0, %v7812_v32, %v7526_v47  ;;  %v10630_v41 = vld [vmem:[#allocation14_spill] sm:$0xff] }
 0x213   : > { %v4204_v61 = vsel %vm310_vm0, %v9933_v0, %v7532_v38  ;;  %v7535_v54 = vpop.permute.xlu0 %7534  ;;  %4721 = vmatmul.mubr.bf16.gmra.mrb[120].mxu1 %v4402_v5  ;;  %v4203_v11 = vsel %vm310_vm0, %v3242_v17, %v7531_v63  ;;  %v3244_v38 = vld [vmem:[#allocation2 + $0x1e4] sm:$0xff] }
 0x214   : > { %v2689_v33 = vmul.f32 %v9899_v21, %v2614_v62  ;;  %v2725_v8 = vadd.f32 %v9906_v9, %v2688_v24  ;;  %v7537_v59 = vunpack.i.h.bf16 %v7535_v54  ;;  %v7536_v7 = vunpack.i.l.bf16 %v7535_v54  ;;  %v7540_v20 = vpop.permute.xlu1 %7539  ;;  %v10631_v62 = vld [vmem:[#allocation38_spill] sm:$0xff]  ;;  %v9954_v54 = vld [vmem:[#allocation2 + $0x1ec] sm:$0xff] }
 0x215   : > { %v7542_v28 = vunpack.i.h.bf16 %v7540_v20  ;;  %v7541_v58 = vunpack.i.l.bf16 %v7540_v20 }
 0x216   : > { %v2726_v27 = vadd.f32 %v9906_v9, %v2689_v33  ;;  %v2757_v30 = vmax.f32 %v2725_v8, 0.0  ;;  %v4331_v57 = vsel %vm1941_vm1, %v4299_v52, %v7536_v7  ;;  %v4332_v48 = vsel %vm1941_vm1, %v4300_v12, %v7537_v59  ;;  %v7814_v12 = vld [vmem:[#allocation2 + $0x270] sm:$0xff]  ;;  %v7815_v52 = vld [vmem:[#allocation2 + $0x268] sm:$0xff] }
 0x217   : > { %v4235_v60 = vsel %vm1941_vm1, %v4203_v11, %v7541_v58  ;;  %v4236_v53 = vsel %vm1941_vm1, %v4204_v61, %v7542_v28  ;;  %v7545_v6 = vpop.permute.xlu0 %7544 }
 0x218   : > { %v6081_v45 = vpop.f32.mrb[60].mxu1  ;;  %v2758_v1 = vmax.f32 %v2726_v27, 0.0  ;;  %v7547_v13 = vunpack.i.h.bf16 %v7545_v6  ;;  %v7546_v43 = vunpack.i.l.bf16 %v7545_v6  ;;  %v7550_v37 = vpop.permute.xlu1 %7549 }
 0x219   : > { %v6082_v29 = vpop.f32.mrb[61].mxu1  ;;  %v7552_v25 = vunpack.i.h.bf16 %v7550_v37  ;;  %v7551_v18 = vunpack.i.l.bf16 %v7550_v37 }
 0x21a   : > { %v6083_v34 = vadd.f32 %v6082_v29, %v6081_v45  ;;  %v6084_v2 = vpop.f32.mrb[62].mxu1  ;;  %v2780_v22 = vpack.c.bf16 %v2758_v1, %v2757_v30  ;;  %v4363_v55 = vsel %vm1974_vm2, %v4331_v57, %v7546_v43  ;;  %v4364_v26 = vsel %vm1974_vm2, %v4332_v48, %v7547_v13 }
 0x21b   : > { %v6085_v51 = vpop.f32.mrb[63].mxu1  ;;  %v7555_v39 = vpop.permute.xlu0 %7554  ;;  %v4406_v15 = vpack.c.bf16 %v4364_v26, %v4363_v55  ;;  %v4267_v4 = vsel %vm1974_vm2, %v4235_v60, %v7551_v18  ;;  %v4268_v24 = vsel %vm1974_vm2, %v4236_v53, %v7552_v25  ;;  %v10632_v55 = vld [vmem:[#allocation13_spill] sm:$0xff] }
 0x21c   : > { %v2619_v35 = vadd.f32 %v6083_v34, %v10630_v41  ;;  %v6086_v31 = vadd.f32 %v6085_v51, %v6084_v2  ;;  %6454 = vmatmul.mubr.bf16.gmra.mrb[60].mxu0 %v2780_v22  ;;  %v7557_v47 = vunpack.i.h.bf16 %v7555_v39  ;;  %v7556_v50 = vunpack.i.l.bf16 %v7555_v39  ;;  %v7560_v17 = vpop.permute.xlu1 %7559  ;;  %v7758_v22 = vld [vmem:[%s10540_s3 + $0x8] sm:$0xff]  }
 0x21d   : > { %v7562_v63 = vunpack.i.h.bf16 %v7560_v17  ;;  %v7561_v5 = vunpack.i.l.bf16 %v7560_v17  ;;  %4728 = vmatprep.mubr.bf16.mxu1 %v4406_v15  ;;  %v4405_v33 = vpack.c.bf16 %v4268_v24, %v4267_v4  ;;  %6604 = vmatpush3.bf16.msra.mxu1 %v7758_v22 }
 0x21e   : > { %v2690_v44 = vmul.f32 %v9899_v21, %v2619_v35  ;;  %v2622_v56 = vadd.f32 %v6086_v31, %v10631_v62  ;;  %v4302_v32 = vsel %vm310_vm0, %v7814_v12, %v7557_v47  ;;  %v4301_v61 = vsel %vm310_vm0, %v7815_v52, %v7556_v50  ;;  %6609 = vmatprep.subr.bf16.mxu1 %v10617_v3  ;;  %v10633_v50 = vld [vmem:[#allocation15_spill] sm:$0xff] }
 0x21f   : > { %v4206_v27 = vsel %vm310_vm0, %v9954_v54, %v7562_v63  ;;  %v7565_v11 = vpop.permute.xlu0 %7564  ;;  %4729 = vmatmul.mubr.bf16.gmra.mrb[124].mxu1 %v4405_v33  ;;  %v4205_v7 = vsel %vm310_vm0, %v3244_v38, %v7561_v5  ;;  %v3246_v33 = vld [vmem:[#allocation2 + $0x204] sm:$0xff] }
 0x220   : > { %v2727_v8 = vadd.f32 %v9906_v9, %v2690_v44  ;;  %v2691_v14 = vmul.f32 %v9899_v21, %v2622_v56  ;;  %v7567_v20 = vunpack.i.h.bf16 %v7565_v11  ;;  %v7566_v28 = vunpack.i.l.bf16 %v7565_v11  ;;  %v7570_v58 = vpop.permute.xlu1 %7569  ;;  %v7818_v11 = vld [vmem:[#allocation2 + $0x288] sm:$0xff] }
 0x221   : > { %v7572_v45 = vunpack.i.h.bf16 %v7570_v58  ;;  %v7571_v30 = vunpack.i.l.bf16 %v7570_v58 }
 0x222   : > { %v2728_v59 = vadd.f32 %v9906_v9, %v2691_v14  ;;  %v2759_v1 = vmax.f32 %v2727_v8, 0.0  ;;  %v4333_v60 = vsel %vm1941_vm1, %v4301_v61, %v7566_v28  ;;  %v4334_v53 = vsel %vm1941_vm1, %v4302_v32, %v7567_v20  ;;  %v7817_v61 = vld [vmem:[#allocation2 + $0x290] sm:$0xff] }
 0x223   : > { %v4237_v6 = vsel %vm1941_vm1, %v4205_v7, %v7571_v30  ;;  %v4238_v34 = vsel %vm1941_vm1, %v4206_v27, %v7572_v45  ;;  %v7575_v2 = vpop.permute.xlu0 %7574  ;;  %v9979_v7 = vld [vmem:[#allocation2 + $0x20c] sm:$0xff] }
 0x224   : > { %v2760_v29 = vmax.f32 %v2728_v59, 0.0  ;;  %v6087_v57 = vpop.f32.mrb[64].mxu1  ;;  %v7577_v51 = vunpack.i.h.bf16 %v7575_v2  ;;  %v7576_v25 = vunpack.i.l.bf16 %v7575_v2  ;;  %v7580_v18 = vpop.permute.xlu1 %7579 }
 0x225   : > { %v6088_v48 = vpop.f32.mrb[65].mxu1  ;;  %v7582_v35 = vunpack.i.h.bf16 %v7580_v18  ;;  %v7581_v31 = vunpack.i.l.bf16 %v7580_v18 }
 0x226   : > { %v6089_v13 = vadd.f32 %v6088_v48, %v6087_v57  ;;  %v6090_v43 = vpop.f32.mrb[66].mxu1  ;;  %v2781_v37 = vpack.c.bf16 %v2760_v29, %v2759_v1  ;;  %v4365_v15 = vsel %vm1974_vm2, %v4333_v60, %v7576_v25  ;;  %v4366_v4 = vsel %vm1974_vm2, %v4334_v53, %v7577_v51 }
 0x227   : > { %v6091_v41 = vpop.f32.mrb[67].mxu1  ;;  %v7585_v24 = vpop.permute.xlu0 %7584  ;;  %v4409_v44 = vpack.c.bf16 %v4366_v4, %v4365_v15  ;;  %v4269_v62 = vsel %vm1974_vm2, %v4237_v6, %v7581_v31  ;;  %v4270_v56 = vsel %vm1974_vm2, %v4238_v34, %v7582_v35 }
 0x228   : > { %v2627_v26 = vadd.f32 %v10632_v55, %v6089_v13  ;;  %v6092_v39 = vadd.f32 %v6091_v41, %v6090_v43  ;;  %6457 = vmatprep.mubr.bf16.mxu0 %v2781_v37  ;;  %v7587_v38 = vunpack.i.h.bf16 %v7585_v24  ;;  %v7586_v63 = vunpack.i.l.bf16 %v7585_v24  ;;  %v7590_v5 = vpop.permute.xlu1 %7589 }
 0x229   : > { %v7592_v8 = vunpack.i.h.bf16 %v7590_v5  ;;  %v7591_v14 = vunpack.i.l.bf16 %v7590_v5  ;;  %4736 = vmatprep.mubr.bf16.mxu1 %v4409_v44  ;;  %v4408_v12 = vpack.c.bf16 %v4270_v56, %v4269_v62 }
 0x22a   : > { %v2692_v47 = vmul.f32 %v9899_v21, %v2627_v26  ;;  %v2630_v17 = vadd.f32 %v10633_v50, %v6092_v39  ;;  %v4304_v27 = vsel %vm310_vm0, %v7817_v61, %v7587_v38  ;;  %v4303_v59 = vsel %vm310_vm0, %v7818_v11, %v7586_v63  ;;  %v7820_v61 = vld [vmem:[#allocation2 + $0x2b0] sm:$0xff]  ;;  %v7821_v11 = vld [vmem:[#allocation2 + $0x2a8] sm:$0xff] }
 0x22b   : > { %v4208_v20 = vsel %vm310_vm0, %v9979_v7, %v7592_v8  ;;  %v7595_v28 = vpop.permute.xlu0 %7594  ;;  %4737 = vmatmul.mubr.bf16.gmra.mrb[128].mxu1 %v4408_v12  ;;  %v4207_v45 = vsel %vm310_vm0, %v3246_v33, %v7591_v14  ;;  %v3248_v8 = vld [vmem:[#allocation2 + $0x224] sm:$0xff] }
 0x22c   : > { %v2693_v32 = vmul.f32 %v9899_v21, %v2630_v17  ;;  %v2729_v52 = vadd.f32 %v9906_v9, %v2692_v47  ;;  %v7597_v30 = vunpack.i.h.bf16 %v7595_v28  ;;  %v7596_v1 = vunpack.i.l.bf16 %v7595_v28  ;;  %v7600_v29 = vpop.permute.xlu1 %7599 }
 0x22d   : > { %v7602_v57 = vunpack.i.h.bf16 %v7600_v29  ;;  %v7601_v48 = vunpack.i.l.bf16 %v7600_v29 }
 0x22e   : > { %v2730_v58 = vadd.f32 %v9906_v9, %v2693_v32  ;;  %v2761_v53 = vmax.f32 %v2729_v52, 0.0  ;;  %v4335_v2 = vsel %vm1941_vm1, %v4303_v59, %v7596_v1  ;;  %v4336_v22 = vsel %vm1941_vm1, %v4304_v27, %v7597_v30 }
 0x22f   : > { %v4239_v13 = vsel %vm1941_vm1, %v4207_v45, %v7601_v48  ;;  %v4240_v43 = vsel %vm1941_vm1, %v4208_v20, %v7602_v57  ;;  %v10000_v20 = vld [vmem:[#allocation2 + $0x22c] sm:$0xff] }
 0x230   : > { %v6093_v60 = vpop.f32.mrb[68].mxu1  ;;  %v2762_v6 = vmax.f32 %v2730_v58, 0.0  ;;  %v7610_v31 = vpop.permute.xlu1 %7609 }
 0x231   : > { %v6094_v34 = vpop.f32.mrb[69].mxu1  ;;  %v7605_v37 = vpop.permute.xlu0 %7604  ;;  %v7612_v26 = vunpack.i.h.bf16 %v7610_v31  ;;  %v7611_v39 = vunpack.i.l.bf16 %v7610_v31 }
 0x232   : > { %v6095_v51 = vadd.f32 %v6094_v34, %v6093_v60  ;;  %v6096_v25 = vpop.f32.mrb[70].mxu1  ;;  %v2782_v18 = vpack.c.bf16 %v2762_v6, %v2761_v53  ;;  %v7607_v41 = vunpack.i.h.bf16 %v7605_v37  ;;  %v7606_v35 = vunpack.i.l.bf16 %v7605_v37 }
 0x233   : > { %v6097_v55 = vpop.f32.mrb[71].mxu1  ;;  %v4271_v47 = vsel %vm1974_vm2, %v4239_v13, %v7611_v39  ;;  %v4272_v50 = vsel %vm1974_vm2, %v4240_v43, %v7612_v26 }
 0x234   : > { %v6098_v15 = vadd.f32 %v6097_v55, %v6096_v25  ;;  %v2635_v4 = vadd.f32 %v6095_v51, %v9667_v16  ;;  %6458 = vmatmul.mubr.bf16.gmra.mrb[64].mxu0 %v2782_v18  ;;  %v4367_v24 = vsel %vm1974_vm2, %v4335_v2, %v7606_v35  ;;  %v4368_v44 = vsel %vm1974_vm2, %v4336_v22, %v7607_v41  ;;  %v7620_v33 = vpop.permute.xlu1 %7619 }
 0x235   : > { %v7615_v62 = vpop.permute.xlu0 %7614  ;;  %v4412_v56 = vpack.c.bf16 %v4368_v44, %v4367_v24  ;;  %v7622_v16 = vunpack.i.h.bf16 %v7620_v33  ;;  %v7621_v14 = vunpack.i.l.bf16 %v7620_v33  ;;  %v4411_v12 = vpack.c.bf16 %v4272_v50, %v4271_v47 }
 0x236   : > { %v2694_v17 = vmul.f32 %v9899_v21, %v2635_v4  ;;  %v2638_v38 = vadd.f32 %v6098_v15, %v9684_v19  ;;  %v7617_v63 = vunpack.i.h.bf16 %v7615_v62  ;;  %v7616_v5 = vunpack.i.l.bf16 %v7615_v62 }
 0x237   : > { %4744 = vmatprep.mubr.bf16.mxu1 %v4412_v56  ;;  %v4210_v19 = vsel %vm310_vm0, %v10000_v20, %v7622_v16  ;;  %v4209_v45 = vsel %vm310_vm0, %v3248_v8, %v7621_v14  ;;  %v3250_v14 = vld [vmem:[#allocation2 + $0x244] sm:$0xff] }
 0x238   : > { %v2731_v32 = vadd.f32 %v9906_v9, %v2694_v17  ;;  %v2695_v52 = vmul.f32 %v9899_v21, %v2638_v38  ;;  %v4306_v27 = vsel %vm310_vm0, %v7820_v61, %v7617_v63  ;;  %v4305_v59 = vsel %vm310_vm0, %v7821_v11, %v7616_v5  ;;  %4745 = vmatmul.mubr.bf16.gmra.mrb[132].mxu1 %v4411_v12  ;;  %v7630_v29 = vpop.permute.xlu1 %7629  ;;  %v10634_v38 = vld [vmem:[#allocation8_spill] sm:$0xff] }
 0x239   : > { %v7625_v28 = vpop.permute.xlu0 %7624  ;;  %v7632_v57 = vunpack.i.h.bf16 %v7630_v29  ;;  %v7631_v48 = vunpack.i.l.bf16 %v7630_v29  ;;  %v7823_v11 = vld [vmem:[#allocation2 + $0x2d0] sm:$0xff] }
 0x23a   : > { %v2732_v58 = vadd.f32 %v9906_v9, %v2695_v52  ;;  %v7627_v30 = vunpack.i.h.bf16 %v7625_v28  ;;  %v7626_v1 = vunpack.i.l.bf16 %v7625_v28  ;;  %v2763_v60 = vmax.f32 %v2731_v32, 0.0 }
 0x23b   : > { %v4241_v13 = vsel %vm1941_vm1, %v4209_v45, %v7631_v48  ;;  %v4242_v43 = vsel %vm1941_vm1, %v4210_v19, %v7632_v57  ;;  %v7824_v19 = vld [vmem:[#allocation2 + $0x2c8] sm:$0xff] }
 0x23c   : > { %v2764_v53 = vmax.f32 %v2732_v58, 0.0  ;;  %v4337_v2 = vsel %vm1941_vm1, %v4305_v59, %v7626_v1  ;;  %v4338_v22 = vsel %vm1941_vm1, %v4306_v27, %v7627_v30  ;;  %v7640_v31 = vpop.permute.xlu1 %7639  ;;  %v7825_v58 = vld [vmem:[#allocation2 + $0x24c] sm:$0xff] }
 0x23d   : > { %v6099_v6 = vpop.f32.mrb[72].mxu1  ;;  %v7635_v37 = vpop.permute.xlu0 %7634  ;;  %v7642_v26 = vunpack.i.h.bf16 %v7640_v31  ;;  %v7641_v39 = vunpack.i.l.bf16 %v7640_v31 }
 0x23e   : > { %v6100_v34 = vpop.f32.mrb[73].mxu1  ;;  %v2783_v18 = vpack.c.bf16 %v2764_v53, %v2763_v60  ;;  %v7637_v41 = vunpack.i.h.bf16 %v7635_v37  ;;  %v7636_v35 = vunpack.i.l.bf16 %v7635_v37 }
 0x23f   : > { %v6101_v51 = vadd.f32 %v6100_v34, %v6099_v6  ;;  %v6102_v25 = vpop.f32.mrb[74].mxu1  ;;  %v4273_v47 = vsel %vm1974_vm2, %v4241_v13, %v7641_v39  ;;  %v4274_v50 = vsel %vm1974_vm2, %v4242_v43, %v7642_v26 }
 0x240   : > { %v6103_v55 = vpop.f32.mrb[75].mxu1  ;;  %6461 = vmatprep.mubr.bf16.mxu0 %v2783_v18  ;;  %v4369_v24 = vsel %vm1974_vm2, %v4337_v2, %v7636_v35  ;;  %v4370_v44 = vsel %vm1974_vm2, %v4338_v22, %v7637_v41  ;;  %v7650_v8 = vpop.permute.xlu1 %7649  ;;  %v4414_v52 = vpack.c.bf16 %v4274_v50, %v4273_v47 }
 0x241   : > { %v2643_v15 = vadd.f32 %v9661_v40, %v6101_v51  ;;  %v6104_v4 = vadd.f32 %v6103_v55, %v6102_v25  ;;  %v7645_v62 = vpop.permute.xlu0 %7644  ;;  %v4415_v56 = vpack.c.bf16 %v4370_v44, %v4369_v24  ;;  %v10635_v40 = vld [vmem:[#allocation6_spill] sm:$0xff]  ;;  %v7652_v12 = vunpack.i.h.bf16 %v7650_v8 }
 0x242   : > { %v7647_v5 = vunpack.i.h.bf16 %v7645_v62  ;;  %v7646_v33 = vunpack.i.l.bf16 %v7645_v62  ;;  %v5380_v16 = vrot.slane %v10635_v40, 4  ;;  %v7651_v32 = vunpack.i.l.bf16 %v7650_v8 }
 0x243   : > { %v2696_v17 = vmul.f32 %v9899_v21, %v2643_v15  ;;  %v2646_v63 = vadd.f32 %v10634_v38, %v6104_v4  ;;  %4752 = vmatprep.mubr.bf16.mxu1 %v4415_v56  ;;  %v4212_v45 = vsel %vm310_vm0, %v7825_v58, %v7652_v12  ;;  %v7827_v58 = vld [vmem:[#allocation2 + $0x2e8] sm:$0xff] }
 0x244   : > { %v4308_v59 = vsel %vm310_vm0, %v7823_v11, %v7647_v5  ;;  %v4307_v28 = vsel %vm310_vm0, %v7824_v19, %v7646_v33  ;;  %4753 = vmatmul.mubr.bf16.gmra.mrb[136].mxu1 %v4414_v52  ;;  %v4211_v29 = vsel %vm310_vm0, %v3250_v14, %v7651_v32  ;;  %v7660_v60 = vpop.permute.xlu1 %7659  ;;  %v5381_v53 = vadd.f32 %v5380_v16, %v10635_v40  ;;  %v7826_v19 = vld [vmem:[#allocation2 + $0x2f0] sm:$0xff] }
 0x245   : > { %v2697_v61 = vmul.f32 %v9899_v21, %v2646_v63  ;;  %v2733_v27 = vadd.f32 %v9906_v9, %v2696_v17  ;;  %v7655_v30 = vpop.permute.xlu0 %7654  ;;  %v7662_v6 = vunpack.i.h.bf16 %v7660_v60  ;;  %v7661_v34 = vunpack.i.l.bf16 %v7660_v60 }
 0x246   : > { %v7657_v57 = vunpack.i.h.bf16 %v7655_v30  ;;  %v7656_v48 = vunpack.i.l.bf16 %v7655_v30  ;;  %v5382_v4 = vrot.slane %v5381_v53, 2 }
 0x247   : > { %v2734_v1 = vadd.f32 %v9906_v9, %v2697_v61  ;;  %v2765_v22 = vmax.f32 %v2733_v27, 0.0  ;;  %v4243_v25 = vsel %vm1941_vm1, %v4211_v29, %v7661_v34  ;;  %v4244_v18 = vsel %vm1941_vm1, %v4212_v45, %v7662_v6 }
 0x248   : > { %v6105_v2 = vpop.f32.mrb[76].mxu1  ;;  %v4339_v37 = vsel %vm1941_vm1, %v4307_v28, %v7656_v48  ;;  %v4340_v51 = vsel %vm1941_vm1, %v4308_v59, %v7657_v57  ;;  %v7670_v15 = vpop.permute.xlu1 %7669  ;;  %v5383_v32 = vadd.f32 %v5382_v4, %v5381_v53 }
 0x249   : > { %v2766_v13 = vmax.f32 %v2734_v1, 0.0  ;;  %v6106_v43 = vpop.f32.mrb[77].mxu1  ;;  %v7665_v41 = vpop.permute.xlu0 %7664  ;;  %v7672_v44 = vunpack.i.h.bf16 %v7670_v15  ;;  %v7671_v62 = vunpack.i.l.bf16 %v7670_v15 }
 0x24a   : > { %v6107_v35 = vadd.f32 %v6106_v43, %v6105_v2  ;;  %v6108_v31 = vpop.f32.mrb[78].mxu1  ;;  %v7667_v26 = vunpack.i.h.bf16 %v7665_v41  ;;  %v7666_v39 = vunpack.i.l.bf16 %v7665_v41  ;;  %v5384_v6 = vrot.slane %v5383_v32, 1 }
 0x24b   : > { %v2784_v55 = vpack.c.bf16 %v2766_v13, %v2765_v22  ;;  %v6109_v24 = vpop.f32.mrb[79].mxu1  ;;  %v4275_v5 = vsel %vm1974_vm2, %v4243_v25, %v7671_v62  ;;  %v4276_v33 = vsel %vm1974_vm2, %v4244_v18, %v7672_v44 }
 0x24c   : > { %v6110_v56 = vadd.f32 %v6109_v24, %v6108_v31  ;;  %v2651_v47 = vadd.f32 %v6107_v35, %v9761_v49  ;;  %v4371_v50 = vsel %vm1974_vm2, %v4339_v37, %v7666_v39  ;;  %v4372_v17 = vsel %vm1974_vm2, %v4340_v51, %v7667_v26  ;;  %v7680_v12 = vpop.permute.xlu1 %7679  ;;  %v3252_v49 = vld [vmem:[#allocation2 + $0x264] sm:$0xff] }
 0x24d   : > { %6462 = vmatmul.mubr.bf16.gmra.mrb[68].mxu0 %v2784_v55  ;;  %v7675_v38 = vpop.permute.xlu0 %7674  ;;  %v4418_v63 = vpack.c.bf16 %v4372_v17, %v4371_v50  ;;  %v7682_v52 = vunpack.i.h.bf16 %v7680_v12  ;;  %v7681_v61 = vunpack.i.l.bf16 %v7680_v12  ;;  %v4417_v27 = vpack.c.bf16 %v4276_v33, %v4275_v5 }
 0x24e   : > { %v2698_v8 = vmul.f32 %v9899_v21, %v2651_v47  ;;  %v2654_v40 = vadd.f32 %v6110_v56, %v9774_v46  ;;  %v7677_v16 = vunpack.i.h.bf16 %v7675_v38  ;;  %v7676_v14 = vunpack.i.l.bf16 %v7675_v38  ;;  %v7828_v46 = vld [vmem:[#allocation2 + $0x26c] sm:$0xff] }
 0x24f   : > { %4760 = vmatprep.mubr.bf16.mxu1 %v4418_v63  ;;  %v4214_v30 = vsel %vm310_vm0, %v7828_v46, %v7682_v52  ;;  %v4213_v57 = vsel %vm310_vm0, %v3252_v49, %v7681_v61  ;;  %v5385_v56 = vadd.f32 %v5384_v6, %v5383_v32  ;;  %v7765_v6 = vld [vmem:[%s10541_s4 + $0xc8] sm:$0xff]  }
 0x250   : > { %v2735_v11 = vadd.f32 %v9906_v9, %v2698_v8  ;;  %v2699_v59 = vmul.f32 %v9899_v21, %v2654_v40  ;;  %v4310_v28 = vsel %vm310_vm0, %v7826_v19, %v7677_v16  ;;  %v4309_v45 = vsel %vm310_vm0, %v7827_v58, %v7676_v14  ;;  %4761 = vmatmul.mubr.bf16.gmra.mrb[140].mxu1 %v4417_v27  ;;  %v7690_v53 = vpop.permute.xlu1 %7689  ;;  %v10073_v19 = vld [vmem:[%s10541_s4 + $0x80] sm:$0xff]   ;;  %v10640_v58 = vld [vmem:[#allocation16_spill] sm:$0xff] }
 0x251   : > { %v7685_v1 = vpop.permute.xlu0 %7684  ;;  %v7692_v34 = vunpack.i.h.bf16 %v7690_v53  ;;  %v7691_v2 = vunpack.i.l.bf16 %v7690_v53  ;;  %v5387_v12 = vmul.f32 0.00390625, %v5385_v56  ;;  %v10649_v56 = vld [vmem:[#allocation31_spill] sm:$0xff] }
 0x252   : > { %v2736_v29 = vadd.f32 %v9906_v9, %v2699_v59  ;;  %v7687_v48 = vunpack.i.h.bf16 %v7685_v1  ;;  %v7686_v60 = vunpack.i.l.bf16 %v7685_v1  ;;  %v2767_v22 = vmax.f32 %v2735_v11, 0.0  ;;  %v10637_v11 = vld [vmem:[#allocation12_spill] sm:$0xff]  ;;  %v10638_v59 = vld [vmem:[#allocation10_spill] sm:$0xff] }
 0x253   : > { %v4245_v18 = vsel %vm1941_vm1, %v4213_v57, %v7691_v2  ;;  %v4246_v41 = vsel %vm1941_vm1, %v4214_v30, %v7692_v34  ;;  %v5388_v61 = vpack.c.bf16 %v5387_v12, %v5387_v12  ;;  %v10641_v30 = vld [vmem:[#allocation7_spill] sm:$0xff]  ;;  %v10643_v34 = vld [vmem:[#allocation25_spill] sm:$0xff]  ;;  %v10644_v2 = vld [vmem:[#allocation26_spill] sm:$0xff] }
 0x254   : > { %v2768_v13 = vmax.f32 %v2736_v29, 0.0  ;;  %v6111_v43 = vpop.f32.mrb[80].mxu1  ;;  %v4341_v51 = vsel %vm1941_vm1, %v4309_v45, %v7686_v60  ;;  %v4342_v25 = vsel %vm1941_vm1, %v4310_v28, %v7687_v48  ;;  %v7700_v4 = vpop.permute.xlu1 %7699  ;;  %v10639_v28 = vld [vmem:[#allocation11_spill] sm:$0xff]  ;;  %v7764_v45 = vld [vmem:[%s10541_s4 + $0xc0] sm:$0xff]   ;;  %v10642_v29 = vld [vmem:[#allocation24_spill] sm:$0xff] }
 0x255   : > { %v6112_v37 = vpop.f32.mrb[81].mxu1  ;;  %v7695_v35 = vpop.permute.xlu0 %7694  ;;  %v7702_v44 = vunpack.i.h.bf16 %v7700_v4  ;;  %v7701_v62 = vunpack.i.l.bf16 %v7700_v4  ;;  %v7830_v12 = vld [vmem:[#allocation2 + $0x1b4] sm:$0xff] }
 0x256   : > { %v6113_v31 = vadd.f32 %v6112_v37, %v6111_v43  ;;  %v6114_v55 = vpop.f32.mrb[82].mxu1  ;;  %v2785_v26 = vpack.c.bf16 %v2768_v13, %v2767_v22  ;;  %v7697_v39 = vunpack.i.h.bf16 %v7695_v35  ;;  %v7696_v15 = vunpack.i.l.bf16 %v7695_v35  ;;  %v7767_v35 = vld [vmem:[%s10541_s4 + $0xd0] sm:$0xff]  }
 0x257   : > { %v6115_v24 = vpop.f32.mrb[83].mxu1  ;;  %v4277_v5 = vsel %vm1974_vm2, %v4245_v18, %v7701_v62  ;;  %v4278_v33 = vsel %vm1974_vm2, %v4246_v41, %v7702_v44  ;;  %v10645_v18 = vld [vmem:[#allocation27_spill] sm:$0xff]  ;;  %v10646_v41 = vld [vmem:[#allocation28_spill] sm:$0xff]  ;;  %v7768_v62 = vld [vmem:[%s10541_s4 + $0xd8] sm:$0xff]  }
 0x258   : > { %v2659_v47 = vadd.f32 %v9757_v36, %v6113_v31  ;;  %v6116_v50 = vadd.f32 %v6115_v24, %v6114_v55  ;;  %6465 = vmatprep.mubr.bf16.mxu0 %v2785_v26  ;;  %v4373_v17 = vsel %vm1974_vm2, %v4341_v51, %v7696_v15  ;;  %v4374_v38 = vsel %vm1974_vm2, %v4342_v25, %v7697_v39  ;;  %v10647_v55 = vld [vmem:[#allocation29_spill] sm:$0xff]  ;;  %v10648_v39 = vld [vmem:[#allocation30_spill] sm:$0xff] }
 0x259   : > { %v4421_v63 = vpack.c.bf16 %v4374_v38, %v4373_v17  ;;  %v4420_v16 = vpack.c.bf16 %v4278_v33, %v4277_v5  ;;  %v3415_v38 = vld [vmem:[#allocation2 + $0x194] sm:$0xff] }
 0x25a   : > { %v2700_v8 = vmul.f32 %v9899_v21, %v2659_v47  ;;  %v2662_v40 = vadd.f32 %v9768_v23, %v6116_v50  ;;  %v10636_v23 = vld [vmem:[#allocation9_spill] sm:$0xff]  ;;  %v10650_v50 = vld [vmem:[#allocation32_spill] sm:$0xff] }
 0x25b   : > { %4768 = vmatprep.mubr.bf16.mxu1 %v4421_v63 }
 0x25c   : > { %v2701_v14 = vmul.f32 %v9899_v21, %v2662_v40  ;;  %v2737_v36 = vadd.f32 %v9906_v9, %v2700_v8  ;;  %4769 = vmatmul.mubr.bf16.gmra.mrb[144].mxu1 %v4420_v16  ;;  %v7757_v21 = vld [vmem:[%s10539_s2 + $0x118] sm:$0xff]   ;;  %v4377_v40 = vpack.c.bf16 %v3415_v38, %v9881_v42  ;;  %v7760_v42 = vld [vmem:[%s10541_s4 + $0x88] sm:$0xff]  }
 0x25d   : > { %6605 = vmatprep.mubr.msk.bf16.mxu1 %vm7909_vm3, %v10617_v3  ;;  %v10651_v16 = vld [vmem:[#allocation33_spill] sm:$0xff] }
 0x25e   : > { %v2738_v32 = vadd.f32 %v9906_v9, %v2701_v14  ;;  %v2769_v49 = vmax.f32 %v2737_v36, 0.0  ;;  %v7829_v9 = vld [vmem:[%s10539_s2 + $0x110] sm:$0xff]   ;;  %v7770_v36 = vld [vmem:[%s10541_s4 + $0xe0] sm:$0xff]  }
 0x25f   : > { %v3417_v14 = vld [vmem:[#allocation2 + $0x1d4] sm:$0xff] }
 0x260   : > { %v2770_v52 = vmax.f32 %v2738_v32, 0.0  ;;  %v4380_v32 = vpack.c.bf16 %v7830_v12, %v9912_v10  ;;  %v7761_v10 = vld [vmem:[%s10541_s4 + $0x90] sm:$0xff]  }
 0x261   : > { %v3426_v38 = vld [vmem:[#allocation2 + $0x2f4] sm:$0xff] }
 0x262   : > { %v2786_v27 = vpack.c.bf16 %v2770_v52, %v2769_v49  ;;  %v4383_v49 = vpack.c.bf16 %v3417_v14, %v9933_v0  ;;  %v3418_v52 = vld [vmem:[#allocation2 + $0x1f4] sm:$0xff]  ;;  %v7837_v14 = vld [vmem:[#allocation2 + $0x30c] sm:$0xff] }
 0x264   : > { %6466 = vmatmul.mubr.bf16.gmra.mrb[72].mxu0 %v2786_v27  ;;  %6606 = vmatmul.mubr.msk.bf16.vlgmr.msra.gmra.mrb[148].mxu1 %vm310_vm0, %v5388_v61  ;;  %v3419_v27 = vld [vmem:[#allocation2 + $0x214] sm:$0xff] }
 0x265   : > { %6485 = vmatprep.mubr.bf16.mxu0 %v10636_v23  ;;  %6625 = vmatprep.mubr.msk.bf16.mxu1 %vm7909_vm3, %v10617_v3 }
 0x266   : > { %6610 = vmatpush3.bf16.msra.mxu1 %v7764_v45  ;;  %v3421_v45 = vld [vmem:[#allocation2 + $0x254] sm:$0xff] }
 0x267   : > { %6611 = vmatprep.subr.bf16.mxu1 %v10617_v3 }
 0x26a   : > { %6612 = vmatpush3.bf16.msra.mxu1 %v7765_v6  ;;  %v7766_v6 = vld [vmem:[%s10541_s4 + $0xa8] sm:$0xff]  }
 0x26b   : > { %6613 = vmatprep.subr.bf16.mxu1 %v10617_v3 }
 0x26c   : > { %6486 = vmatmul.mubr.bf16.vlgmr.msra.gmra.mrb[44].mxu0 %v10637_v11  ;;  %v4386_v11 = vpack.c.bf16 %v3418_v52, %v9954_v54  ;;  %v7763_v54 = vld [vmem:[%s10541_s4 + $0xa0] sm:$0xff]  }
 0x26d   : > { %6518 = vmatpush3.bf16.msra.mxu0 %v7829_v9  ;;  %6489 = vmatprep.mubr.bf16.mxu0 %v10638_v59  ;;  %v4389_v59 = vpack.c.bf16 %v3419_v27, %v9979_v7  ;;  %v3429_v27 = vld [vmem:[#allocation2 + $0x354] sm:$0xff] }
 0x26e   : > { %6519 = vmatprep.subr.bf16.mxu0 %v7757_v21  ;;  %6614 = vmatpush3.bf16.msra.mxu1 %v7767_v35 }
 0x26f   : > { %6615 = vmatprep.subr.bf16.mxu1 %v10617_v3 }
 0x271   : > { %6520 = vmatpush3.bf16.msra.mxu0 %v7757_v21 }
 0x272   : > { %6553 = vmatprep.subr.bf16.mxu0 %v10073_v19  ;;  %6616 = vmatpush3.bf16.msra.mxu1 %v7768_v62  ;;  %v7834_v62 = vld [vmem:[#allocation2 + $0x2ac] sm:$0xff] }
 0x273   : > { %6617 = vmatprep.subr.bf16.mxu1 %v10617_v3 }
 0x274   : > { %6490 = vmatmul.mubr.bf16.gmra.mrb[48].mxu0 %v10639_v28  ;;  %v6199_v46 = vpop.f32.mrb[84].mxu1 }
 0x275   : > { %6493 = vmatprep.mubr.bf16.mxu0 %v10640_v58  ;;  %v6200_v1 = vpop.f32.mrb[85].mxu1  ;;  %v3420_v58 = vld [vmem:[#allocation2 + $0x234] sm:$0xff] }
 0x276   : > { %v10084_v57 = vadd.f32 %v6200_v1, %v6199_v46  ;;  %v6202_v48 = vpop.f32.mrb[86].mxu1  ;;  %6618 = vmatpush3.bf16.msra.mxu1 %v7770_v36  ;;  %v4392_v7 = vpack.c.bf16 %v3420_v58, %v10000_v20  ;;  %v3422_v20 = vld [vmem:[#allocation2 + $0x274] sm:$0xff] }
 0x277   : > { %v6203_v60 = vpop.f32.mrb[87].mxu1  ;;  %6619 = vmatprep.subr.bf16.mxu1 %v10617_v3 }
 0x278   : > { %v10086_v53 = vadd.f32 %v6203_v60, %v6202_v48 }
 0x27c   : > { %6494 = vmatmul.mubr.bf16.gmra.mrb[52].mxu0 %v10641_v30  ;;  %v7831_v30 = vld [vmem:[#allocation2 + $0x24c] sm:$0xff] }
 0x27d   : > { %6497 = vmatprep.mubr.bf16.mxu0 %v10642_v29  ;;  %v4395_v1 = vpack.c.bf16 %v3421_v45, %v7831_v30 }
 0x284   : > { %6498 = vmatmul.mubr.bf16.gmra.mrb[56].mxu0 %v10643_v34  ;;  %v6205_v22 = vpop.f32.mrb[88].mxu1 }
 0x285   : > { %6501 = vmatprep.mubr.bf16.mxu0 %v10644_v2  ;;  %v6206_v13 = vpop.f32.mrb[89].mxu1 }
 0x286   : > { %v10094_v43 = vadd.f32 %v6206_v13, %v6205_v22  ;;  %v6208_v37 = vpop.f32.mrb[90].mxu1  ;;  %v3423_v22 = vld [vmem:[#allocation2 + $0x294] sm:$0xff] }
 0x287   : > { %v6209_v51 = vpop.f32.mrb[91].mxu1  ;;  %v7769_v13 = vld [vmem:[%s10541_s4 + $0xb0] sm:$0xff]  }
 0x288   : > { %v10096_v25 = vadd.f32 %v6209_v51, %v6208_v37  ;;  %v7832_v37 = vld [vmem:[#allocation2 + $0x26c] sm:$0xff] }
 0x289   : > { %v4398_v51 = vpack.c.bf16 %v3422_v20, %v7832_v37 }
 0x28c   : > { %6502 = vmatmul.mubr.bf16.gmra.mrb[60].mxu0 %v10645_v18  ;;  %v7833_v18 = vld [vmem:[#allocation2 + $0x28c] sm:$0xff] }
 0x28d   : > { %6505 = vmatprep.mubr.bf16.mxu0 %v10646_v41  ;;  %v4401_v41 = vpack.c.bf16 %v3423_v22, %v7833_v18 }
 0x291   : > { %v6211_v31 = vpop.f32.mrb[92].mxu1 }
 0x292   : > { %v6212_v26 = vpop.f32.mrb[93].mxu1 }
 0x293   : > { %v10106_v15 = vadd.f32 %v6212_v26, %v6211_v31  ;;  %v6214_v4 = vpop.f32.mrb[94].mxu1  ;;  %v3424_v31 = vld [vmem:[#allocation2 + $0x2b4] sm:$0xff] }
 0x294   : > { %6506 = vmatmul.mubr.bf16.gmra.mrb[64].mxu0 %v10647_v55  ;;  %v6215_v24 = vpop.f32.mrb[95].mxu1  ;;  %v3425_v26 = vld [vmem:[#allocation2 + $0x2d4] sm:$0xff] }
 0x295   : > { %6509 = vmatprep.mubr.bf16.mxu0 %v10648_v39  ;;  %v10108_v44 = vadd.f32 %v6215_v24, %v6214_v4 }
 0x29a   : > { %v6217_v47 = vpop.f32.mrb[96].mxu1 }
 0x29b   : > { %v6218_v17 = vpop.f32.mrb[97].mxu1 }
 0x29c   : > { %6510 = vmatmul.mubr.bf16.gmra.mrb[68].mxu0 %v10649_v56  ;;  %v10116_v63 = vadd.f32 %v6218_v17, %v6217_v47  ;;  %v6220_v5 = vpop.f32.mrb[98].mxu1  ;;  %v4404_v56 = vpack.c.bf16 %v3424_v31, %v7834_v62  ;;  %v7771_v31 = vld [vmem:[%s10541_s4 + $0xe8] sm:$0xff]  }
 0x29d   : > { %6513 = vmatprep.mubr.bf16.mxu0 %v10650_v50  ;;  %v6221_v33 = vpop.f32.mrb[99].mxu1  ;;  %v7835_v50 = vld [vmem:[#allocation2 + $0x2cc] sm:$0xff]  ;;  %6620 = vmatpush3.bf16.msra.mxu1 %v7771_v31 }
 0x29e   : > { %v10118_v8 = vadd.f32 %v6221_v33, %v6220_v5  ;;  %v4407_v17 = vpack.c.bf16 %v3425_v26, %v7835_v50  ;;  %v3427_v5 = vld [vmem:[#allocation2 + $0x314] sm:$0xff]  ;;  %v7836_v33 = vld [vmem:[#allocation2 + $0x2ec] sm:$0xff]  ;;  %6621 = vmatprep.subr.bf16.mxu1 %v10617_v3 }
 0x29f   : > { %v4413_v36 = vpack.c.bf16 %v3427_v5, %v7837_v14  ;;  %v7774_v50 = vld [vmem:[%s10541_s4 + $0xf8] sm:$0xff]  }
 0x2a4   : > { %6514 = vmatmul.mubr.bf16.gmra.mrb[72].mxu0 %v10651_v16 }
 0x2a5   : > { %6521 = vmatprep.mubr.msk.bf16.mxu0 %vm310_vm0, %v4377_v40  ;;  %v4410_v40 = vpack.c.bf16 %v3426_v38, %v7836_v33 }
 0x2a7   : > { %v6223_v61 = vpop.f32.mrb[100].mxu1 }
 0x2a8   : > { %v6224_v23 = vpop.f32.mrb[101].mxu1 }
 0x2a9   : > { %v10138_v0 = vadd.f32 %v6224_v23, %v6223_v61  ;;  %v6226_v21 = vpop.f32.mrb[102].mxu1  ;;  %v3428_v61 = vld [vmem:[#allocation2 + $0x334] sm:$0xff]  ;;  %v7838_v23 = vld [vmem:[#allocation2 + $0x32c] sm:$0xff] }
 0x2aa   : > { %v6227_v9 = vpop.f32.mrb[103].mxu1 }
 0x2ab   : > { %v10142_v28 = vadd.f32 %v6227_v9, %v6226_v21  ;;  %v7839_v21 = vld [vmem:[#allocation2 + $0x34c] sm:$0xff] }
 0x2ac   : > { %6522 = vmatmul.mubr.msk.bf16.vlgmr.msra.gmra.mrb[76].mxu0 %vm310_vm0, %v4380_v32 }
 0x2ad   : > { %6525 = vmatprep.mubr.msk.bf16.mxu0 %vm310_vm0, %v4383_v49  ;;  %6554 = vmatpush3.bf16.msra.mxu0 %v10073_v19  ;;  %v7762_v19 = vld [vmem:[%s10541_s4 + $0x98] sm:$0xff]  }
 0x2ae   : > { %6555 = vmatprep.subr.bf16.mxu0 %v7760_v42 }
 0x2b1   : > { %6556 = vmatpush3.bf16.msra.mxu0 %v7760_v42 }
 0x2b2   : > { %6557 = vmatprep.subr.bf16.mxu0 %v7761_v10 }
 0x2b4   : > { %6526 = vmatmul.mubr.msk.bf16.gmra.mrb[80].mxu0 %vm310_vm0, %v4386_v11  ;;  %v4419_v11 = vpack.c.bf16 %v3429_v27, %v7839_v21 }
 0x2b5   : > { %6529 = vmatprep.mubr.msk.bf16.mxu0 %vm310_vm0, %v4389_v59  ;;  %6558 = vmatpush3.bf16.msra.mxu0 %v7761_v10  ;;  %v6229_v46 = vpop.f32.mrb[104].mxu1  ;;  %v4416_v10 = vpack.c.bf16 %v3428_v61, %v7838_v23  ;;  %v3430_v59 = vld [vmem:[#allocation2 + $0x374] sm:$0xff] }
 0x2b6   : > { %6559 = vmatprep.subr.bf16.mxu0 %v7762_v19  ;;  %v6230_v29 = vpop.f32.mrb[105].mxu1 }
 0x2b7   : > { %v10153_v48 = vadd.f32 %v6230_v29, %v6229_v46  ;;  %v6232_v60 = vpop.f32.mrb[106].mxu1 }
 0x2b8   : > { %v6233_v34 = vpop.f32.mrb[107].mxu1 }
 0x2b9   : > { %6560 = vmatpush3.bf16.msra.mxu0 %v7762_v19  ;;  %v10159_v2 = vadd.f32 %v6233_v34, %v6232_v60 }
 0x2ba   : > { %6561 = vmatprep.subr.bf16.mxu0 %v7763_v54 }
 0x2bc   : > { %6530 = vmatmul.mubr.msk.bf16.gmra.mrb[84].mxu0 %vm310_vm0, %v4392_v7  ;;  %v7840_v7 = vld [vmem:[#allocation2 + $0x36c] sm:$0xff] }
 0x2bd   : > { %6533 = vmatprep.mubr.msk.bf16.mxu0 %vm310_vm0, %v4395_v1  ;;  %6562 = vmatpush3.bf16.msra.mxu0 %v7763_v54  ;;  %v4422_v46 = vpack.c.bf16 %v3430_v59, %v7840_v7 }
 0x2be   : > { %6563 = vmatprep.subr.bf16.mxu0 %v7766_v6 }
 0x2c1   : > { %6564 = vmatpush3.bf16.msra.mxu0 %v7766_v6 }
 0x2c2   : > { %6565 = vmatprep.subr.bf16.mxu0 %v7769_v13  ;;  %v6235_v35 = vpop.f32.mrb[108].mxu1 }
 0x2c3   : > { %v6236_v55 = vpop.f32.mrb[109].mxu1 }
 0x2c4   : > { %6534 = vmatmul.mubr.msk.bf16.gmra.mrb[88].mxu0 %vm310_vm0, %v4398_v51  ;;  %v10167_v39 = vadd.f32 %v6236_v55, %v6235_v35  ;;  %v6238_v4 = vpop.f32.mrb[110].mxu1 }
 0x2c5   : > { %6537 = vmatprep.mubr.msk.bf16.mxu0 %vm310_vm0, %v4401_v41  ;;  %6566 = vmatpush3.bf16.msra.mxu0 %v7769_v13  ;;  %v6239_v24 = vpop.f32.mrb[111].mxu1 }
 0x2c6   : > { %v10169_v47 = vadd.f32 %v6239_v24, %v6238_v4 }
 0x2cc   : > { %6538 = vmatmul.mubr.msk.bf16.gmra.mrb[92].mxu0 %vm310_vm0, %v4404_v56  ;;  %v7773_v56 = vld [vmem:[%s10541_s4 + $0xf0] sm:$0xff]  }
 0x2cd   : > { %6541 = vmatprep.mubr.msk.bf16.mxu0 %vm310_vm0, %v4407_v17  ;;  %6622 = vmatpush3.bf16.msra.mxu1 %v7773_v56  ;;  %v7772_v17 = vld [vmem:[%s10541_s4 + $0xb8] sm:$0xff]  }
 0x2ce   : > { %v6241_v16 = vpop.f32.mrb[112].mxu1  ;;  %6623 = vmatprep.subr.bf16.mxu1 %v10617_v3  ;;  %6567 = vmatprep.subr.bf16.mxu0 %v7772_v17 }
 0x2cf   : > { %v6242_v12 = vpop.f32.mrb[113].mxu1  ;;  %6568 = vmatpush3.bf16.msra.mxu0 %v7772_v17 }
 0x2d0   : > { %v10173_v32 = vadd.f32 %v6242_v12, %v6241_v16  ;;  %v6244_v49 = vpop.f32.mrb[114].mxu1 }
 0x2d1   : > { %v6245_v42 = vpop.f32.mrb[115].mxu1  ;;  %6624 = vmatpush3.bf16.msra.mxu1 %v7774_v50  ;;  %v10243_v50 = vld [vmem:[%s10543_s6 + $0x2] ss:$0 sm:$0xff] }
 0x2d2   : > { %v10176_v52 = vadd.f32 %v6245_v42, %v6244_v49 }
 0x2d4   : > { %6542 = vmatmul.mubr.msk.bf16.gmra.mrb[96].mxu0 %vm310_vm0, %v4410_v40 }
 0x2d5   : > { %6545 = vmatprep.mubr.msk.bf16.mxu0 %vm310_vm0, %v4413_v36 }
 0x2da   : > { %v6247_v9 = vpop.f32.mrb[116].mxu1 }
 0x2db   : > { %v6248_v19 = vpop.f32.mrb[117].mxu1 }
 0x2dc   : > { %6546 = vmatmul.mubr.msk.bf16.gmra.mrb[100].mxu0 %vm310_vm0, %v4416_v10  ;;  %v10181_v58 = vadd.f32 %v6248_v19, %v6247_v9  ;;  %v6250_v45 = vpop.f32.mrb[118].mxu1 }
 0x2dd   : > { %6549 = vmatprep.mubr.msk.bf16.mxu0 %vm310_vm0, %v4419_v11  ;;  %v6251_v54 = vpop.f32.mrb[119].mxu1 }
 0x2de   : > { %v10183_v30 = vadd.f32 %v6251_v54, %v6250_v45 }
 0x2e4   : > { %6550 = vmatmul.mubr.msk.bf16.gmra.mrb[104].mxu0 %vm310_vm0, %v4422_v46 }
 0x2e6   : > { %v6253_v1 = vpop.f32.mrb[120].mxu1 }
 0x2e7   : > { %v6254_v29 = vpop.f32.mrb[121].mxu1 }
 0x2e8   : > { %v10186_v60 = vadd.f32 %v6254_v29, %v6253_v1  ;;  %v6256_v6 = vpop.f32.mrb[122].mxu1  ;;  %v5448_v1 = vld [vmem:[%s10542_s5 + $0x3] sm:$0x1] }
 0x2e9   : > { %v6257_v34 = vpop.f32.mrb[123].mxu1 }
 0x2ea   : > { %v10188_v20 = vadd.f32 %v6257_v34, %v6256_v6  ;;  %v5450_v6 = vld [vmem:[%s10543_s6 + $0x3] sm:$0x1] }
 0x2f2   : > { %v6259_v22 = vpop.f32.mrb[124].mxu1 }
 0x2f3   : > { %v6260_v13 = vpop.f32.mrb[125].mxu1 }
 0x2f4   : > { %v10190_v37 = vadd.f32 %v6260_v13, %v6259_v22  ;;  %v6262_v51 = vpop.f32.mrb[126].mxu1 }
 0x2f5   : > { %v6263_v18 = vpop.f32.mrb[127].mxu1 }
 0x2f6   : > { %v10192_v41 = vadd.f32 %v6263_v18, %v6262_v51 }
 0x2fe   : > { %v6265_v35 = vpop.f32.mrb[128].mxu1 }
 0x2ff   : > { %v6266_v55 = vpop.f32.mrb[129].mxu1 }
 0x300   : > { %v10197_v26 = vadd.f32 %v6266_v55, %v6265_v35  ;;  %v6268_v4 = vpop.f32.mrb[130].mxu1 }
 0x301   : > { %v6269_v24 = vpop.f32.mrb[131].mxu1 }
 0x302   : > { %v10200_v62 = vadd.f32 %v6269_v24, %v6268_v4  ;;  %v10237_v4 = vld [vmem:[%s10542_s5 + $0x2] ss:$0 sm:$0xff] }
 0x30b   : > { %v6271_v38 = vpop.f32.mrb[132].mxu1 }
 0x30c   : > { %v6272_v5 = vpop.f32.mrb[133].mxu1 }
 0x30d   : > { %v10212_v33 = vadd.f32 %v6272_v5, %v6271_v38  ;;  %v6274_v40 = vpop.f32.mrb[134].mxu1 }
 0x30e   : > { %v6275_v16 = vpop.f32.mrb[135].mxu1 }
 0x30f   : > { %v10214_v14 = vadd.f32 %v6275_v16, %v6274_v40 }
 0x317   : > { %v6277_v3 = vpop.f32.mrb[136].mxu1 }
 0x318   : > { %v6278_v36 = vpop.f32.mrb[137].mxu1 }
 0x319   : > { %v10216_v12 = vadd.f32 %v6278_v36, %v6277_v3  ;;  %v6280_v49 = vpop.f32.mrb[138].mxu1 }
 0x31a   : > { %v6281_v42 = vpop.f32.mrb[139].mxu1 }
 0x31b   : > { %v10218_v61 = vadd.f32 %v6281_v42, %v6280_v49 }
 0x323   : > { %v6283_v27 = vpop.f32.mrb[140].mxu1 }
 0x324   : > { %v6284_v23 = vpop.f32.mrb[141].mxu1 }
 0x325   : > { %v10220_v10 = vadd.f32 %v6284_v23, %v6283_v27  ;;  %v6286_v21 = vpop.f32.mrb[142].mxu1 }
 0x326   : > { %v6287_v11 = vpop.f32.mrb[143].mxu1 }
 0x327   : > { %v10222_v9 = vadd.f32 %v6287_v11, %v6286_v21 }
 0x32f   : > { %v6289_v59 = vpop.f32.mrb[144].mxu1 }
 0x330   : > { %v6290_v19 = vpop.f32.mrb[145].mxu1 }
 0x331   : > { %v10224_v45 = vadd.f32 %v6290_v19, %v6289_v59  ;;  %v6292_v54 = vpop.f32.mrb[146].mxu1 }
 0x332   : > { %v6293_v7 = vpop.f32.mrb[147].mxu1 }
 0x333   : > { %v10226_v46 = vadd.f32 %v6293_v7, %v6292_v54 }
 0x337   : > { %v5442_v29 = vpop.f32.mrb[148].mxu1 }
 0x338   : > { %v5449_v34 = vmul.f32 %v5448_v1, %v5442_v29  ;;  %v6607_v22 = vpop.f32.mrb[149].mxu1 }
 0x339   : > { %v5445_v13 = vpop.f32.mrb[150].mxu1 }
 0x33a   : > { %v5451_v51 = vadd.f32 %v5450_v6, %v5449_v34  ;;  %v6608_v18 = vpop.f32.mrb[151].mxu1 }
 0x33c   : > { %v5452_v35 = vmax.f32 %v5451_v51, 0.0 }
 0x33e   : > { %v5453_v31 = vpack.c.bf16 %v5452_v35, %v5452_v35 }
 0x340   : > { %6626 = vmatmul.mubr.bf16.vlgmr.msra.gmra.mrb[152].mxu1 %v5453_v31 }
 0x37f   : > { %v6523_v55 = vpop.f32.mrb[76].mxu0 }
 0x380   : > { %v4820_v24 = vadd.f32 %v6523_v55, %v10094_v43  ;;  %v4811_v56 = vpop.f32.mrb[77].mxu0 }
 0x381   : > { %v4812_v17 = vadd.f32 %v10084_v57, %v4811_v56  ;;  %v6524_v38 = vpop.f32.mrb[78].mxu0 }
 0x382   : > { %v4945_v5 = vmul.f32 %v10237_v4, %v4820_v24  ;;  %v4823_v40 = vadd.f32 %v6524_v38, %v10096_v25  ;;  %v4814_v16 = vpop.f32.mrb[79].mxu0 }
 0x383   : > { %v4943_v3 = vmul.f32 %v10237_v4, %v4812_v17  ;;  %v4815_v36 = vadd.f32 %v10086_v53, %v4814_v16 }
 0x384   : > { %v4982_v43 = vadd.f32 %v10243_v50, %v4945_v5  ;;  %v4946_v49 = vmul.f32 %v10237_v4, %v4823_v40 }
 0x385   : > { %v4980_v42 = vadd.f32 %v10243_v50, %v4943_v3  ;;  %v4944_v27 = vmul.f32 %v10237_v4, %v4815_v36 }
 0x386   : > { %v4983_v57 = vadd.f32 %v10243_v50, %v4946_v49  ;;  %v5014_v11 = vmax.f32 %v4982_v43, 0.0 }
 0x387   : > { %v4981_v23 = vadd.f32 %v10243_v50, %v4944_v27  ;;  %v6527_v21 = vpop.f32.mrb[80].mxu0  ;;  %v5012_v54 = vmax.f32 %v4980_v42, 0.0 }
 0x388   : > { %v5015_v25 = vmax.f32 %v4983_v57, 0.0  ;;  %v4836_v59 = vadd.f32 %v6527_v21, %v10116_v63  ;;  %v4827_v19 = vpop.f32.mrb[81].mxu0 }
 0x389   : > { %v5013_v53 = vmax.f32 %v4981_v23, 0.0  ;;  %v4828_v7 = vadd.f32 %v10106_v15, %v4827_v19  ;;  %v6528_v1 = vpop.f32.mrb[82].mxu0 }
 0x38a   : > { %v5045_v29 = vpack.c.bf16 %v5015_v25, %v5014_v11  ;;  %v4949_v6 = vmul.f32 %v10237_v4, %v4836_v59  ;;  %v4839_v34 = vadd.f32 %v6528_v1, %v10118_v8  ;;  %v4830_v22 = vpop.f32.mrb[83].mxu0 }
 0x38b   : > { %v4947_v13 = vmul.f32 %v10237_v4, %v4828_v7  ;;  %v4831_v51 = vadd.f32 %v10108_v44, %v4830_v22  ;;  %v5044_v18 = vpack.c.bf16 %v5013_v53, %v5012_v54 }
 0x38c   : > { %v4986_v35 = vadd.f32 %v10243_v50, %v4949_v6  ;;  %v4950_v63 = vmul.f32 %v10237_v4, %v4839_v34 }
 0x38d   : > { %v4984_v31 = vadd.f32 %v10243_v50, %v4947_v13  ;;  %v4948_v15 = vmul.f32 %v10237_v4, %v4831_v51  ;;  %6569 = vmatprep.mubr.bf16.mxu0 %v5044_v18 }
 0x38e   : > { %v4987_v55 = vadd.f32 %v10243_v50, %v4950_v63  ;;  %6570 = vmatmul.mubr.bf16.vlgmr.msra.gmra.mrb[44].mxu0 %v5045_v29  ;;  %v5018_v56 = vmax.f32 %v4986_v35, 0.0 }
 0x38f   : > { %v4985_v8 = vadd.f32 %v10243_v50, %v4948_v15  ;;  %v6531_v24 = vpop.f32.mrb[84].mxu0  ;;  %v5016_v5 = vmax.f32 %v4984_v31, 0.0 }
 0x390   : > { %v5019_v17 = vmax.f32 %v4987_v55, 0.0  ;;  %v4852_v44 = vadd.f32 %v6531_v24, %v10153_v48  ;;  %v4843_v38 = vpop.f32.mrb[85].mxu0 }
 0x391   : > { %v5017_v40 = vmax.f32 %v4985_v8, 0.0  ;;  %v4844_v16 = vadd.f32 %v10138_v0, %v4843_v38  ;;  %v6532_v3 = vpop.f32.mrb[86].mxu0 }
 0x392   : > { %v4953_v36 = vmul.f32 %v10237_v4, %v4852_v44  ;;  %v4855_v43 = vadd.f32 %v6532_v3, %v10159_v2  ;;  %v4846_v49 = vpop.f32.mrb[87].mxu0  ;;  %v5047_v42 = vpack.c.bf16 %v5019_v17, %v5018_v56 }
 0x393   : > { %v4951_v27 = vmul.f32 %v10237_v4, %v4844_v16  ;;  %v4847_v57 = vadd.f32 %v10142_v28, %v4846_v49  ;;  %v5046_v23 = vpack.c.bf16 %v5017_v40, %v5016_v5 }
 0x394   : > { %v4990_v21 = vadd.f32 %v10243_v50, %v4953_v36  ;;  %v4954_v48 = vmul.f32 %v10237_v4, %v4855_v43 }
 0x395   : > { %v4988_v11 = vadd.f32 %v10243_v50, %v4951_v27  ;;  %v4952_v0 = vmul.f32 %v10237_v4, %v4847_v57  ;;  %6573 = vmatprep.mubr.bf16.mxu0 %v5046_v23 }
 0x396   : > { %v4991_v25 = vadd.f32 %v10243_v50, %v4954_v48  ;;  %6574 = vmatmul.mubr.bf16.gmra.mrb[48].mxu0 %v5047_v42  ;;  %v5022_v19 = vmax.f32 %v4990_v21, 0.0 }
 0x397   : > { %v4989_v2 = vadd.f32 %v10243_v50, %v4952_v0  ;;  %v6535_v59 = vpop.f32.mrb[88].mxu0  ;;  %v5020_v7 = vmax.f32 %v4988_v11, 0.0 }
 0x398   : > { %v5023_v54 = vmax.f32 %v4991_v25, 0.0  ;;  %v4868_v28 = vadd.f32 %v6535_v59, %v10173_v32  ;;  %v4859_v53 = vpop.f32.mrb[89].mxu0 }
 0x399   : > { %v5021_v1 = vmax.f32 %v4989_v2, 0.0  ;;  %v4860_v29 = vadd.f32 %v10167_v39, %v4859_v53  ;;  %v6536_v6 = vpop.f32.mrb[90].mxu0 }
 0x39a   : > { %v4957_v34 = vmul.f32 %v10237_v4, %v4868_v28  ;;  %v4871_v22 = vadd.f32 %v6536_v6, %v10176_v52  ;;  %v4862_v13 = vpop.f32.mrb[91].mxu0  ;;  %v5049_v51 = vpack.c.bf16 %v5023_v54, %v5022_v19 }
 0x39b   : > { %v4955_v18 = vmul.f32 %v10237_v4, %v4860_v29  ;;  %v4863_v35 = vadd.f32 %v10169_v47, %v4862_v13  ;;  %v5048_v63 = vpack.c.bf16 %v5021_v1, %v5020_v7 }
 0x39c   : > { %v4994_v31 = vadd.f32 %v10243_v50, %v4957_v34  ;;  %v4958_v32 = vmul.f32 %v10237_v4, %v4871_v22 }
 0x39d   : > { %v4992_v15 = vadd.f32 %v10243_v50, %v4955_v18  ;;  %v4956_v39 = vmul.f32 %v10237_v4, %v4863_v35  ;;  %6577 = vmatprep.mubr.bf16.mxu0 %v5048_v63 }
 0x39e   : > { %v4995_v55 = vadd.f32 %v10243_v50, %v4958_v32  ;;  %6578 = vmatmul.mubr.bf16.gmra.mrb[52].mxu0 %v5049_v51  ;;  %v5026_v24 = vmax.f32 %v4994_v31, 0.0 }
 0x39f   : > { %v4993_v52 = vadd.f32 %v10243_v50, %v4956_v39  ;;  %v6539_v8 = vpop.f32.mrb[92].mxu0  ;;  %v5024_v44 = vmax.f32 %v4992_v15, 0.0 }
 0x3a0   : > { %v5027_v56 = vmax.f32 %v4995_v55, 0.0  ;;  %v4884_v47 = vadd.f32 %v6539_v8, %v10186_v60  ;;  %v4875_v17 = vpop.f32.mrb[93].mxu0 }
 0x3a1   : > { %v5025_v38 = vmax.f32 %v4993_v52, 0.0  ;;  %v4876_v5 = vadd.f32 %v10181_v58, %v4875_v17  ;;  %v6540_v40 = vpop.f32.mrb[94].mxu0 }
 0x3a2   : > { %v4961_v16 = vmul.f32 %v10237_v4, %v4884_v47  ;;  %v4887_v3 = vadd.f32 %v6540_v40, %v10188_v20  ;;  %v4878_v36 = vpop.f32.mrb[95].mxu0  ;;  %v5051_v43 = vpack.c.bf16 %v5027_v56, %v5026_v24 }
 0x3a3   : > { %v4959_v49 = vmul.f32 %v10237_v4, %v4876_v5  ;;  %v4879_v42 = vadd.f32 %v10183_v30, %v4878_v36  ;;  %v5050_v27 = vpack.c.bf16 %v5025_v38, %v5024_v44 }
 0x3a4   : > { %v4998_v57 = vadd.f32 %v10243_v50, %v4961_v16  ;;  %v4962_v60 = vmul.f32 %v10237_v4, %v4887_v3 }
 0x3a5   : > { %v4996_v23 = vadd.f32 %v10243_v50, %v4959_v49  ;;  %v4960_v58 = vmul.f32 %v10237_v4, %v4879_v42  ;;  %6581 = vmatprep.mubr.bf16.mxu0 %v5050_v27 }
 0x3a6   : > { %v4999_v21 = vadd.f32 %v10243_v50, %v4962_v60  ;;  %6582 = vmatmul.mubr.bf16.gmra.mrb[56].mxu0 %v5051_v43  ;;  %v5030_v11 = vmax.f32 %v4998_v57, 0.0 }
 0x3a7   : > { %v4997_v20 = vadd.f32 %v10243_v50, %v4960_v58  ;;  %v6543_v48 = vpop.f32.mrb[96].mxu0  ;;  %v5028_v2 = vmax.f32 %v4996_v23, 0.0 }
 0x3a8   : > { %v5031_v0 = vmax.f32 %v4999_v21, 0.0  ;;  %v4900_v30 = vadd.f32 %v6543_v48, %v10197_v26  ;;  %v4891_v25 = vpop.f32.mrb[97].mxu0 }
 0x3a9   : > { %v5029_v59 = vmax.f32 %v4997_v20, 0.0  ;;  %v4892_v19 = vadd.f32 %v10190_v37, %v4891_v25  ;;  %v6544_v54 = vpop.f32.mrb[98].mxu0 }
 0x3aa   : > { %v4965_v28 = vmul.f32 %v10237_v4, %v4900_v30  ;;  %v4903_v53 = vadd.f32 %v6544_v54, %v10200_v62  ;;  %v4894_v7 = vpop.f32.mrb[99].mxu0  ;;  %v5053_v1 = vpack.c.bf16 %v5031_v0, %v5030_v11 }
 0x3ab   : > { %v4963_v29 = vmul.f32 %v10237_v4, %v4892_v19  ;;  %v4895_v6 = vadd.f32 %v10192_v41, %v4894_v7  ;;  %v5052_v34 = vpack.c.bf16 %v5029_v59, %v5028_v2 }
 0x3ac   : > { %v5002_v22 = vadd.f32 %v10243_v50, %v4965_v28  ;;  %v4966_v26 = vmul.f32 %v10237_v4, %v4903_v53 }
 0x3ad   : > { %v5000_v13 = vadd.f32 %v10243_v50, %v4963_v29  ;;  %v4964_v37 = vmul.f32 %v10237_v4, %v4895_v6  ;;  %6585 = vmatprep.mubr.bf16.mxu0 %v5052_v34  ;;  %v5558_v29 = vlaneseq }
 0x3ae   : > { %v5003_v51 = vadd.f32 %v10243_v50, %v4966_v26  ;;  %6586 = vmatmul.mubr.bf16.gmra.mrb[60].mxu0 %v5053_v1  ;;  %v5034_v35 = vmax.f32 %v5002_v22, 0.0  ;;  %v10346_v26 = vld [vmem:[%s10542_s5 + $0x4] ss:$0 sm:$0xff] }
 0x3af   : > { %v5001_v62 = vadd.f32 %v10243_v50, %v4964_v37  ;;  %v6547_v18 = vpop.f32.mrb[100].mxu0  ;;  %v5032_v32 = vmax.f32 %v5000_v13, 0.0  ;;  %v5559_v6 = vshrl.u32 %v5558_v29, 7 }
 0x3b0   : > { %v5035_v63 = vmax.f32 %v5003_v51, 0.0  ;;  %v4916_v41 = vadd.f32 %v6547_v18, %v10216_v12  ;;  %v4907_v31 = vpop.f32.mrb[101].mxu0  ;;  %v10352_v51 = vld [vmem:[%s10543_s6 + $0x4] ss:$0 sm:$0xff] }
 0x3b1   : > { %v5033_v15 = vmax.f32 %v5001_v62, 0.0  ;;  %v4908_v39 = vadd.f32 %v10212_v33, %v4907_v31  ;;  %v6548_v55 = vpop.f32.mrb[102].mxu0  ;;  %v5560_v34 = vsub.s32 0, %v5559_v6 }
 0x3b2   : > { %v4969_v52 = vmul.f32 %v10237_v4, %v4916_v41  ;;  %v4919_v8 = vadd.f32 %v6548_v55, %v10218_v61  ;;  %v4910_v24 = vpop.f32.mrb[103].mxu0  ;;  %v5055_v56 = vpack.c.bf16 %v5035_v63, %v5034_v35 }
 0x3b3   : > { %v4967_v47 = vmul.f32 %v10237_v4, %v4908_v39  ;;  %v4911_v17 = vadd.f32 %v10214_v14, %v4910_v24  ;;  %v5054_v44 = vpack.c.bf16 %v5033_v15, %v5032_v32 }
 0x3b4   : > { %v5006_v38 = vadd.f32 %v10243_v50, %v4969_v52  ;;  %v4970_v12 = vmul.f32 %v10237_v4, %v4919_v8 }
 0x3b5   : > { %v5004_v5 = vadd.f32 %v10243_v50, %v4967_v47  ;;  %v4968_v33 = vmul.f32 %v10237_v4, %v4911_v17  ;;  %6589 = vmatprep.mubr.bf16.mxu0 %v5054_v44 }
 0x3b6   : > { %v5007_v40 = vadd.f32 %v10243_v50, %v4970_v12  ;;  %6590 = vmatmul.mubr.bf16.gmra.mrb[64].mxu0 %v5055_v56  ;;  %v5038_v3 = vmax.f32 %v5006_v38, 0.0 }
 0x3b7   : > { %v5005_v61 = vadd.f32 %v10243_v50, %v4968_v33  ;;  %v6551_v16 = vpop.f32.mrb[104].mxu0  ;;  %v5036_v49 = vmax.f32 %v5004_v5, 0.0 }
 0x3b8   : > { %v5039_v36 = vmax.f32 %v5007_v40, 0.0  ;;  %v4932_v14 = vadd.f32 %v6551_v16, %v10224_v45  ;;  %v4923_v43 = vpop.f32.mrb[105].mxu0 }
 0x3b9   : > { %v5037_v42 = vmax.f32 %v5005_v61, 0.0  ;;  %v4924_v27 = vadd.f32 %v10220_v10, %v4923_v43  ;;  %v6552_v57 = vpop.f32.mrb[106].mxu0 }
 0x3ba   : > { %v4973_v60 = vmul.f32 %v10237_v4, %v4932_v14  ;;  %v4935_v23 = vadd.f32 %v6552_v57, %v10226_v46  ;;  %v4926_v58 = vpop.f32.mrb[107].mxu0  ;;  %v5057_v21 = vpack.c.bf16 %v5039_v36, %v5038_v3 }
 0x3bb   : > { %v4971_v20 = vmul.f32 %v10237_v4, %v4924_v27  ;;  %v4927_v48 = vadd.f32 %v10222_v9, %v4926_v58  ;;  %v5056_v11 = vpack.c.bf16 %v5037_v42, %v5036_v49 }
 0x3bc   : > { %v5010_v0 = vadd.f32 %v10243_v50, %v4973_v60  ;;  %v4974_v45 = vmul.f32 %v10237_v4, %v4935_v23 }
 0x3bd   : > { %v5008_v30 = vadd.f32 %v10243_v50, %v4971_v20  ;;  %v4972_v10 = vmul.f32 %v10237_v4, %v4927_v48  ;;  %6593 = vmatprep.mubr.bf16.mxu0 %v5056_v11 }
 0x3be   : > { %v5011_v25 = vadd.f32 %v10243_v50, %v4974_v45  ;;  %6594 = vmatmul.mubr.bf16.gmra.mrb[68].mxu0 %v5057_v21  ;;  %v5042_v2 = vmax.f32 %v5010_v0, 0.0 }
 0x3bf   : > { %v5009_v46 = vadd.f32 %v10243_v50, %v4972_v10  ;;  %v5040_v19 = vmax.f32 %v5008_v30, 0.0 }
 0x3c0   : > { %v5043_v59 = vmax.f32 %v5011_v25, 0.0 }
 0x3c1   : > { %v5041_v9 = vmax.f32 %v5009_v46, 0.0 }
 0x3c2   : > { %v5059_v54 = vpack.c.bf16 %v5043_v59, %v5042_v2 }
 0x3c3   : > { %v5058_v28 = vpack.c.bf16 %v5041_v9, %v5040_v19 }
 0x3c5   : > { %6597 = vmatprep.mubr.bf16.mxu0 %v5058_v28 }
 0x3c6   : > { %6598 = vmatmul.mubr.bf16.gmra.mrb[72].mxu0 %v5059_v54 }
 0x413   : > { %v5552_v53 = vpop.f32.mrb[152].mxu1 }
 0x414   : > { %v6627_v7 = vpop.f32.mrb[153].mxu1  ;;  %v10340_v22 = vrot.slane %v5552_v53, %v5560_v34 }
 0x415   : > { %v5555_v1 = vpop.f32.mrb[154].mxu1 }
 0x416   : > { %v6628_v4 = vpop.f32.mrb[155].mxu1 }
 0x461   : > { %v6571_v50 = vpop.f32.mrb[44].mxu0 }
 0x462   : > { %v5564_v13 = vadd.f32 %v6571_v50, %v10340_v22  ;;  %v5158_v37 = vpop.f32.mrb[45].mxu0 }
 0x463   : > { %v5562_v62 = vadd.f32 %v10340_v22, %v5158_v37  ;;  %v6572_v18 = vpop.f32.mrb[46].mxu0 }
 0x464   : > { %v5601_v35 = vmul.f32 %v10346_v26, %v5564_v13  ;;  %v5565_v63 = vadd.f32 %v6572_v18, %v10340_v22  ;;  %v5161_v41 = vpop.f32.mrb[47].mxu0 }
 0x465   : > { %v5599_v31 = vmul.f32 %v10346_v26, %v5562_v62  ;;  %v5563_v32 = vadd.f32 %v10340_v22, %v5161_v41 }
 0x466   : > { %v5638_v15 = vadd.f32 %v10352_v51, %v5601_v35  ;;  %v5602_v39 = vmul.f32 %v10346_v26, %v5565_v63 }
 0x467   : > { %v5636_v55 = vadd.f32 %v10352_v51, %v5599_v31  ;;  %v5600_v52 = vmul.f32 %v10346_v26, %v5563_v32 }
 0x468   : > { %v5670_v8 = vmax.f32 %v5638_v15, 0.0  ;;  %v5639_v24 = vadd.f32 %v10352_v51, %v5602_v39 }
 0x469   : > { %v5668_v56 = vmax.f32 %v5636_v55, 0.0  ;;  %v5637_v47 = vadd.f32 %v10352_v51, %v5600_v52  ;;  %v6575_v17 = vpop.f32.mrb[48].mxu0 }
 0x46a   : > { %5702 = vst [vmem:[%s10367_s14 + $0x10] sm:$0xff] %v5670_v8  ;;  %v5671_v44 = vmax.f32 %v5639_v24, 0.0  ;;  %v5568_v38 = vadd.f32 %v6575_v17, %v10340_v22  ;;  %v5174_v12 = vpop.f32.mrb[49].mxu0 }
 0x46b   : > { %5700 = vst [vmem:[%s10367_s14] sm:$0xff] %v5668_v56  ;;  %v5669_v5 = vmax.f32 %v5637_v47, 0.0  ;;  %v5566_v33 = vadd.f32 %v10340_v22, %v5174_v12  ;;  %v6576_v40 = vpop.f32.mrb[50].mxu0 }
 0x46c   : > { %5703 = vst [vmem:[%s10367_s14 + $0x18] sm:$0xff] %v5671_v44  ;;  %v5605_v61 = vmul.f32 %v10346_v26, %v5568_v38  ;;  %v5569_v16 = vadd.f32 %v6576_v40, %v10340_v22  ;;  %v5177_v3 = vpop.f32.mrb[51].mxu0 }
 0x46d   : > { %5701 = vst [vmem:[%s10367_s14 + $0x8] sm:$0xff] %v5669_v5  ;;  %v5603_v36 = vmul.f32 %v10346_v26, %v5566_v33  ;;  %v5567_v14 = vadd.f32 %v10340_v22, %v5177_v3 }
 0x46e   : > { %v5642_v43 = vadd.f32 %v10352_v51, %v5605_v61  ;;  %v5606_v49 = vmul.f32 %v10346_v26, %v5569_v16 }
 0x46f   : > { %v5640_v42 = vadd.f32 %v10352_v51, %v5603_v36  ;;  %v5604_v27 = vmul.f32 %v10346_v26, %v5567_v14 }
 0x470   : > { %v5674_v57 = vmax.f32 %v5642_v43, 0.0  ;;  %v5643_v60 = vadd.f32 %v10352_v51, %v5606_v49 }
 0x471   : > { %v5672_v23 = vmax.f32 %v5640_v42, 0.0  ;;  %v5641_v58 = vadd.f32 %v10352_v51, %v5604_v27  ;;  %v6579_v21 = vpop.f32.mrb[52].mxu0 }
 0x472   : > { %5706 = vst [vmem:[%s10367_s14 + $0x30] sm:$0xff] %v5674_v57  ;;  %v5675_v20 = vmax.f32 %v5643_v60, 0.0  ;;  %v5572_v48 = vadd.f32 %v6579_v21, %v10340_v22  ;;  %v5190_v11 = vpop.f32.mrb[53].mxu0 }
 0x473   : > { %5704 = vst [vmem:[%s10367_s14 + $0x20] sm:$0xff] %v5672_v23  ;;  %v5673_v0 = vmax.f32 %v5641_v58, 0.0  ;;  %v5570_v45 = vadd.f32 %v10340_v22, %v5190_v11  ;;  %v6580_v30 = vpop.f32.mrb[54].mxu0 }
 0x474   : > { %5707 = vst [vmem:[%s10367_s14 + $0x38] sm:$0xff] %v5675_v20  ;;  %v5609_v10 = vmul.f32 %v10346_v26, %v5572_v48  ;;  %v5573_v25 = vadd.f32 %v6580_v30, %v10340_v22  ;;  %v5193_v46 = vpop.f32.mrb[55].mxu0 }
 0x475   : > { %5705 = vst [vmem:[%s10367_s14 + $0x28] sm:$0xff] %v5673_v0  ;;  %v5607_v2 = vmul.f32 %v10346_v26, %v5570_v45  ;;  %v5571_v59 = vadd.f32 %v10340_v22, %v5193_v46 }
 0x476   : > { %v5646_v19 = vadd.f32 %v10352_v51, %v5609_v10  ;;  %v5610_v9 = vmul.f32 %v10346_v26, %v5573_v25 }
 0x477   : > { %v5644_v54 = vadd.f32 %v10352_v51, %v5607_v2  ;;  %v5608_v28 = vmul.f32 %v10346_v26, %v5571_v59 }
 0x478   : > { %v5678_v53 = vmax.f32 %v5646_v19, 0.0  ;;  %v5647_v7 = vadd.f32 %v10352_v51, %v5610_v9 }
 0x479   : > { %v5676_v1 = vmax.f32 %v5644_v54, 0.0  ;;  %v5645_v4 = vadd.f32 %v10352_v51, %v5608_v28  ;;  %v6583_v29 = vpop.f32.mrb[56].mxu0 }
 0x47a   : > { %5710 = vst [vmem:[%s10367_s14 + $0x50] sm:$0xff] %v5678_v53  ;;  %v5679_v6 = vmax.f32 %v5647_v7, 0.0  ;;  %v5576_v34 = vadd.f32 %v6583_v29, %v10340_v22  ;;  %v5206_v50 = vpop.f32.mrb[57].mxu0 }
 0x47b   : > { %5708 = vst [vmem:[%s10367_s14 + $0x40] sm:$0xff] %v5676_v1  ;;  %v5677_v13 = vmax.f32 %v5645_v4, 0.0  ;;  %v5574_v37 = vadd.f32 %v10340_v22, %v5206_v50  ;;  %v6584_v62 = vpop.f32.mrb[58].mxu0 }
 0x47c   : > { %5711 = vst [vmem:[%s10367_s14 + $0x58] sm:$0xff] %v5679_v6  ;;  %v5613_v18 = vmul.f32 %v10346_v26, %v5576_v34  ;;  %v5577_v35 = vadd.f32 %v6584_v62, %v10340_v22  ;;  %v5209_v63 = vpop.f32.mrb[59].mxu0 }
 0x47d   : > { %5709 = vst [vmem:[%s10367_s14 + $0x48] sm:$0xff] %v5677_v13  ;;  %v5611_v41 = vmul.f32 %v10346_v26, %v5574_v37  ;;  %v5575_v31 = vadd.f32 %v10340_v22, %v5209_v63 }
 0x47e   : > { %v5650_v32 = vadd.f32 %v10352_v51, %v5613_v18  ;;  %v5614_v15 = vmul.f32 %v10346_v26, %v5577_v35 }
 0x47f   : > { %v5648_v39 = vadd.f32 %v10352_v51, %v5611_v41  ;;  %v5612_v55 = vmul.f32 %v10346_v26, %v5575_v31 }
 0x480   : > { %v5682_v52 = vmax.f32 %v5650_v32, 0.0  ;;  %v5651_v8 = vadd.f32 %v10352_v51, %v5614_v15 }
 0x481   : > { %v5680_v24 = vmax.f32 %v5648_v39, 0.0  ;;  %v5649_v56 = vadd.f32 %v10352_v51, %v5612_v55  ;;  %v6587_v47 = vpop.f32.mrb[60].mxu0 }
 0x482   : > { %5714 = vst [vmem:[%s10367_s14 + $0x70] sm:$0xff] %v5682_v52  ;;  %v5683_v17 = vmax.f32 %v5651_v8, 0.0  ;;  %v5580_v44 = vadd.f32 %v6587_v47, %v10340_v22  ;;  %v5222_v38 = vpop.f32.mrb[61].mxu0 }
 0x483   : > { %5712 = vst [vmem:[%s10367_s14 + $0x60] sm:$0xff] %v5680_v24  ;;  %v5681_v12 = vmax.f32 %v5649_v56, 0.0  ;;  %v5578_v5 = vadd.f32 %v10340_v22, %v5222_v38  ;;  %v6588_v33 = vpop.f32.mrb[62].mxu0 }
 0x484   : > { %5715 = vst [vmem:[%s10367_s14 + $0x78] sm:$0xff] %v5683_v17  ;;  %v5617_v40 = vmul.f32 %v10346_v26, %v5580_v44  ;;  %v5581_v61 = vadd.f32 %v6588_v33, %v10340_v22  ;;  %v5225_v16 = vpop.f32.mrb[63].mxu0 }
 0x485   : > { %5713 = vst [vmem:[%s10367_s14 + $0x68] sm:$0xff] %v5681_v12  ;;  %v5615_v3 = vmul.f32 %v10346_v26, %v5578_v5  ;;  %v5579_v36 = vadd.f32 %v10340_v22, %v5225_v16 }
 0x486   : > { %v5654_v14 = vadd.f32 %v10352_v51, %v5617_v40  ;;  %v5618_v43 = vmul.f32 %v10346_v26, %v5581_v61 }
 0x487   : > { %v5652_v49 = vadd.f32 %v10352_v51, %v5615_v3  ;;  %v5616_v42 = vmul.f32 %v10346_v26, %v5579_v36 }
 0x488   : > { %v5686_v27 = vmax.f32 %v5654_v14, 0.0  ;;  %v5655_v57 = vadd.f32 %v10352_v51, %v5618_v43 }
 0x489   : > { %v5684_v60 = vmax.f32 %v5652_v49, 0.0  ;;  %v5653_v23 = vadd.f32 %v10352_v51, %v5616_v42  ;;  %v6591_v58 = vpop.f32.mrb[64].mxu0 }
 0x48a   : > { %5718 = vst [vmem:[%s10367_s14 + $0x90] sm:$0xff] %v5686_v27  ;;  %v5687_v21 = vmax.f32 %v5655_v57, 0.0  ;;  %v5584_v20 = vadd.f32 %v6591_v58, %v10340_v22  ;;  %v5238_v48 = vpop.f32.mrb[65].mxu0 }
 0x48b   : > { %5716 = vst [vmem:[%s10367_s14 + $0x80] sm:$0xff] %v5684_v60  ;;  %v5685_v11 = vmax.f32 %v5653_v23, 0.0  ;;  %v5582_v0 = vadd.f32 %v10340_v22, %v5238_v48  ;;  %v6592_v45 = vpop.f32.mrb[66].mxu0 }
 0x48c   : > { %5719 = vst [vmem:[%s10367_s14 + $0x98] sm:$0xff] %v5687_v21  ;;  %v5621_v30 = vmul.f32 %v10346_v26, %v5584_v20  ;;  %v5585_v10 = vadd.f32 %v6592_v45, %v10340_v22  ;;  %v5241_v25 = vpop.f32.mrb[67].mxu0 }
 0x48d   : > { %5717 = vst [vmem:[%s10367_s14 + $0x88] sm:$0xff] %v5685_v11  ;;  %v5619_v46 = vmul.f32 %v10346_v26, %v5582_v0  ;;  %v5583_v2 = vadd.f32 %v10340_v22, %v5241_v25 }
 0x48e   : > { %v5658_v59 = vadd.f32 %v10352_v51, %v5621_v30  ;;  %v5622_v19 = vmul.f32 %v10346_v26, %v5585_v10 }
 0x48f   : > { %v5656_v9 = vadd.f32 %v10352_v51, %v5619_v46  ;;  %v5620_v54 = vmul.f32 %v10346_v26, %v5583_v2 }
 0x490   : > { %v5690_v28 = vmax.f32 %v5658_v59, 0.0  ;;  %v5659_v53 = vadd.f32 %v10352_v51, %v5622_v19 }
 0x491   : > { %v5688_v7 = vmax.f32 %v5656_v9, 0.0  ;;  %v5657_v1 = vadd.f32 %v10352_v51, %v5620_v54  ;;  %v6595_v4 = vpop.f32.mrb[68].mxu0 }
 0x492   : > { %5722 = vst [vmem:[%s10367_s14 + $0xb0] sm:$0xff] %v5690_v28  ;;  %v5691_v29 = vmax.f32 %v5659_v53, 0.0  ;;  %v5588_v6 = vadd.f32 %v6595_v4, %v10340_v22  ;;  %v5254_v34 = vpop.f32.mrb[69].mxu0 }
 0x493   : > { %5720 = vst [vmem:[%s10367_s14 + $0xa0] sm:$0xff] %v5688_v7  ;;  %v5689_v50 = vmax.f32 %v5657_v1, 0.0  ;;  %v5586_v13 = vadd.f32 %v10340_v22, %v5254_v34  ;;  %v6596_v37 = vpop.f32.mrb[70].mxu0 }
 0x494   : > { %5723 = vst [vmem:[%s10367_s14 + $0xb8] sm:$0xff] %v5691_v29  ;;  %v5625_v62 = vmul.f32 %v10346_v26, %v5588_v6  ;;  %v5589_v18 = vadd.f32 %v6596_v37, %v10340_v22  ;;  %v5257_v35 = vpop.f32.mrb[71].mxu0 }
 0x495   : > { %5721 = vst [vmem:[%s10367_s14 + $0xa8] sm:$0xff] %v5689_v50  ;;  %v5623_v63 = vmul.f32 %v10346_v26, %v5586_v13  ;;  %v5587_v41 = vadd.f32 %v10340_v22, %v5257_v35 }
 0x496   : > { %v5662_v31 = vadd.f32 %v10352_v51, %v5625_v62  ;;  %v5626_v32 = vmul.f32 %v10346_v26, %v5589_v18 }
 0x497   : > { %v5660_v15 = vadd.f32 %v10352_v51, %v5623_v63  ;;  %v5624_v39 = vmul.f32 %v10346_v26, %v5587_v41 }
 0x498   : > { %v5694_v55 = vmax.f32 %v5662_v31, 0.0  ;;  %v5663_v52 = vadd.f32 %v10352_v51, %v5626_v32 }
 0x499   : > { %v5692_v8 = vmax.f32 %v5660_v15, 0.0  ;;  %v5661_v24 = vadd.f32 %v10352_v51, %v5624_v39  ;;  %v6599_v56 = vpop.f32.mrb[72].mxu0 }
 0x49a   : > { %5726 = vst [vmem:[%s10367_s14 + $0xd0] sm:$0xff] %v5694_v55  ;;  %v5695_v47 = vmax.f32 %v5663_v52, 0.0  ;;  %v5592_v17 = vadd.f32 %v6599_v56, %v10340_v22  ;;  %v5270_v44 = vpop.f32.mrb[73].mxu0 }
 0x49b   : > { %5724 = vst [vmem:[%s10367_s14 + $0xc0] sm:$0xff] %v5692_v8  ;;  %v5693_v38 = vmax.f32 %v5661_v24, 0.0  ;;  %v5590_v12 = vadd.f32 %v10340_v22, %v5270_v44  ;;  %v6600_v5 = vpop.f32.mrb[74].mxu0 }
 0x49c   : > { %5727 = vst [vmem:[%s10367_s14 + $0xd8] sm:$0xff] %v5695_v47  ;;  %v5629_v33 = vmul.f32 %v10346_v26, %v5592_v17  ;;  %v5593_v40 = vadd.f32 %v6600_v5, %v10340_v22  ;;  %v5273_v61 = vpop.f32.mrb[75].mxu0 }
 0x49d   : > { %5725 = vst [vmem:[%s10367_s14 + $0xc8] sm:$0xff] %v5693_v38  ;;  %v5627_v16 = vmul.f32 %v10346_v26, %v5590_v12  ;;  %v5591_v3 = vadd.f32 %v10340_v22, %v5273_v61 }
 0x49e   : > { %v5666_v36 = vadd.f32 %v10352_v51, %v5629_v33  ;;  %v5630_v14 = vmul.f32 %v10346_v26, %v5593_v40 }
 0x49f   : > { %v5664_v43 = vadd.f32 %v10352_v51, %v5627_v16  ;;  %v5628_v49 = vmul.f32 %v10346_v26, %v5591_v3 }
 0x4a0   : > { %v5698_v42 = vmax.f32 %v5666_v36, 0.0  ;;  %v5667_v27 = vadd.f32 %v10352_v51, %v5630_v14 }
 0x4a1   : > { %v5696_v57 = vmax.f32 %v5664_v43, 0.0  ;;  %v5665_v22 = vadd.f32 %v10352_v51, %v5628_v49 }
 0x4a2   : > { %5730 = vst [vmem:[%s10367_s14 + $0xf0] sm:$0xff] %v5698_v42  ;;  %v5699_v60 = vmax.f32 %v5667_v27, 0.0 }
 0x4a3   : > { %5728 = vst [vmem:[%s10367_s14 + $0xe0] sm:$0xff] %v5696_v57  ;;  %v5697_v26 = vmax.f32 %v5665_v22, 0.0 }
 0x4a4   : > { %5731 = vst [vmem:[%s10367_s14 + $0xf8] sm:$0xff] %v5699_v60 }
 0x4a5   : > { %5729 = vst [vmem:[%s10367_s14 + $0xe8] sm:$0xff] %v5697_v26 }
 0x4a6   : > { %7854 = shalt.err (!%p7851_p3)
}
 0x4a7   : > { %s7855_s8 = scalar_lea.hbm %s10487_s20, 4096  ;;  %s7859_s23 = scalar_lea.hbm %s10544_s7, 8192 }
 0x4a8   : > { %p7856_p4 = scmp.ne.s32.totalorder %s10487_s20, %s7855_s8  ;;  %p7860_p9 = scmp.lt.u32.totalorder %s10487_s20, %s10544_s7 }
 0x4a9   : > { %p7861_p10 = scmp.lt.u32.totalorder %s7859_s23, %s7855_s8  ;;  %p7863_p12 = scmp.lt.u32.totalorder %s7855_s8, %s10487_s20 }
 0x4aa   : > { %p7857_p7 = pnand %p7856_p4, %p7991_p5 }
 0x4ab   : > { %p7862_p11 = por %p7861_p10, %p7860_p9 }
 0x4ac   : > { %p7858_p8 = pneg %p7857_p7 }
 0x4ad   : > { %p7864_p13 = por %p7863_p12, %p7862_p11 }
 0x4af   : > { %p7865_p0 = pnand %p7864_p13, %p7858_p8 }
 0x4b1   : > { %7868 = shalt.err (!%p7865_p0)
}
 0x4b2   : > { %s7911_s17 = smov 128   ;;  %s7912_s19 = smov 8  }
 0x4b3   : > { %6697 = dma.vmem_to_hbm [thread:$0]  (%p7991_p5), %s10489_s16, 4096, %s10487_s20, %s10496_s28, %s7911_s17, %s7911_s17, %s7912_s19  }
 0x4b4 PF: > { %p6703_p1 = scmp.ge.s32.totalorder %s7903_s27, 2  ;;  %s5761_s21 = sand.u32 1, %s7891_s24  }
 0x4b5   : > { %s5762_s22 = scalar_lea.sflag [#allocation4], %s5761_s21 }
 0x4b6   : > { %p6700_p2 = pnand %p6703_p1, %p7995_p6 }
 0x4b8   : > { %7886 = dma.done.wait (!%p6700_p2), %s5762_s22, 4096  }
 0x4b9   : > { %7888 = vsyncadd (!%p6700_p2), %s5762_s22, 4294963200  ;;  %p17_p3 = scmp.ge.s32.totalorder %s7978_s30, 4   ;;  %s10652_s24 = smov %s7895_s25 }
 0x4ba   : > { %s10653_s25 = smov %s7899_s26  ;;  %s10654_s26 = smov %s7989_s10 }
 0x4bb   : > { %s10655_s27 = smov %s7978_s30  ;;  %19 = sbr.rel (!%p17_p3) target bundleno = 3 (0x3), region = 89 }
 0x4c2   :  { %5767 = vsyncpa [#allocation4], 1 }
 0x4c3   :  { %5769 = vsyncpa [#allocation4 + $0x1], 1 }

</bundles_post_ra>
